<compile_context>
chip_gen: v7x
topology: tpu7x:2x2x1
jax: 0.10.0
libtpu: 0.0.40
codegen_flags: <defaults>
</compile_context>

<pallas_src>
import jax
import jax.numpy as jnp
import numpy as np
from jax import lax
from jax.experimental import pallas as pl
from jax.experimental.pallas import tpu as pltpu

# LeNet geometry (28x28 input, 5x5 valid convs, 2x2/2 pools)
_K = 5
_H_IN, _W_IN = 28, 28
_H1, _W1, _C1 = 24, 24, 6          # conv1 output
_HP1, _WP1 = 12, 12                # pool1 output
_H2, _W2, _C2 = 8, 8, 16           # conv2 output
_HP2, _WP2 = 4, 4                  # pool2 output

_LANE = 128                        # lane tile
_N1 = 2 * _LANE                    # padded per-tap block width: [even|pad|odd|pad]
_BT = 8                            # batch tile (multiple of 8 -> full sublane tiles)


# ---------------------------------------------------------------------------
# The single fused kernel
# ---------------------------------------------------------------------------
def _lenet_fused_kernel(x_ref, a1_ref, b1_ref, a2_ref, b2_ref,
                        w3_ref, b3_ref, w4_ref, b4_ref, w5_ref, b5_ref,
                        o_ref, p1_ref, pool1_ref, p2_ref, feat_ref):
    f32 = jnp.float32
    bt = o_ref.shape[0]

    # ---- conv1: ONE MXU matmul, M = 28*bt, K = 28, N = 5*256 -------------
    p1_ref[...] = jnp.dot(x_ref[...], a1_ref[...], preferred_element_type=f32)

    # bias broadcast hoisted out of the row loops
    b1v = jnp.broadcast_to(b1_ref[...], (bt, _N1))
    b2v = jnp.broadcast_to(b2_ref[...], (bt, _N1))

    # ---- assemble conv1 rows (+bias, relu) and fuse the 2x2 max-pool ------
    # column layout per row: [even cols (72) | pad -> 128 | odd cols (72) | pad]
    for u in range(_HP1):
        rows = []
        for r in (2 * u, 2 * u + 1):
            acc = b1v
            for di in range(_K):
                acc = acc + p1_ref[(r + di) * bt:(r + di + 1) * bt,
                                   di * _N1:(di + 1) * _N1]
            rows.append(jnp.maximum(acc, 0.0))                       # (bt, 256)
        hm = jnp.maximum(rows[0], rows[1])                           # H-direction pool
        pool1_ref[u * bt:(u + 1) * bt, :] = jnp.maximum(             # W-direction pool
            hm[:, 0:_LANE], hm[:, _LANE:_N1])

    # ---- conv2: ONE MXU matmul, M = 12*bt, K = 128, N = 5*256 -------------
    p2_ref[...] = jnp.dot(pool1_ref[...], a2_ref[...], preferred_element_type=f32)

    # ---- assemble conv2 rows + relu + 2x2 max-pool, stage features --------
    for u in range(_HP2):
        rows = []
        for r in (2 * u, 2 * u + 1):
            acc = b2v
            for di in range(_K):
                acc = acc + p2_ref[(r + di) * bt:(r + di + 1) * bt,
                                   di * _N1:(di + 1) * _N1]
            rows.append(jnp.maximum(acc, 0.0))                       # (bt, 256)
        hm = jnp.maximum(rows[0], rows[1])
        feat_ref[:, u * _LANE:(u + 1) * _LANE] = jnp.maximum(
            hm[:, 0:_LANE], hm[:, _LANE:_N1])                        # (bt, 128)

    # ---- fc1 / fc2 / fc3 (all padded to 128 lanes; final store lane-dense) --
    h = jnp.maximum(
        jnp.dot(feat_ref[...], w3_ref[...], preferred_element_type=f32) + b3_ref[...],
        0.0)
    h = jnp.maximum(
        jnp.dot(h, w4_ref[...], preferred_element_type=f32) + b4_ref[...], 0.0)
    o_ref[...] = jnp.dot(h, w5_ref[...], preferred_element_type=f32) + b5_ref[...]


# ---------------------------------------------------------------------------
# One-time host-side weight prep (hoisted out of the forward pass)
# ---------------------------------------------------------------------------
def prepare_params(params):
    w1 = np.asarray(params["conv1_w"], np.float32)     # (6, 1, 5, 5)
    w2 = np.asarray(params["conv2_w"], np.float32)     # (16, 6, 5, 5)
    fc1 = np.asarray(params["fc1_w"], np.float32)      # (120, 256), cols = NCHW flatten

    # 128-aligned column layout: even output cols in lanes [0, W/2*C), odd output
    # cols in lanes [128, 128 + W/2*C); the rest are zero pad lanes.
    def off1(j, co):  # conv1 output col j in [0,24), channel co in [0,6)
        return (0 if j % 2 == 0 else _LANE) + (j // 2) * _C1 + co

    def off2(j, co):  # conv2 output col j in [0,8), channel co in [0,16)
        return (0 if j % 2 == 0 else _LANE) + (j // 2) * _C2 + co

    # banded conv1 matrix: (28, 5 taps * 256)
    a1 = np.zeros((_W_IN, _K * _N1), np.float32)
    for di in range(_K):
        for dj in range(_K):
            for j in range(_W1):
                for co in range(_C1):
                    a1[j + dj, di * _N1 + off1(j, co)] = w1[co, 0, di, dj]
    b1 = np.zeros((1, _N1), np.float32)
    for j in range(_W1):
        for co in range(_C1):
            b1[0, off1(j, co)] = np.asarray(params["conv1_b"], np.float32)[co]

    # banded conv2 matrix: (128, 5 taps * 256); input lane = pooled_col*6 + ci
    a2 = np.zeros((_LANE, _K * _N1), np.float32)
    for di in range(_K):
        for dj in range(_K):
            for j in range(_W2):
                for co in range(_C2):
                    for ci in range(_C1):
                        a2[(j + dj) * _C1 + ci, di * _N1 + off2(j, co)] = w2[co, ci, di, dj]
    b2 = np.zeros((1, _N1), np.float32)
    for j in range(_W2):
        for co in range(_C2):
            b2[0, off2(j, co)] = np.asarray(params["conv2_b"], np.float32)[co]

    # fc1 permuted to consume the kernel's feature layout (lane = u*128 + v*16 + c,
    # lanes 64..127 of each 128-block are zero pad); outputs padded 120 -> 128.
    w3 = np.zeros((_HP2 * _LANE, _LANE), np.float32)
    for u in range(_HP2):
        for v in range(_WP2):
            for c in range(_C2):
                w3[u * _LANE + v * _C2 + c, :120] = \
                    fc1[:, c * (_HP2 * _WP2) + u * _WP2 + v]
    b3 = np.zeros((1, _LANE), np.float32)
    b3[0, :120] = np.asarray(params["fc1_b"], np.float32)

    w4 = np.zeros((_LANE, _LANE), np.float32)
    w4[:120, :84] = np.asarray(params["fc2_w"], np.float32).T
    b4 = np.zeros((1, _LANE), np.float32)
    b4[0, :84] = np.asarray(params["fc2_b"], np.float32)

    w5 = np.zeros((_LANE, _LANE), np.float32)
    w5[:84, :10] = np.asarray(params["fc3_w"], np.float32).T
    b5 = np.zeros((1, _LANE), np.float32)
    b5[0, :10] = np.asarray(params["fc3_b"], np.float32)

    return tuple(jnp.asarray(t) for t in (a1, b1, a2, b2, w3, b3, w4, b4, w5, b5))


# ---------------------------------------------------------------------------
# Forward pass: one pallas_call
# ---------------------------------------------------------------------------
@jax.jit
def net_forward(x_nchw, prepped):
    a1, b1, a2, b2, w3, b3, w4, b4, w5, b5 = prepped
    B = x_nchw.shape[0]
    bt = _BT
    G = pl.cdiv(B, bt)                  # grid steps (>=2 uses both TCs on v7x)
    B_pad = G * bt

    # input layout: per grid block a (28*bt, 28) slab, rows ordered (h, batch)
    x = x_nchw[:, 0, :, :].astype(jnp.float32)                      # (B, 28, 28)
    if B_pad != B:
        x = jnp.pad(x, ((0, B_pad - B), (0, 0), (0, 0)))
    x = (x.reshape(G, bt, _H_IN, _W_IN)
           .transpose(0, 2, 1, 3)
           .reshape(G, _H_IN * bt, _W_IN))                          # (G, 28*bt, 28)

    rep = lambda g: (0, 0)

    out = pl.pallas_call(
        _lenet_fused_kernel,
        out_shape=jax.ShapeDtypeStruct((B_pad, _LANE), jnp.float32),
        grid=(G,),
        in_specs=[
            pl.BlockSpec((None, _H_IN * bt, _W_IN), lambda g: (g, 0, 0)),   # x
            pl.BlockSpec(a1.shape, rep), pl.BlockSpec(b1.shape, rep),
            pl.BlockSpec(a2.shape, rep), pl.BlockSpec(b2.shape, rep),
            pl.BlockSpec(w3.shape, rep), pl.BlockSpec(b3.shape, rep),
            pl.BlockSpec(w4.shape, rep), pl.BlockSpec(b4.shape, rep),
            pl.BlockSpec(w5.shape, rep), pl.BlockSpec(b5.shape, rep),
        ],
        out_specs=pl.BlockSpec((bt, _LANE), lambda g: (g, 0)),
        scratch_shapes=[
            pltpu.VMEM((_H_IN * bt, _K * _N1), jnp.float32),   # p1 partials
            pltpu.VMEM((_HP1 * bt, _LANE), jnp.float32),       # pooled1 rows (stacked)
            pltpu.VMEM((_HP1 * bt, _K * _N1), jnp.float32),    # p2 partials
            pltpu.VMEM((bt, _HP2 * _LANE), jnp.float32),       # flattened features
        ],
        compiler_params=pltpu.CompilerParams(
            dimension_semantics=("parallel",)),
    )(x, a1, b1, a2, b2, w3, b3, w4, b4, w5, b5)

    return out[:B, :10]


# ---------------------------------------------------------------------------
# Pure-JAX reference (for the runtime correctness check)
# ---------------------------------------------------------------------------
def net_reference(x, params):
    def conv(x, w, b):
        y = lax.conv_general_dilated(
            x, w, (1, 1), "VALID", dimension_numbers=("NCHW", "OIHW", "NCHW"))
        return y + b.reshape(1, -1, 1, 1)

    def pool(x):
        return lax.reduce_window(
            x, -jnp.inf, lax.max, (1, 1, 2, 2), (1, 1, 2, 2), "VALID")

    y = pool(jnp.maximum(conv(x, params["conv1_w"], params["conv1_b"]), 0.0))
    y = pool(jnp.maximum(conv(y, params["conv2_w"], params["conv2_b"]), 0.0))
    y = y.reshape(y.shape[0], -1)
    y = jnp.maximum(y @ params["fc1_w"].T + params["fc1_b"], 0.0)
    y = jnp.maximum(y @ params["fc2_w"].T + params["fc2_b"], 0.0)
    return y @ params["fc3_w"].T + params["fc3_b"]


# ---------------------------------------------------------------------------
# Deterministic parameter init (torch-style uniform(-1/sqrt(fan_in), ...))
# ---------------------------------------------------------------------------
def init_params(key):
    def uni(k, shape, fan_in):
        bound = 1.0 / np.sqrt(fan_in)
        return jax.random.uniform(k, shape, jnp.float32, -bound, bound)

    ks = jax.random.split(key, 10)
    return {
        "conv1_w": uni(ks[0], (6, 1, 5, 5), 1 * 5 * 5),
        "conv1_b": uni(ks[1], (6,), 1 * 5 * 5),
        "conv2_w": uni(ks[2], (16, 6, 5, 5), 6 * 5 * 5),
        "conv2_b": uni(ks[3], (16,), 6 * 5 * 5),
        "fc1_w": uni(ks[4], (120, 256), 256),
        "fc1_b": uni(ks[5], (120,), 256),
        "fc2_w": uni(ks[6], (84, 120), 120),
        "fc2_b": uni(ks[7], (84,), 120),
        "fc3_w": uni(ks[8], (10, 84), 84),
        "fc3_b": uni(ks[9], (10,), 84),
    }


if __name__ == "__main__":
    key = jax.random.PRNGKey(0)
    k_x, k_p = jax.random.split(key)
    params = init_params(k_p)
    prepped = prepare_params(params)   # one-time weight prep (outside the forward)

    # Net implies 1x28x28 inputs (28 -> conv 24 -> pool 12 -> conv 8 -> pool 4).
    x = jax.random.normal(k_x, (2, 1, 28, 28), jnp.float32)

    out = jax.block_until_ready(net_forward(x, prepped))
    ref = jax.block_until_ready(net_reference(x, params))
    np.testing.assert_allclose(np.asarray(out), np.asarray(ref), rtol=5e-4, atol=5e-4)

    assert out.shape == (2, 10)
    print("KERNEL_OK")
</pallas_src>

<mosaic_0001>
module attributes {stable_mosaic.version = 11 : i64} {
  func.func @_lenet_fused_kernel(%arg0: i32, %arg1: memref<1x224x28xf32, #tpu.memory_space<vmem>>, %arg2: memref<28x1280xf32, #tpu.memory_space<vmem>>, %arg3: memref<1x256xf32, #tpu.memory_space<vmem>>, %arg4: memref<128x1280xf32, #tpu.memory_space<vmem>>, %arg5: memref<1x256xf32, #tpu.memory_space<vmem>>, %arg6: memref<512x128xf32, #tpu.memory_space<vmem>>, %arg7: memref<1x128xf32, #tpu.memory_space<vmem>>, %arg8: memref<128x128xf32, #tpu.memory_space<vmem>>, %arg9: memref<1x128xf32, #tpu.memory_space<vmem>>, %arg10: memref<128x128xf32, #tpu.memory_space<vmem>>, %arg11: memref<1x128xf32, #tpu.memory_space<vmem>>, %arg12: memref<8x128xf32, #tpu.memory_space<vmem>>, %arg13: memref<224x1280xf32, #tpu.memory_space<vmem>>, %arg14: memref<96x128xf32, #tpu.memory_space<vmem>>, %arg15: memref<96x1280xf32, #tpu.memory_space<vmem>>, %arg16: memref<8x512xf32, #tpu.memory_space<vmem>>) attributes {dimension_semantics = [#tpu.dimension_semantics<parallel>], iteration_bounds = array<i64: 1>, scalar_prefetch = 0 : i64, scratch_operands = 4 : i64, tpu.core_type = #tpu.core_type<tc>, window_params = [{transform_indices = @transform_0, window_bounds = array<i64: 1, 224, 28>}, {pipeline_mode = #tpu.pipeline_mode<synchronous>, transform_indices = @transform_1, window_bounds = array<i64: 28, 1280>}, {pipeline_mode = #tpu.pipeline_mode<synchronous>, transform_indices = @transform_2, window_bounds = array<i64: 1, 256>}, {pipeline_mode = #tpu.pipeline_mode<synchronous>, transform_indices = @transform_3, window_bounds = array<i64: 128, 1280>}, {pipeline_mode = #tpu.pipeline_mode<synchronous>, transform_indices = @transform_4, window_bounds = array<i64: 1, 256>}, {pipeline_mode = #tpu.pipeline_mode<synchronous>, transform_indices = @transform_5, window_bounds = array<i64: 512, 128>}, {pipeline_mode = #tpu.pipeline_mode<synchronous>, transform_indices = @transform_6, window_bounds = array<i64: 1, 128>}, {pipeline_mode = #tpu.pipeline_mode<synchronous>, transform_indices = @transform_7, window_bounds = array<i64: 128, 128>}, {pipeline_mode = #tpu.pipeline_mode<synchronous>, transform_indices = @transform_8, window_bounds = array<i64: 1, 128>}, {pipeline_mode = #tpu.pipeline_mode<synchronous>, transform_indices = @transform_9, window_bounds = array<i64: 128, 128>}, {pipeline_mode = #tpu.pipeline_mode<synchronous>, transform_indices = @transform_10, window_bounds = array<i64: 1, 128>}, {transform_indices = @transform_11, window_bounds = array<i64: 8, 128>}]} {
    %c0 = arith.constant 0 : index
    %c0_0 = arith.constant 0 : index
    %c0_1 = arith.constant 0 : index
    %0 = vector.load %arg1[%c0, %c0_0, %c0_1] : memref<1x224x28xf32, #tpu.memory_space<vmem>>, vector<1x224x28xf32>
    %1 = vector.shape_cast %0 : vector<1x224x28xf32> to vector<224x28xf32>
    %c0_2 = arith.constant 0 : index
    %c0_3 = arith.constant 0 : index
    %2 = vector.load %arg2[%c0_2, %c0_3] : memref<28x1280xf32, #tpu.memory_space<vmem>>, vector<28x1280xf32>
    %cst = arith.constant dense<0.000000e+00> : vector<224x1280xf32>
    %3 = tpu.matmul %1, %2, %cst {dimension_numbers = #tpu.dot_dimension_numbers<[1], [0], [0], [1], [0, 0, 1, 1], [], []>} : vector<224x28xf32>, vector<28x1280xf32>, vector<224x1280xf32> -> vector<224x1280xf32>
    %c0_4 = arith.constant 0 : index
    %c0_5 = arith.constant 0 : index
    %4 = vector.load %arg13[%c0_4, %c0_5] : memref<224x1280xf32, #tpu.memory_space<vmem>>, vector<224x1280xf32>
    tpu.vector_store %arg13[%c0_4, %c0_5], %3 {strides = array<i32>} : memref<224x1280xf32, #tpu.memory_space<vmem>>, vector<224x1280xf32>,
    %c0_6 = arith.constant 0 : index
    %c0_7 = arith.constant 0 : index
    %5 = vector.load %arg3[%c0_6, %c0_7] : memref<1x256xf32, #tpu.memory_space<vmem>>, vector<1x256xf32>
    %6 = vector.shape_cast %5 : vector<1x256xf32> to vector<1x256xf32>
    %7 = vector.broadcast %6 : vector<1x256xf32> to vector<8x256xf32>
    %c0_8 = arith.constant 0 : index
    %c0_9 = arith.constant 0 : index
    %8 = vector.load %arg5[%c0_8, %c0_9] : memref<1x256xf32, #tpu.memory_space<vmem>>, vector<1x256xf32>
    %9 = vector.shape_cast %8 : vector<1x256xf32> to vector<1x256xf32>
    %10 = vector.broadcast %9 : vector<1x256xf32> to vector<8x256xf32>
    %c0_10 = arith.constant 0 : index
    %c0_11 = arith.constant 0 : index
    %11 = vector.load %arg13[%c0_10, %c0_11] : memref<224x1280xf32, #tpu.memory_space<vmem>>, vector<8x256xf32>
    %12 = arith.addf %7, %11 : vector<8x256xf32>
    %c8 = arith.constant 8 : index
    %c256 = arith.constant 256 : index
    %13 = vector.load %arg13[%c8, %c256] : memref<224x1280xf32, #tpu.memory_space<vmem>>, vector<8x256xf32>
    %14 = arith.addf %12, %13 : vector<8x256xf32>
    %c16 = arith.constant 16 : index
    %c512 = arith.constant 512 : index
    %15 = vector.load %arg13[%c16, %c512] : memref<224x1280xf32, #tpu.memory_space<vmem>>, vector<8x256xf32>
    %16 = arith.addf %14, %15 : vector<8x256xf32>
    %c24 = arith.constant 24 : index
    %c768 = arith.constant 768 : index
    %17 = vector.load %arg13[%c24, %c768] : memref<224x1280xf32, #tpu.memory_space<vmem>>, vector<8x256xf32>
    %18 = arith.addf %16, %17 : vector<8x256xf32>
    %c32 = arith.constant 32 : index
    %c1024 = arith.constant 1024 : index
    %19 = vector.load %arg13[%c32, %c1024] : memref<224x1280xf32, #tpu.memory_space<vmem>>, vector<8x256xf32>
    %20 = arith.addf %18, %19 : vector<8x256xf32>
    %cst_12 = arith.constant 0.000000e+00 : f32
    %21 = vector.broadcast %cst_12 : f32 to vector<8x256xf32>
    %22 = arith.maximumf %20, %21 : vector<8x256xf32>
    %c8_13 = arith.constant 8 : index
    %c0_14 = arith.constant 0 : index
    %23 = vector.load %arg13[%c8_13, %c0_14] : memref<224x1280xf32, #tpu.memory_space<vmem>>, vector<8x256xf32>
    %24 = arith.addf %7, %23 : vector<8x256xf32>
    %c16_15 = arith.constant 16 : index
    %c256_16 = arith.constant 256 : index
    %25 = vector.load %arg13[%c16_15, %c256_16] : memref<224x1280xf32, #tpu.memory_space<vmem>>, vector<8x256xf32>
    %26 = arith.addf %24, %25 : vector<8x256xf32>
    %c24_17 = arith.constant 24 : index
    %c512_18 = arith.constant 512 : index
    %27 = vector.load %arg13[%c24_17, %c512_18] : memref<224x1280xf32, #tpu.memory_space<vmem>>, vector<8x256xf32>
    %28 = arith.addf %26, %27 : vector<8x256xf32>
    %c32_19 = arith.constant 32 : index
    %c768_20 = arith.constant 768 : index
    %29 = vector.load %arg13[%c32_19, %c768_20] : memref<224x1280xf32, #tpu.memory_space<vmem>>, vector<8x256xf32>
    %30 = arith.addf %28, %29 : vector<8x256xf32>
    %c40 = arith.constant 40 : index
    %c1024_21 = arith.constant 1024 : index
    %31 = vector.load %arg13[%c40, %c1024_21] : memref<224x1280xf32, #tpu.memory_space<vmem>>, vector<8x256xf32>
    %32 = arith.addf %30, %31 : vector<8x256xf32>
    %cst_22 = arith.constant 0.000000e+00 : f32
    %33 = vector.broadcast %cst_22 : f32 to vector<8x256xf32>
    %34 = arith.maximumf %32, %33 : vector<8x256xf32>
    %35 = arith.maximumf %22, %34 : vector<8x256xf32>
    %36 = vector.extract_strided_slice %35 {offsets = [0, 0], sizes = [8, 128], strides = [1, 1]} : vector<8x256xf32> to vector<8x128xf32>
    %37 = vector.extract_strided_slice %35 {offsets = [0, 128], sizes = [8, 128], strides = [1, 1]} : vector<8x256xf32> to vector<8x128xf32>
    %38 = arith.maximumf %36, %37 : vector<8x128xf32>
    %c0_23 = arith.constant 0 : index
    %c0_24 = arith.constant 0 : index
    %39 = vector.load %arg14[%c0_23, %c0_24] : memref<96x128xf32, #tpu.memory_space<vmem>>, vector<8x128xf32>
    tpu.vector_store %arg14[%c0_23, %c0_24], %38 {strides = array<i32>} : memref<96x128xf32, #tpu.memory_space<vmem>>, vector<8x128xf32>,
    %c16_25 = arith.constant 16 : index
    %c0_26 = arith.constant 0 : index
    %40 = vector.load %arg13[%c16_25, %c0_26] : memref<224x1280xf32, #tpu.memory_space<vmem>>, vector<8x256xf32>
    %41 = arith.addf %7, %40 : vector<8x256xf32>
    %c24_27 = arith.constant 24 : index
    %c256_28 = arith.constant 256 : index
    %42 = vector.load %arg13[%c24_27, %c256_28] : memref<224x1280xf32, #tpu.memory_space<vmem>>, vector<8x256xf32>
    %43 = arith.addf %41, %42 : vector<8x256xf32>
    %c32_29 = arith.constant 32 : index
    %c512_30 = arith.constant 512 : index
    %44 = vector.load %arg13[%c32_29, %c512_30] : memref<224x1280xf32, #tpu.memory_space<vmem>>, vector<8x256xf32>
    %45 = arith.addf %43, %44 : vector<8x256xf32>
    %c40_31 = arith.constant 40 : index
    %c768_32 = arith.constant 768 : index
    %46 = vector.load %arg13[%c40_31, %c768_32] : memref<224x1280xf32, #tpu.memory_space<vmem>>, vector<8x256xf32>
    %47 = arith.addf %45, %46 : vector<8x256xf32>
    %c48 = arith.constant 48 : index
    %c1024_33 = arith.constant 1024 : index
    %48 = vector.load %arg13[%c48, %c1024_33] : memref<224x1280xf32, #tpu.memory_space<vmem>>, vector<8x256xf32>
    %49 = arith.addf %47, %48 : vector<8x256xf32>
    %cst_34 = arith.constant 0.000000e+00 : f32
    %50 = vector.broadcast %cst_34 : f32 to vector<8x256xf32>
    %51 = arith.maximumf %49, %50 : vector<8x256xf32>
    %c24_35 = arith.constant 24 : index
    %c0_36 = arith.constant 0 : index
    %52 = vector.load %arg13[%c24_35, %c0_36] : memref<224x1280xf32, #tpu.memory_space<vmem>>, vector<8x256xf32>
    %53 = arith.addf %7, %52 : vector<8x256xf32>
    %c32_37 = arith.constant 32 : index
    %c256_38 = arith.constant 256 : index
    %54 = vector.load %arg13[%c32_37, %c256_38] : memref<224x1280xf32, #tpu.memory_space<vmem>>, vector<8x256xf32>
    %55 = arith.addf %53, %54 : vector<8x256xf32>
    %c40_39 = arith.constant 40 : index
    %c512_40 = arith.constant 512 : index
    %56 = vector.load %arg13[%c40_39, %c512_40] : memref<224x1280xf32, #tpu.memory_space<vmem>>, vector<8x256xf32>
    %57 = arith.addf %55, %56 : vector<8x256xf32>
    %c48_41 = arith.constant 48 : index
    %c768_42 = arith.constant 768 : index
    %58 = vector.load %arg13[%c48_41, %c768_42] : memref<224x1280xf32, #tpu.memory_space<vmem>>, vector<8x256xf32>
    %59 = arith.addf %57, %58 : vector<8x256xf32>
    %c56 = arith.constant 56 : index
    %c1024_43 = arith.constant 1024 : index
    %60 = vector.load %arg13[%c56, %c1024_43] : memref<224x1280xf32, #tpu.memory_space<vmem>>, vector<8x256xf32>
    %61 = arith.addf %59, %60 : vector<8x256xf32>
    %cst_44 = arith.constant 0.000000e+00 : f32
    %62 = vector.broadcast %cst_44 : f32 to vector<8x256xf32>
    %63 = arith.maximumf %61, %62 : vector<8x256xf32>
    %64 = arith.maximumf %51, %63 : vector<8x256xf32>
    %65 = vector.extract_strided_slice %64 {offsets = [0, 0], sizes = [8, 128], strides = [1, 1]} : vector<8x256xf32> to vector<8x128xf32>
    %66 = vector.extract_strided_slice %64 {offsets = [0, 128], sizes = [8, 128], strides = [1, 1]} : vector<8x256xf32> to vector<8x128xf32>
    %67 = arith.maximumf %65, %66 : vector<8x128xf32>
    %c8_45 = arith.constant 8 : index
    %c0_46 = arith.constant 0 : index
    %68 = vector.load %arg14[%c8_45, %c0_46] : memref<96x128xf32, #tpu.memory_space<vmem>>, vector<8x128xf32>
    tpu.vector_store %arg14[%c8_45, %c0_46], %67 {strides = array<i32>} : memref<96x128xf32, #tpu.memory_space<vmem>>, vector<8x128xf32>,
    %c32_47 = arith.constant 32 : index
    %c0_48 = arith.constant 0 : index
    %69 = vector.load %arg13[%c32_47, %c0_48] : memref<224x1280xf32, #tpu.memory_space<vmem>>, vector<8x256xf32>
    %70 = arith.addf %7, %69 : vector<8x256xf32>
    %c40_49 = arith.constant 40 : index
    %c256_50 = arith.constant 256 : index
    %71 = vector.load %arg13[%c40_49, %c256_50] : memref<224x1280xf32, #tpu.memory_space<vmem>>, vector<8x256xf32>
    %72 = arith.addf %70, %71 : vector<8x256xf32>
    %c48_51 = arith.constant 48 : index
    %c512_52 = arith.constant 512 : index
    %73 = vector.load %arg13[%c48_51, %c512_52] : memref<224x1280xf32, #tpu.memory_space<vmem>>, vector<8x256xf32>
    %74 = arith.addf %72, %73 : vector<8x256xf32>
    %c56_53 = arith.constant 56 : index
    %c768_54 = arith.constant 768 : index
    %75 = vector.load %arg13[%c56_53, %c768_54] : memref<224x1280xf32, #tpu.memory_space<vmem>>, vector<8x256xf32>
    %76 = arith.addf %74, %75 : vector<8x256xf32>
    %c64 = arith.constant 64 : index
    %c1024_55 = arith.constant 1024 : index
    %77 = vector.load %arg13[%c64, %c1024_55] : memref<224x1280xf32, #tpu.memory_space<vmem>>, vector<8x256xf32>
    %78 = arith.addf %76, %77 : vector<8x256xf32>
    %cst_56 = arith.constant 0.000000e+00 : f32
    %79 = vector.broadcast %cst_56 : f32 to vector<8x256xf32>
    %80 = arith.maximumf %78, %79 : vector<8x256xf32>
    %c40_57 = arith.constant 40 : index
    %c0_58 = arith.constant 0 : index
    %81 = vector.load %arg13[%c40_57, %c0_58] : memref<224x1280xf32, #tpu.memory_space<vmem>>, vector<8x256xf32>
    %82 = arith.addf %7, %81 : vector<8x256xf32>
    %c48_59 = arith.constant 48 : index
    %c256_60 = arith.constant 256 : index
    %83 = vector.load %arg13[%c48_59, %c256_60] : memref<224x1280xf32, #tpu.memory_space<vmem>>, vector<8x256xf32>
    %84 = arith.addf %82, %83 : vector<8x256xf32>
    %c56_61 = arith.constant 56 : index
    %c512_62 = arith.constant 512 : index
    %85 = vector.load %arg13[%c56_61, %c512_62] : memref<224x1280xf32, #tpu.memory_space<vmem>>, vector<8x256xf32>
    %86 = arith.addf %84, %85 : vector<8x256xf32>
    %c64_63 = arith.constant 64 : index
    %c768_64 = arith.constant 768 : index
    %87 = vector.load %arg13[%c64_63, %c768_64] : memref<224x1280xf32, #tpu.memory_space<vmem>>, vector<8x256xf32>
    %88 = arith.addf %86, %87 : vector<8x256xf32>
    %c72 = arith.constant 72 : index
    %c1024_65 = arith.constant 1024 : index
    %89 = vector.load %arg13[%c72, %c1024_65] : memref<224x1280xf32, #tpu.memory_space<vmem>>, vector<8x256xf32>
    %90 = arith.addf %88, %89 : vector<8x256xf32>
    %cst_66 = arith.constant 0.000000e+00 : f32
    %91 = vector.broadcast %cst_66 : f32 to vector<8x256xf32>
    %92 = arith.maximumf %90, %91 : vector<8x256xf32>
    %93 = arith.maximumf %80, %92 : vector<8x256xf32>
    %94 = vector.extract_strided_slice %93 {offsets = [0, 0], sizes = [8, 128], strides = [1, 1]} : vector<8x256xf32> to vector<8x128xf32>
    %95 = vector.extract_strided_slice %93 {offsets = [0, 128], sizes = [8, 128], strides = [1, 1]} : vector<8x256xf32> to vector<8x128xf32>
    %96 = arith.maximumf %94, %95 : vector<8x128xf32>
    %c16_67 = arith.constant 16 : index
    %c0_68 = arith.constant 0 : index
    %97 = vector.load %arg14[%c16_67, %c0_68] : memref<96x128xf32, #tpu.memory_space<vmem>>, vector<8x128xf32>
    tpu.vector_store %arg14[%c16_67, %c0_68], %96 {strides = array<i32>} : memref<96x128xf32, #tpu.memory_space<vmem>>, vector<8x128xf32>,
    %c48_69 = arith.constant 48 : index
    %c0_70 = arith.constant 0 : index
    %98 = vector.load %arg13[%c48_69, %c0_70] : memref<224x1280xf32, #tpu.memory_space<vmem>>, vector<8x256xf32>
    %99 = arith.addf %7, %98 : vector<8x256xf32>
    %c56_71 = arith.constant 56 : index
    %c256_72 = arith.constant 256 : index
    %100 = vector.load %arg13[%c56_71, %c256_72] : memref<224x1280xf32, #tpu.memory_space<vmem>>, vector<8x256xf32>
    %101 = arith.addf %99, %100 : vector<8x256xf32>
    %c64_73 = arith.constant 64 : index
    %c512_74 = arith.constant 512 : index
    %102 = vector.load %arg13[%c64_73, %c512_74] : memref<224x1280xf32, #tpu.memory_space<vmem>>, vector<8x256xf32>
    %103 = arith.addf %101, %102 : vector<8x256xf32>
    %c72_75 = arith.constant 72 : index
    %c768_76 = arith.constant 768 : index
    %104 = vector.load %arg13[%c72_75, %c768_76] : memref<224x1280xf32, #tpu.memory_space<vmem>>, vector<8x256xf32>
    %105 = arith.addf %103, %104 : vector<8x256xf32>
    %c80 = arith.constant 80 : index
    %c1024_77 = arith.constant 1024 : index
    %106 = vector.load %arg13[%c80, %c1024_77] : memref<224x1280xf32, #tpu.memory_space<vmem>>, vector<8x256xf32>
    %107 = arith.addf %105, %106 : vector<8x256xf32>
    %cst_78 = arith.constant 0.000000e+00 : f32
    %108 = vector.broadcast %cst_78 : f32 to vector<8x256xf32>
    %109 = arith.maximumf %107, %108 : vector<8x256xf32>
    %c56_79 = arith.constant 56 : index
    %c0_80 = arith.constant 0 : index
    %110 = vector.load %arg13[%c56_79, %c0_80] : memref<224x1280xf32, #tpu.memory_space<vmem>>, vector<8x256xf32>
    %111 = arith.addf %7, %110 : vector<8x256xf32>
    %c64_81 = arith.constant 64 : index
    %c256_82 = arith.constant 256 : index
    %112 = vector.load %arg13[%c64_81, %c256_82] : memref<224x1280xf32, #tpu.memory_space<vmem>>, vector<8x256xf32>
    %113 = arith.addf %111, %112 : vector<8x256xf32>
    %c72_83 = arith.constant 72 : index
    %c512_84 = arith.constant 512 : index
    %114 = vector.load %arg13[%c72_83, %c512_84] : memref<224x1280xf32, #tpu.memory_space<vmem>>, vector<8x256xf32>
    %115 = arith.addf %113, %114 : vector<8x256xf32>
    %c80_85 = arith.constant 80 : index
    %c768_86 = arith.constant 768 : index
    %116 = vector.load %arg13[%c80_85, %c768_86] : memref<224x1280xf32, #tpu.memory_space<vmem>>, vector<8x256xf32>
    %117 = arith.addf %115, %116 : vector<8x256xf32>
    %c88 = arith.constant 88 : index
    %c1024_87 = arith.constant 1024 : index
    %118 = vector.load %arg13[%c88, %c1024_87] : memref<224x1280xf32, #tpu.memory_space<vmem>>, vector<8x256xf32>
    %119 = arith.addf %117, %118 : vector<8x256xf32>
    %cst_88 = arith.constant 0.000000e+00 : f32
    %120 = vector.broadcast %cst_88 : f32 to vector<8x256xf32>
    %121 = arith.maximumf %119, %120 : vector<8x256xf32>
    %122 = arith.maximumf %109, %121 : vector<8x256xf32>
    %123 = vector.extract_strided_slice %122 {offsets = [0, 0], sizes = [8, 128], strides = [1, 1]} : vector<8x256xf32> to vector<8x128xf32>
    %124 = vector.extract_strided_slice %122 {offsets = [0, 128], sizes = [8, 128], strides = [1, 1]} : vector<8x256xf32> to vector<8x128xf32>
    %125 = arith.maximumf %123, %124 : vector<8x128xf32>
    %c24_89 = arith.constant 24 : index
    %c0_90 = arith.constant 0 : index
    %126 = vector.load %arg14[%c24_89, %c0_90] : memref<96x128xf32, #tpu.memory_space<vmem>>, vector<8x128xf32>
    tpu.vector_store %arg14[%c24_89, %c0_90], %125 {strides = array<i32>} : memref<96x128xf32, #tpu.memory_space<vmem>>, vector<8x128xf32>,
    %c64_91 = arith.constant 64 : index
    %c0_92 = arith.constant 0 : index
    %127 = vector.load %arg13[%c64_91, %c0_92] : memref<224x1280xf32, #tpu.memory_space<vmem>>, vector<8x256xf32>
    %128 = arith.addf %7, %127 : vector<8x256xf32>
    %c72_93 = arith.constant 72 : index
    %c256_94 = arith.constant 256 : index
    %129 = vector.load %arg13[%c72_93, %c256_94] : memref<224x1280xf32, #tpu.memory_space<vmem>>, vector<8x256xf32>
    %130 = arith.addf %128, %129 : vector<8x256xf32>
    %c80_95 = arith.constant 80 : index
    %c512_96 = arith.constant 512 : index
    %131 = vector.load %arg13[%c80_95, %c512_96] : memref<224x1280xf32, #tpu.memory_space<vmem>>, vector<8x256xf32>
    %132 = arith.addf %130, %131 : vector<8x256xf32>
    %c88_97 = arith.constant 88 : index
    %c768_98 = arith.constant 768 : index
    %133 = vector.load %arg13[%c88_97, %c768_98] : memref<224x1280xf32, #tpu.memory_space<vmem>>, vector<8x256xf32>
    %134 = arith.addf %132, %133 : vector<8x256xf32>
    %c96 = arith.constant 96 : index
    %c1024_99 = arith.constant 1024 : index
    %135 = vector.load %arg13[%c96, %c1024_99] : memref<224x1280xf32, #tpu.memory_space<vmem>>, vector<8x256xf32>
    %136 = arith.addf %134, %135 : vector<8x256xf32>
    %cst_100 = arith.constant 0.000000e+00 : f32
    %137 = vector.broadcast %cst_100 : f32 to vector<8x256xf32>
    %138 = arith.maximumf %136, %137 : vector<8x256xf32>
    %c72_101 = arith.constant 72 : index
    %c0_102 = arith.constant 0 : index
    %139 = vector.load %arg13[%c72_101, %c0_102] : memref<224x1280xf32, #tpu.memory_space<vmem>>, vector<8x256xf32>
    %140 = arith.addf %7, %139 : vector<8x256xf32>
    %c80_103 = arith.constant 80 : index
    %c256_104 = arith.constant 256 : index
    %141 = vector.load %arg13[%c80_103, %c256_104] : memref<224x1280xf32, #tpu.memory_space<vmem>>, vector<8x256xf32>
    %142 = arith.addf %140, %141 : vector<8x256xf32>
    %c88_105 = arith.constant 88 : index
    %c512_106 = arith.constant 512 : index
    %143 = vector.load %arg13[%c88_105, %c512_106] : memref<224x1280xf32, #tpu.memory_space<vmem>>, vector<8x256xf32>
    %144 = arith.addf %142, %143 : vector<8x256xf32>
    %c96_107 = arith.constant 96 : index
    %c768_108 = arith.constant 768 : index
    %145 = vector.load %arg13[%c96_107, %c768_108] : memref<224x1280xf32, #tpu.memory_space<vmem>>, vector<8x256xf32>
    %146 = arith.addf %144, %145 : vector<8x256xf32>
    %c104 = arith.constant 104 : index
    %c1024_109 = arith.constant 1024 : index
    %147 = vector.load %arg13[%c104, %c1024_109] : memref<224x1280xf32, #tpu.memory_space<vmem>>, vector<8x256xf32>
    %148 = arith.addf %146, %147 : vector<8x256xf32>
    %cst_110 = arith.constant 0.000000e+00 : f32
    %149 = vector.broadcast %cst_110 : f32 to vector<8x256xf32>
    %150 = arith.maximumf %148, %149 : vector<8x256xf32>
    %151 = arith.maximumf %138, %150 : vector<8x256xf32>
    %152 = vector.extract_strided_slice %151 {offsets = [0, 0], sizes = [8, 128], strides = [1, 1]} : vector<8x256xf32> to vector<8x128xf32>
    %153 = vector.extract_strided_slice %151 {offsets = [0, 128], sizes = [8, 128], strides = [1, 1]} : vector<8x256xf32> to vector<8x128xf32>
    %154 = arith.maximumf %152, %153 : vector<8x128xf32>
    %c32_111 = arith.constant 32 : index
    %c0_112 = arith.constant 0 : index
    %155 = vector.load %arg14[%c32_111, %c0_112] : memref<96x128xf32, #tpu.memory_space<vmem>>, vector<8x128xf32>
    tpu.vector_store %arg14[%c32_111, %c0_112], %154 {strides = array<i32>} : memref<96x128xf32, #tpu.memory_space<vmem>>, vector<8x128xf32>,
    %c80_113 = arith.constant 80 : index
    %c0_114 = arith.constant 0 : index
    %156 = vector.load %arg13[%c80_113, %c0_114] : memref<224x1280xf32, #tpu.memory_space<vmem>>, vector<8x256xf32>
    %157 = arith.addf %7, %156 : vector<8x256xf32>
    %c88_115 = arith.constant 88 : index
    %c256_116 = arith.constant 256 : index
    %158 = vector.load %arg13[%c88_115, %c256_116] : memref<224x1280xf32, #tpu.memory_space<vmem>>, vector<8x256xf32>
    %159 = arith.addf %157, %158 : vector<8x256xf32>
    %c96_117 = arith.constant 96 : index
    %c512_118 = arith.constant 512 : index
    %160 = vector.load %arg13[%c96_117, %c512_118] : memref<224x1280xf32, #tpu.memory_space<vmem>>, vector<8x256xf32>
    %161 = arith.addf %159, %160 : vector<8x256xf32>
    %c104_119 = arith.constant 104 : index
    %c768_120 = arith.constant 768 : index
    %162 = vector.load %arg13[%c104_119, %c768_120] : memref<224x1280xf32, #tpu.memory_space<vmem>>, vector<8x256xf32>
    %163 = arith.addf %161, %162 : vector<8x256xf32>
    %c112 = arith.constant 112 : index
    %c1024_121 = arith.constant 1024 : index
    %164 = vector.load %arg13[%c112, %c1024_121] : memref<224x1280xf32, #tpu.memory_space<vmem>>, vector<8x256xf32>
    %165 = arith.addf %163, %164 : vector<8x256xf32>
    %cst_122 = arith.constant 0.000000e+00 : f32
    %166 = vector.broadcast %cst_122 : f32 to vector<8x256xf32>
    %167 = arith.maximumf %165, %166 : vector<8x256xf32>
    %c88_123 = arith.constant 88 : index
    %c0_124 = arith.constant 0 : index
    %168 = vector.load %arg13[%c88_123, %c0_124] : memref<224x1280xf32, #tpu.memory_space<vmem>>, vector<8x256xf32>
    %169 = arith.addf %7, %168 : vector<8x256xf32>
    %c96_125 = arith.constant 96 : index
    %c256_126 = arith.constant 256 : index
    %170 = vector.load %arg13[%c96_125, %c256_126] : memref<224x1280xf32, #tpu.memory_space<vmem>>, vector<8x256xf32>
    %171 = arith.addf %169, %170 : vector<8x256xf32>
    %c104_127 = arith.constant 104 : index
    %c512_128 = arith.constant 512 : index
    %172 = vector.load %arg13[%c104_127, %c512_128] : memref<224x1280xf32, #tpu.memory_space<vmem>>, vector<8x256xf32>
    %173 = arith.addf %171, %172 : vector<8x256xf32>
    %c112_129 = arith.constant 112 : index
    %c768_130 = arith.constant 768 : index
    %174 = vector.load %arg13[%c112_129, %c768_130] : memref<224x1280xf32, #tpu.memory_space<vmem>>, vector<8x256xf32>
    %175 = arith.addf %173, %174 : vector<8x256xf32>
    %c120 = arith.constant 120 : index
    %c1024_131 = arith.constant 1024 : index
    %176 = vector.load %arg13[%c120, %c1024_131] : memref<224x1280xf32, #tpu.memory_space<vmem>>, vector<8x256xf32>
    %177 = arith.addf %175, %176 : vector<8x256xf32>
    %cst_132 = arith.constant 0.000000e+00 : f32
    %178 = vector.broadcast %cst_132 : f32 to vector<8x256xf32>
    %179 = arith.maximumf %177, %178 : vector<8x256xf32>
    %180 = arith.maximumf %167, %179 : vector<8x256xf32>
    %181 = vector.extract_strided_slice %180 {offsets = [0, 0], sizes = [8, 128], strides = [1, 1]} : vector<8x256xf32> to vector<8x128xf32>
    %182 = vector.extract_strided_slice %180 {offsets = [0, 128], sizes = [8, 128], strides = [1, 1]} : vector<8x256xf32> to vector<8x128xf32>
    %183 = arith.maximumf %181, %182 : vector<8x128xf32>
    %c40_133 = arith.constant 40 : index
    %c0_134 = arith.constant 0 : index
    %184 = vector.load %arg14[%c40_133, %c0_134] : memref<96x128xf32, #tpu.memory_space<vmem>>, vector<8x128xf32>
    tpu.vector_store %arg14[%c40_133, %c0_134], %183 {strides = array<i32>} : memref<96x128xf32, #tpu.memory_space<vmem>>, vector<8x128xf32>,
    %c96_135 = arith.constant 96 : index
    %c0_136 = arith.constant 0 : index
    %185 = vector.load %arg13[%c96_135, %c0_136] : memref<224x1280xf32, #tpu.memory_space<vmem>>, vector<8x256xf32>
    %186 = arith.addf %7, %185 : vector<8x256xf32>
    %c104_137 = arith.constant 104 : index
    %c256_138 = arith.constant 256 : index
    %187 = vector.load %arg13[%c104_137, %c256_138] : memref<224x1280xf32, #tpu.memory_space<vmem>>, vector<8x256xf32>
    %188 = arith.addf %186, %187 : vector<8x256xf32>
    %c112_139 = arith.constant 112 : index
    %c512_140 = arith.constant 512 : index
    %189 = vector.load %arg13[%c112_139, %c512_140] : memref<224x1280xf32, #tpu.memory_space<vmem>>, vector<8x256xf32>
    %190 = arith.addf %188, %189 : vector<8x256xf32>
    %c120_141 = arith.constant 120 : index
    %c768_142 = arith.constant 768 : index
    %191 = vector.load %arg13[%c120_141, %c768_142] : memref<224x1280xf32, #tpu.memory_space<vmem>>, vector<8x256xf32>
    %192 = arith.addf %190, %191 : vector<8x256xf32>
    %c128 = arith.constant 128 : index
    %c1024_143 = arith.constant 1024 : index
    %193 = vector.load %arg13[%c128, %c1024_143] : memref<224x1280xf32, #tpu.memory_space<vmem>>, vector<8x256xf32>
    %194 = arith.addf %192, %193 : vector<8x256xf32>
    %cst_144 = arith.constant 0.000000e+00 : f32
    %195 = vector.broadcast %cst_144 : f32 to vector<8x256xf32>
    %196 = arith.maximumf %194, %195 : vector<8x256xf32>
    %c104_145 = arith.constant 104 : index
    %c0_146 = arith.constant 0 : index
    %197 = vector.load %arg13[%c104_145, %c0_146] : memref<224x1280xf32, #tpu.memory_space<vmem>>, vector<8x256xf32>
    %198 = arith.addf %7, %197 : vector<8x256xf32>
    %c112_147 = arith.constant 112 : index
    %c256_148 = arith.constant 256 : index
    %199 = vector.load %arg13[%c112_147, %c256_148] : memref<224x1280xf32, #tpu.memory_space<vmem>>, vector<8x256xf32>
    %200 = arith.addf %198, %199 : vector<8x256xf32>
    %c120_149 = arith.constant 120 : index
    %c512_150 = arith.constant 512 : index
    %201 = vector.load %arg13[%c120_149, %c512_150] : memref<224x1280xf32, #tpu.memory_space<vmem>>, vector<8x256xf32>
    %202 = arith.addf %200, %201 : vector<8x256xf32>
    %c128_151 = arith.constant 128 : index
    %c768_152 = arith.constant 768 : index
    %203 = vector.load %arg13[%c128_151, %c768_152] : memref<224x1280xf32, #tpu.memory_space<vmem>>, vector<8x256xf32>
    %204 = arith.addf %202, %203 : vector<8x256xf32>
    %c136 = arith.constant 136 : index
    %c1024_153 = arith.constant 1024 : index
    %205 = vector.load %arg13[%c136, %c1024_153] : memref<224x1280xf32, #tpu.memory_space<vmem>>, vector<8x256xf32>
    %206 = arith.addf %204, %205 : vector<8x256xf32>
    %cst_154 = arith.constant 0.000000e+00 : f32
    %207 = vector.broadcast %cst_154 : f32 to vector<8x256xf32>
    %208 = arith.maximumf %206, %207 : vector<8x256xf32>
    %209 = arith.maximumf %196, %208 : vector<8x256xf32>
    %210 = vector.extract_strided_slice %209 {offsets = [0, 0], sizes = [8, 128], strides = [1, 1]} : vector<8x256xf32> to vector<8x128xf32>
    %211 = vector.extract_strided_slice %209 {offsets = [0, 128], sizes = [8, 128], strides = [1, 1]} : vector<8x256xf32> to vector<8x128xf32>
    %212 = arith.maximumf %210, %211 : vector<8x128xf32>
    %c48_155 = arith.constant 48 : index
    %c0_156 = arith.constant 0 : index
    %213 = vector.load %arg14[%c48_155, %c0_156] : memref<96x128xf32, #tpu.memory_space<vmem>>, vector<8x128xf32>
    tpu.vector_store %arg14[%c48_155, %c0_156], %212 {strides = array<i32>} : memref<96x128xf32, #tpu.memory_space<vmem>>, vector<8x128xf32>,
    %c112_157 = arith.constant 112 : index
    %c0_158 = arith.constant 0 : index
    %214 = vector.load %arg13[%c112_157, %c0_158] : memref<224x1280xf32, #tpu.memory_space<vmem>>, vector<8x256xf32>
    %215 = arith.addf %7, %214 : vector<8x256xf32>
    %c120_159 = arith.constant 120 : index
    %c256_160 = arith.constant 256 : index
    %216 = vector.load %arg13[%c120_159, %c256_160] : memref<224x1280xf32, #tpu.memory_space<vmem>>, vector<8x256xf32>
    %217 = arith.addf %215, %216 : vector<8x256xf32>
    %c128_161 = arith.constant 128 : index
    %c512_162 = arith.constant 512 : index
    %218 = vector.load %arg13[%c128_161, %c512_162] : memref<224x1280xf32, #tpu.memory_space<vmem>>, vector<8x256xf32>
    %219 = arith.addf %217, %218 : vector<8x256xf32>
    %c136_163 = arith.constant 136 : index
    %c768_164 = arith.constant 768 : index
    %220 = vector.load %arg13[%c136_163, %c768_164] : memref<224x1280xf32, #tpu.memory_space<vmem>>, vector<8x256xf32>
    %221 = arith.addf %219, %220 : vector<8x256xf32>
    %c144 = arith.constant 144 : index
    %c1024_165 = arith.constant 1024 : index
    %222 = vector.load %arg13[%c144, %c1024_165] : memref<224x1280xf32, #tpu.memory_space<vmem>>, vector<8x256xf32>
    %223 = arith.addf %221, %222 : vector<8x256xf32>
    %cst_166 = arith.constant 0.000000e+00 : f32
    %224 = vector.broadcast %cst_166 : f32 to vector<8x256xf32>
    %225 = arith.maximumf %223, %224 : vector<8x256xf32>
    %c120_167 = arith.constant 120 : index
    %c0_168 = arith.constant 0 : index
    %226 = vector.load %arg13[%c120_167, %c0_168] : memref<224x1280xf32, #tpu.memory_space<vmem>>, vector<8x256xf32>
    %227 = arith.addf %7, %226 : vector<8x256xf32>
    %c128_169 = arith.constant 128 : index
    %c256_170 = arith.constant 256 : index
    %228 = vector.load %arg13[%c128_169, %c256_170] : memref<224x1280xf32, #tpu.memory_space<vmem>>, vector<8x256xf32>
    %229 = arith.addf %227, %228 : vector<8x256xf32>
    %c136_171 = arith.constant 136 : index
    %c512_172 = arith.constant 512 : index
    %230 = vector.load %arg13[%c136_171, %c512_172] : memref<224x1280xf32, #tpu.memory_space<vmem>>, vector<8x256xf32>
    %231 = arith.addf %229, %230 : vector<8x256xf32>
    %c144_173 = arith.constant 144 : index
    %c768_174 = arith.constant 768 : index
    %232 = vector.load %arg13[%c144_173, %c768_174] : memref<224x1280xf32, #tpu.memory_space<vmem>>, vector<8x256xf32>
    %233 = arith.addf %231, %232 : vector<8x256xf32>
    %c152 = arith.constant 152 : index
    %c1024_175 = arith.constant 1024 : index
    %234 = vector.load %arg13[%c152, %c1024_175] : memref<224x1280xf32, #tpu.memory_space<vmem>>, vector<8x256xf32>
    %235 = arith.addf %233, %234 : vector<8x256xf32>
    %cst_176 = arith.constant 0.000000e+00 : f32
    %236 = vector.broadcast %cst_176 : f32 to vector<8x256xf32>
    %237 = arith.maximumf %235, %236 : vector<8x256xf32>
    %238 = arith.maximumf %225, %237 : vector<8x256xf32>
    %239 = vector.extract_strided_slice %238 {offsets = [0, 0], sizes = [8, 128], strides = [1, 1]} : vector<8x256xf32> to vector<8x128xf32>
    %240 = vector.extract_strided_slice %238 {offsets = [0, 128], sizes = [8, 128], strides = [1, 1]} : vector<8x256xf32> to vector<8x128xf32>
    %241 = arith.maximumf %239, %240 : vector<8x128xf32>
    %c56_177 = arith.constant 56 : index
    %c0_178 = arith.constant 0 : index
    %242 = vector.load %arg14[%c56_177, %c0_178] : memref<96x128xf32, #tpu.memory_space<vmem>>, vector<8x128xf32>
    tpu.vector_store %arg14[%c56_177, %c0_178], %241 {strides = array<i32>} : memref<96x128xf32, #tpu.memory_space<vmem>>, vector<8x128xf32>,
    %c128_179 = arith.constant 128 : index
    %c0_180 = arith.constant 0 : index
    %243 = vector.load %arg13[%c128_179, %c0_180] : memref<224x1280xf32, #tpu.memory_space<vmem>>, vector<8x256xf32>
    %244 = arith.addf %7, %243 : vector<8x256xf32>
    %c136_181 = arith.constant 136 : index
    %c256_182 = arith.constant 256 : index
    %245 = vector.load %arg13[%c136_181, %c256_182] : memref<224x1280xf32, #tpu.memory_space<vmem>>, vector<8x256xf32>
    %246 = arith.addf %244, %245 : vector<8x256xf32>
    %c144_183 = arith.constant 144 : index
    %c512_184 = arith.constant 512 : index
    %247 = vector.load %arg13[%c144_183, %c512_184] : memref<224x1280xf32, #tpu.memory_space<vmem>>, vector<8x256xf32>
    %248 = arith.addf %246, %247 : vector<8x256xf32>
    %c152_185 = arith.constant 152 : index
    %c768_186 = arith.constant 768 : index
    %249 = vector.load %arg13[%c152_185, %c768_186] : memref<224x1280xf32, #tpu.memory_space<vmem>>, vector<8x256xf32>
    %250 = arith.addf %248, %249 : vector<8x256xf32>
    %c160 = arith.constant 160 : index
    %c1024_187 = arith.constant 1024 : index
    %251 = vector.load %arg13[%c160, %c1024_187] : memref<224x1280xf32, #tpu.memory_space<vmem>>, vector<8x256xf32>
    %252 = arith.addf %250, %251 : vector<8x256xf32>
    %cst_188 = arith.constant 0.000000e+00 : f32
    %253 = vector.broadcast %cst_188 : f32 to vector<8x256xf32>
    %254 = arith.maximumf %252, %253 : vector<8x256xf32>
    %c136_189 = arith.constant 136 : index
    %c0_190 = arith.constant 0 : index
    %255 = vector.load %arg13[%c136_189, %c0_190] : memref<224x1280xf32, #tpu.memory_space<vmem>>, vector<8x256xf32>
    %256 = arith.addf %7, %255 : vector<8x256xf32>
    %c144_191 = arith.constant 144 : index
    %c256_192 = arith.constant 256 : index
    %257 = vector.load %arg13[%c144_191, %c256_192] : memref<224x1280xf32, #tpu.memory_space<vmem>>, vector<8x256xf32>
    %258 = arith.addf %256, %257 : vector<8x256xf32>
    %c152_193 = arith.constant 152 : index
    %c512_194 = arith.constant 512 : index
    %259 = vector.load %arg13[%c152_193, %c512_194] : memref<224x1280xf32, #tpu.memory_space<vmem>>, vector<8x256xf32>
    %260 = arith.addf %258, %259 : vector<8x256xf32>
    %c160_195 = arith.constant 160 : index
    %c768_196 = arith.constant 768 : index
    %261 = vector.load %arg13[%c160_195, %c768_196] : memref<224x1280xf32, #tpu.memory_space<vmem>>, vector<8x256xf32>
    %262 = arith.addf %260, %261 : vector<8x256xf32>
    %c168 = arith.constant 168 : index
    %c1024_197 = arith.constant 1024 : index
    %263 = vector.load %arg13[%c168, %c1024_197] : memref<224x1280xf32, #tpu.memory_space<vmem>>, vector<8x256xf32>
    %264 = arith.addf %262, %263 : vector<8x256xf32>
    %cst_198 = arith.constant 0.000000e+00 : f32
    %265 = vector.broadcast %cst_198 : f32 to vector<8x256xf32>
    %266 = arith.maximumf %264, %265 : vector<8x256xf32>
    %267 = arith.maximumf %254, %266 : vector<8x256xf32>
    %268 = vector.extract_strided_slice %267 {offsets = [0, 0], sizes = [8, 128], strides = [1, 1]} : vector<8x256xf32> to vector<8x128xf32>
    %269 = vector.extract_strided_slice %267 {offsets = [0, 128], sizes = [8, 128], strides = [1, 1]} : vector<8x256xf32> to vector<8x128xf32>
    %270 = arith.maximumf %268, %269 : vector<8x128xf32>
    %c64_199 = arith.constant 64 : index
    %c0_200 = arith.constant 0 : index
    %271 = vector.load %arg14[%c64_199, %c0_200] : memref<96x128xf32, #tpu.memory_space<vmem>>, vector<8x128xf32>
    tpu.vector_store %arg14[%c64_199, %c0_200], %270 {strides = array<i32>} : memref<96x128xf32, #tpu.memory_space<vmem>>, vector<8x128xf32>,
    %c144_201 = arith.constant 144 : index
    %c0_202 = arith.constant 0 : index
    %272 = vector.load %arg13[%c144_201, %c0_202] : memref<224x1280xf32, #tpu.memory_space<vmem>>, vector<8x256xf32>
    %273 = arith.addf %7, %272 : vector<8x256xf32>
    %c152_203 = arith.constant 152 : index
    %c256_204 = arith.constant 256 : index
    %274 = vector.load %arg13[%c152_203, %c256_204] : memref<224x1280xf32, #tpu.memory_space<vmem>>, vector<8x256xf32>
    %275 = arith.addf %273, %274 : vector<8x256xf32>
    %c160_205 = arith.constant 160 : index
    %c512_206 = arith.constant 512 : index
    %276 = vector.load %arg13[%c160_205, %c512_206] : memref<224x1280xf32, #tpu.memory_space<vmem>>, vector<8x256xf32>
    %277 = arith.addf %275, %276 : vector<8x256xf32>
    %c168_207 = arith.constant 168 : index
    %c768_208 = arith.constant 768 : index
    %278 = vector.load %arg13[%c168_207, %c768_208] : memref<224x1280xf32, #tpu.memory_space<vmem>>, vector<8x256xf32>
    %279 = arith.addf %277, %278 : vector<8x256xf32>
    %c176 = arith.constant 176 : index
    %c1024_209 = arith.constant 1024 : index
    %280 = vector.load %arg13[%c176, %c1024_209] : memref<224x1280xf32, #tpu.memory_space<vmem>>, vector<8x256xf32>
    %281 = arith.addf %279, %280 : vector<8x256xf32>
    %cst_210 = arith.constant 0.000000e+00 : f32
    %282 = vector.broadcast %cst_210 : f32 to vector<8x256xf32>
    %283 = arith.maximumf %281, %282 : vector<8x256xf32>
    %c152_211 = arith.constant 152 : index
    %c0_212 = arith.constant 0 : index
    %284 = vector.load %arg13[%c152_211, %c0_212] : memref<224x1280xf32, #tpu.memory_space<vmem>>, vector<8x256xf32>
    %285 = arith.addf %7, %284 : vector<8x256xf32>
    %c160_213 = arith.constant 160 : index
    %c256_214 = arith.constant 256 : index
    %286 = vector.load %arg13[%c160_213, %c256_214] : memref<224x1280xf32, #tpu.memory_space<vmem>>, vector<8x256xf32>
    %287 = arith.addf %285, %286 : vector<8x256xf32>
    %c168_215 = arith.constant 168 : index
    %c512_216 = arith.constant 512 : index
    %288 = vector.load %arg13[%c168_215, %c512_216] : memref<224x1280xf32, #tpu.memory_space<vmem>>, vector<8x256xf32>
    %289 = arith.addf %287, %288 : vector<8x256xf32>
    %c176_217 = arith.constant 176 : index
    %c768_218 = arith.constant 768 : index
    %290 = vector.load %arg13[%c176_217, %c768_218] : memref<224x1280xf32, #tpu.memory_space<vmem>>, vector<8x256xf32>
    %291 = arith.addf %289, %290 : vector<8x256xf32>
    %c184 = arith.constant 184 : index
    %c1024_219 = arith.constant 1024 : index
    %292 = vector.load %arg13[%c184, %c1024_219] : memref<224x1280xf32, #tpu.memory_space<vmem>>, vector<8x256xf32>
    %293 = arith.addf %291, %292 : vector<8x256xf32>
    %cst_220 = arith.constant 0.000000e+00 : f32
    %294 = vector.broadcast %cst_220 : f32 to vector<8x256xf32>
    %295 = arith.maximumf %293, %294 : vector<8x256xf32>
    %296 = arith.maximumf %283, %295 : vector<8x256xf32>
    %297 = vector.extract_strided_slice %296 {offsets = [0, 0], sizes = [8, 128], strides = [1, 1]} : vector<8x256xf32> to vector<8x128xf32>
    %298 = vector.extract_strided_slice %296 {offsets = [0, 128], sizes = [8, 128], strides = [1, 1]} : vector<8x256xf32> to vector<8x128xf32>
    %299 = arith.maximumf %297, %298 : vector<8x128xf32>
    %c72_221 = arith.constant 72 : index
    %c0_222 = arith.constant 0 : index
    %300 = vector.load %arg14[%c72_221, %c0_222] : memref<96x128xf32, #tpu.memory_space<vmem>>, vector<8x128xf32>
    tpu.vector_store %arg14[%c72_221, %c0_222], %299 {strides = array<i32>} : memref<96x128xf32, #tpu.memory_space<vmem>>, vector<8x128xf32>,
    %c160_223 = arith.constant 160 : index
    %c0_224 = arith.constant 0 : index
    %301 = vector.load %arg13[%c160_223, %c0_224] : memref<224x1280xf32, #tpu.memory_space<vmem>>, vector<8x256xf32>
    %302 = arith.addf %7, %301 : vector<8x256xf32>
    %c168_225 = arith.constant 168 : index
    %c256_226 = arith.constant 256 : index
    %303 = vector.load %arg13[%c168_225, %c256_226] : memref<224x1280xf32, #tpu.memory_space<vmem>>, vector<8x256xf32>
    %304 = arith.addf %302, %303 : vector<8x256xf32>
    %c176_227 = arith.constant 176 : index
    %c512_228 = arith.constant 512 : index
    %305 = vector.load %arg13[%c176_227, %c512_228] : memref<224x1280xf32, #tpu.memory_space<vmem>>, vector<8x256xf32>
    %306 = arith.addf %304, %305 : vector<8x256xf32>
    %c184_229 = arith.constant 184 : index
    %c768_230 = arith.constant 768 : index
    %307 = vector.load %arg13[%c184_229, %c768_230] : memref<224x1280xf32, #tpu.memory_space<vmem>>, vector<8x256xf32>
    %308 = arith.addf %306, %307 : vector<8x256xf32>
    %c192 = arith.constant 192 : index
    %c1024_231 = arith.constant 1024 : index
    %309 = vector.load %arg13[%c192, %c1024_231] : memref<224x1280xf32, #tpu.memory_space<vmem>>, vector<8x256xf32>
    %310 = arith.addf %308, %309 : vector<8x256xf32>
    %cst_232 = arith.constant 0.000000e+00 : f32
    %311 = vector.broadcast %cst_232 : f32 to vector<8x256xf32>
    %312 = arith.maximumf %310, %311 : vector<8x256xf32>
    %c168_233 = arith.constant 168 : index
    %c0_234 = arith.constant 0 : index
    %313 = vector.load %arg13[%c168_233, %c0_234] : memref<224x1280xf32, #tpu.memory_space<vmem>>, vector<8x256xf32>
    %314 = arith.addf %7, %313 : vector<8x256xf32>
    %c176_235 = arith.constant 176 : index
    %c256_236 = arith.constant 256 : index
    %315 = vector.load %arg13[%c176_235, %c256_236] : memref<224x1280xf32, #tpu.memory_space<vmem>>, vector<8x256xf32>
    %316 = arith.addf %314, %315 : vector<8x256xf32>
    %c184_237 = arith.constant 184 : index
    %c512_238 = arith.constant 512 : index
    %317 = vector.load %arg13[%c184_237, %c512_238] : memref<224x1280xf32, #tpu.memory_space<vmem>>, vector<8x256xf32>
    %318 = arith.addf %316, %317 : vector<8x256xf32>
    %c192_239 = arith.constant 192 : index
    %c768_240 = arith.constant 768 : index
    %319 = vector.load %arg13[%c192_239, %c768_240] : memref<224x1280xf32, #tpu.memory_space<vmem>>, vector<8x256xf32>
    %320 = arith.addf %318, %319 : vector<8x256xf32>
    %c200 = arith.constant 200 : index
    %c1024_241 = arith.constant 1024 : index
    %321 = vector.load %arg13[%c200, %c1024_241] : memref<224x1280xf32, #tpu.memory_space<vmem>>, vector<8x256xf32>
    %322 = arith.addf %320, %321 : vector<8x256xf32>
    %cst_242 = arith.constant 0.000000e+00 : f32
    %323 = vector.broadcast %cst_242 : f32 to vector<8x256xf32>
    %324 = arith.maximumf %322, %323 : vector<8x256xf32>
    %325 = arith.maximumf %312, %324 : vector<8x256xf32>
    %326 = vector.extract_strided_slice %325 {offsets = [0, 0], sizes = [8, 128], strides = [1, 1]} : vector<8x256xf32> to vector<8x128xf32>
    %327 = vector.extract_strided_slice %325 {offsets = [0, 128], sizes = [8, 128], strides = [1, 1]} : vector<8x256xf32> to vector<8x128xf32>
    %328 = arith.maximumf %326, %327 : vector<8x128xf32>
    %c80_243 = arith.constant 80 : index
    %c0_244 = arith.constant 0 : index
    %329 = vector.load %arg14[%c80_243, %c0_244] : memref<96x128xf32, #tpu.memory_space<vmem>>, vector<8x128xf32>
    tpu.vector_store %arg14[%c80_243, %c0_244], %328 {strides = array<i32>} : memref<96x128xf32, #tpu.memory_space<vmem>>, vector<8x128xf32>,
    %c176_245 = arith.constant 176 : index
    %c0_246 = arith.constant 0 : index
    %330 = vector.load %arg13[%c176_245, %c0_246] : memref<224x1280xf32, #tpu.memory_space<vmem>>, vector<8x256xf32>
    %331 = arith.addf %7, %330 : vector<8x256xf32>
    %c184_247 = arith.constant 184 : index
    %c256_248 = arith.constant 256 : index
    %332 = vector.load %arg13[%c184_247, %c256_248] : memref<224x1280xf32, #tpu.memory_space<vmem>>, vector<8x256xf32>
    %333 = arith.addf %331, %332 : vector<8x256xf32>
    %c192_249 = arith.constant 192 : index
    %c512_250 = arith.constant 512 : index
    %334 = vector.load %arg13[%c192_249, %c512_250] : memref<224x1280xf32, #tpu.memory_space<vmem>>, vector<8x256xf32>
    %335 = arith.addf %333, %334 : vector<8x256xf32>
    %c200_251 = arith.constant 200 : index
    %c768_252 = arith.constant 768 : index
    %336 = vector.load %arg13[%c200_251, %c768_252] : memref<224x1280xf32, #tpu.memory_space<vmem>>, vector<8x256xf32>
    %337 = arith.addf %335, %336 : vector<8x256xf32>
    %c208 = arith.constant 208 : index
    %c1024_253 = arith.constant 1024 : index
    %338 = vector.load %arg13[%c208, %c1024_253] : memref<224x1280xf32, #tpu.memory_space<vmem>>, vector<8x256xf32>
    %339 = arith.addf %337, %338 : vector<8x256xf32>
    %cst_254 = arith.constant 0.000000e+00 : f32
    %340 = vector.broadcast %cst_254 : f32 to vector<8x256xf32>
    %341 = arith.maximumf %339, %340 : vector<8x256xf32>
    %c184_255 = arith.constant 184 : index
    %c0_256 = arith.constant 0 : index
    %342 = vector.load %arg13[%c184_255, %c0_256] : memref<224x1280xf32, #tpu.memory_space<vmem>>, vector<8x256xf32>
    %343 = arith.addf %7, %342 : vector<8x256xf32>
    %c192_257 = arith.constant 192 : index
    %c256_258 = arith.constant 256 : index
    %344 = vector.load %arg13[%c192_257, %c256_258] : memref<224x1280xf32, #tpu.memory_space<vmem>>, vector<8x256xf32>
    %345 = arith.addf %343, %344 : vector<8x256xf32>
    %c200_259 = arith.constant 200 : index
    %c512_260 = arith.constant 512 : index
    %346 = vector.load %arg13[%c200_259, %c512_260] : memref<224x1280xf32, #tpu.memory_space<vmem>>, vector<8x256xf32>
    %347 = arith.addf %345, %346 : vector<8x256xf32>
    %c208_261 = arith.constant 208 : index
    %c768_262 = arith.constant 768 : index
    %348 = vector.load %arg13[%c208_261, %c768_262] : memref<224x1280xf32, #tpu.memory_space<vmem>>, vector<8x256xf32>
    %349 = arith.addf %347, %348 : vector<8x256xf32>
    %c216 = arith.constant 216 : index
    %c1024_263 = arith.constant 1024 : index
    %350 = vector.load %arg13[%c216, %c1024_263] : memref<224x1280xf32, #tpu.memory_space<vmem>>, vector<8x256xf32>
    %351 = arith.addf %349, %350 : vector<8x256xf32>
    %cst_264 = arith.constant 0.000000e+00 : f32
    %352 = vector.broadcast %cst_264 : f32 to vector<8x256xf32>
    %353 = arith.maximumf %351, %352 : vector<8x256xf32>
    %354 = arith.maximumf %341, %353 : vector<8x256xf32>
    %355 = vector.extract_strided_slice %354 {offsets = [0, 0], sizes = [8, 128], strides = [1, 1]} : vector<8x256xf32> to vector<8x128xf32>
    %356 = vector.extract_strided_slice %354 {offsets = [0, 128], sizes = [8, 128], strides = [1, 1]} : vector<8x256xf32> to vector<8x128xf32>
    %357 = arith.maximumf %355, %356 : vector<8x128xf32>
    %c88_265 = arith.constant 88 : index
    %c0_266 = arith.constant 0 : index
    %358 = vector.load %arg14[%c88_265, %c0_266] : memref<96x128xf32, #tpu.memory_space<vmem>>, vector<8x128xf32>
    tpu.vector_store %arg14[%c88_265, %c0_266], %357 {strides = array<i32>} : memref<96x128xf32, #tpu.memory_space<vmem>>, vector<8x128xf32>,
    %c0_267 = arith.constant 0 : index
    %c0_268 = arith.constant 0 : index
    %359 = vector.load %arg14[%c0_267, %c0_268] : memref<96x128xf32, #tpu.memory_space<vmem>>, vector<96x128xf32>
    %c0_269 = arith.constant 0 : index
    %c0_270 = arith.constant 0 : index
    %360 = vector.load %arg4[%c0_269, %c0_270] : memref<128x1280xf32, #tpu.memory_space<vmem>>, vector<128x1280xf32>
    %cst_271 = arith.constant dense<0.000000e+00> : vector<96x1280xf32>
    %361 = tpu.matmul %359, %360, %cst_271 {dimension_numbers = #tpu.dot_dimension_numbers<[1], [0], [0], [1], [0, 0, 1, 1], [], []>} : vector<96x128xf32>, vector<128x1280xf32>, vector<96x1280xf32> -> vector<96x1280xf32>
    %c0_272 = arith.constant 0 : index
    %c0_273 = arith.constant 0 : index
    %362 = vector.load %arg15[%c0_272, %c0_273] : memref<96x1280xf32, #tpu.memory_space<vmem>>, vector<96x1280xf32>
    tpu.vector_store %arg15[%c0_272, %c0_273], %361 {strides = array<i32>} : memref<96x1280xf32, #tpu.memory_space<vmem>>, vector<96x1280xf32>,
    %c0_274 = arith.constant 0 : index
    %c0_275 = arith.constant 0 : index
    %363 = vector.load %arg15[%c0_274, %c0_275] : memref<96x1280xf32, #tpu.memory_space<vmem>>, vector<8x256xf32>
    %364 = arith.addf %10, %363 : vector<8x256xf32>
    %c8_276 = arith.constant 8 : index
    %c256_277 = arith.constant 256 : index
    %365 = vector.load %arg15[%c8_276, %c256_277] : memref<96x1280xf32, #tpu.memory_space<vmem>>, vector<8x256xf32>
    %366 = arith.addf %364, %365 : vector<8x256xf32>
    %c16_278 = arith.constant 16 : index
    %c512_279 = arith.constant 512 : index
    %367 = vector.load %arg15[%c16_278, %c512_279] : memref<96x1280xf32, #tpu.memory_space<vmem>>, vector<8x256xf32>
    %368 = arith.addf %366, %367 : vector<8x256xf32>
    %c24_280 = arith.constant 24 : index
    %c768_281 = arith.constant 768 : index
    %369 = vector.load %arg15[%c24_280, %c768_281] : memref<96x1280xf32, #tpu.memory_space<vmem>>, vector<8x256xf32>
    %370 = arith.addf %368, %369 : vector<8x256xf32>
    %c32_282 = arith.constant 32 : index
    %c1024_283 = arith.constant 1024 : index
    %371 = vector.load %arg15[%c32_282, %c1024_283] : memref<96x1280xf32, #tpu.memory_space<vmem>>, vector<8x256xf32>
    %372 = arith.addf %370, %371 : vector<8x256xf32>
    %cst_284 = arith.constant 0.000000e+00 : f32
    %373 = vector.broadcast %cst_284 : f32 to vector<8x256xf32>
    %374 = arith.maximumf %372, %373 : vector<8x256xf32>
    %c8_285 = arith.constant 8 : index
    %c0_286 = arith.constant 0 : index
    %375 = vector.load %arg15[%c8_285, %c0_286] : memref<96x1280xf32, #tpu.memory_space<vmem>>, vector<8x256xf32>
    %376 = arith.addf %10, %375 : vector<8x256xf32>
    %c16_287 = arith.constant 16 : index
    %c256_288 = arith.constant 256 : index
    %377 = vector.load %arg15[%c16_287, %c256_288] : memref<96x1280xf32, #tpu.memory_space<vmem>>, vector<8x256xf32>
    %378 = arith.addf %376, %377 : vector<8x256xf32>
    %c24_289 = arith.constant 24 : index
    %c512_290 = arith.constant 512 : index
    %379 = vector.load %arg15[%c24_289, %c512_290] : memref<96x1280xf32, #tpu.memory_space<vmem>>, vector<8x256xf32>
    %380 = arith.addf %378, %379 : vector<8x256xf32>
    %c32_291 = arith.constant 32 : index
    %c768_292 = arith.constant 768 : index
    %381 = vector.load %arg15[%c32_291, %c768_292] : memref<96x1280xf32, #tpu.memory_space<vmem>>, vector<8x256xf32>
    %382 = arith.addf %380, %381 : vector<8x256xf32>
    %c40_293 = arith.constant 40 : index
    %c1024_294 = arith.constant 1024 : index
    %383 = vector.load %arg15[%c40_293, %c1024_294] : memref<96x1280xf32, #tpu.memory_space<vmem>>, vector<8x256xf32>
    %384 = arith.addf %382, %383 : vector<8x256xf32>
    %cst_295 = arith.constant 0.000000e+00 : f32
    %385 = vector.broadcast %cst_295 : f32 to vector<8x256xf32>
    %386 = arith.maximumf %384, %385 : vector<8x256xf32>
    %387 = arith.maximumf %374, %386 : vector<8x256xf32>
    %388 = vector.extract_strided_slice %387 {offsets = [0, 0], sizes = [8, 128], strides = [1, 1]} : vector<8x256xf32> to vector<8x128xf32>
    %389 = vector.extract_strided_slice %387 {offsets = [0, 128], sizes = [8, 128], strides = [1, 1]} : vector<8x256xf32> to vector<8x128xf32>
    %390 = arith.maximumf %388, %389 : vector<8x128xf32>
    %c0_296 = arith.constant 0 : index
    %c0_297 = arith.constant 0 : index
    %391 = vector.load %arg16[%c0_296, %c0_297] : memref<8x512xf32, #tpu.memory_space<vmem>>, vector<8x128xf32>
    tpu.vector_store %arg16[%c0_296, %c0_297], %390 {strides = array<i32>} : memref<8x512xf32, #tpu.memory_space<vmem>>, vector<8x128xf32>,
    %c16_298 = arith.constant 16 : index
    %c0_299 = arith.constant 0 : index
    %392 = vector.load %arg15[%c16_298, %c0_299] : memref<96x1280xf32, #tpu.memory_space<vmem>>, vector<8x256xf32>
    %393 = arith.addf %10, %392 : vector<8x256xf32>
    %c24_300 = arith.constant 24 : index
    %c256_301 = arith.constant 256 : index
    %394 = vector.load %arg15[%c24_300, %c256_301] : memref<96x1280xf32, #tpu.memory_space<vmem>>, vector<8x256xf32>
    %395 = arith.addf %393, %394 : vector<8x256xf32>
    %c32_302 = arith.constant 32 : index
    %c512_303 = arith.constant 512 : index
    %396 = vector.load %arg15[%c32_302, %c512_303] : memref<96x1280xf32, #tpu.memory_space<vmem>>, vector<8x256xf32>
    %397 = arith.addf %395, %396 : vector<8x256xf32>
    %c40_304 = arith.constant 40 : index
    %c768_305 = arith.constant 768 : index
    %398 = vector.load %arg15[%c40_304, %c768_305] : memref<96x1280xf32, #tpu.memory_space<vmem>>, vector<8x256xf32>
    %399 = arith.addf %397, %398 : vector<8x256xf32>
    %c48_306 = arith.constant 48 : index
    %c1024_307 = arith.constant 1024 : index
    %400 = vector.load %arg15[%c48_306, %c1024_307] : memref<96x1280xf32, #tpu.memory_space<vmem>>, vector<8x256xf32>
    %401 = arith.addf %399, %400 : vector<8x256xf32>
    %cst_308 = arith.constant 0.000000e+00 : f32
    %402 = vector.broadcast %cst_308 : f32 to vector<8x256xf32>
    %403 = arith.maximumf %401, %402 : vector<8x256xf32>
    %c24_309 = arith.constant 24 : index
    %c0_310 = arith.constant 0 : index
    %404 = vector.load %arg15[%c24_309, %c0_310] : memref<96x1280xf32, #tpu.memory_space<vmem>>, vector<8x256xf32>
    %405 = arith.addf %10, %404 : vector<8x256xf32>
    %c32_311 = arith.constant 32 : index
    %c256_312 = arith.constant 256 : index
    %406 = vector.load %arg15[%c32_311, %c256_312] : memref<96x1280xf32, #tpu.memory_space<vmem>>, vector<8x256xf32>
    %407 = arith.addf %405, %406 : vector<8x256xf32>
    %c40_313 = arith.constant 40 : index
    %c512_314 = arith.constant 512 : index
    %408 = vector.load %arg15[%c40_313, %c512_314] : memref<96x1280xf32, #tpu.memory_space<vmem>>, vector<8x256xf32>
    %409 = arith.addf %407, %408 : vector<8x256xf32>
    %c48_315 = arith.constant 48 : index
    %c768_316 = arith.constant 768 : index
    %410 = vector.load %arg15[%c48_315, %c768_316] : memref<96x1280xf32, #tpu.memory_space<vmem>>, vector<8x256xf32>
    %411 = arith.addf %409, %410 : vector<8x256xf32>
    %c56_317 = arith.constant 56 : index
    %c1024_318 = arith.constant 1024 : index
    %412 = vector.load %arg15[%c56_317, %c1024_318] : memref<96x1280xf32, #tpu.memory_space<vmem>>, vector<8x256xf32>
    %413 = arith.addf %411, %412 : vector<8x256xf32>
    %cst_319 = arith.constant 0.000000e+00 : f32
    %414 = vector.broadcast %cst_319 : f32 to vector<8x256xf32>
    %415 = arith.maximumf %413, %414 : vector<8x256xf32>
    %416 = arith.maximumf %403, %415 : vector<8x256xf32>
    %417 = vector.extract_strided_slice %416 {offsets = [0, 0], sizes = [8, 128], strides = [1, 1]} : vector<8x256xf32> to vector<8x128xf32>
    %418 = vector.extract_strided_slice %416 {offsets = [0, 128], sizes = [8, 128], strides = [1, 1]} : vector<8x256xf32> to vector<8x128xf32>
    %419 = arith.maximumf %417, %418 : vector<8x128xf32>
    %c0_320 = arith.constant 0 : index
    %c128_321 = arith.constant 128 : index
    %420 = vector.load %arg16[%c0_320, %c128_321] : memref<8x512xf32, #tpu.memory_space<vmem>>, vector<8x128xf32>
    tpu.vector_store %arg16[%c0_320, %c128_321], %419 {strides = array<i32>} : memref<8x512xf32, #tpu.memory_space<vmem>>, vector<8x128xf32>,
    %c32_322 = arith.constant 32 : index
    %c0_323 = arith.constant 0 : index
    %421 = vector.load %arg15[%c32_322, %c0_323] : memref<96x1280xf32, #tpu.memory_space<vmem>>, vector<8x256xf32>
    %422 = arith.addf %10, %421 : vector<8x256xf32>
    %c40_324 = arith.constant 40 : index
    %c256_325 = arith.constant 256 : index
    %423 = vector.load %arg15[%c40_324, %c256_325] : memref<96x1280xf32, #tpu.memory_space<vmem>>, vector<8x256xf32>
    %424 = arith.addf %422, %423 : vector<8x256xf32>
    %c48_326 = arith.constant 48 : index
    %c512_327 = arith.constant 512 : index
    %425 = vector.load %arg15[%c48_326, %c512_327] : memref<96x1280xf32, #tpu.memory_space<vmem>>, vector<8x256xf32>
    %426 = arith.addf %424, %425 : vector<8x256xf32>
    %c56_328 = arith.constant 56 : index
    %c768_329 = arith.constant 768 : index
    %427 = vector.load %arg15[%c56_328, %c768_329] : memref<96x1280xf32, #tpu.memory_space<vmem>>, vector<8x256xf32>
    %428 = arith.addf %426, %427 : vector<8x256xf32>
    %c64_330 = arith.constant 64 : index
    %c1024_331 = arith.constant 1024 : index
    %429 = vector.load %arg15[%c64_330, %c1024_331] : memref<96x1280xf32, #tpu.memory_space<vmem>>, vector<8x256xf32>
    %430 = arith.addf %428, %429 : vector<8x256xf32>
    %cst_332 = arith.constant 0.000000e+00 : f32
    %431 = vector.broadcast %cst_332 : f32 to vector<8x256xf32>
    %432 = arith.maximumf %430, %431 : vector<8x256xf32>
    %c40_333 = arith.constant 40 : index
    %c0_334 = arith.constant 0 : index
    %433 = vector.load %arg15[%c40_333, %c0_334] : memref<96x1280xf32, #tpu.memory_space<vmem>>, vector<8x256xf32>
    %434 = arith.addf %10, %433 : vector<8x256xf32>
    %c48_335 = arith.constant 48 : index
    %c256_336 = arith.constant 256 : index
    %435 = vector.load %arg15[%c48_335, %c256_336] : memref<96x1280xf32, #tpu.memory_space<vmem>>, vector<8x256xf32>
    %436 = arith.addf %434, %435 : vector<8x256xf32>
    %c56_337 = arith.constant 56 : index
    %c512_338 = arith.constant 512 : index
    %437 = vector.load %arg15[%c56_337, %c512_338] : memref<96x1280xf32, #tpu.memory_space<vmem>>, vector<8x256xf32>
    %438 = arith.addf %436, %437 : vector<8x256xf32>
    %c64_339 = arith.constant 64 : index
    %c768_340 = arith.constant 768 : index
    %439 = vector.load %arg15[%c64_339, %c768_340] : memref<96x1280xf32, #tpu.memory_space<vmem>>, vector<8x256xf32>
    %440 = arith.addf %438, %439 : vector<8x256xf32>
    %c72_341 = arith.constant 72 : index
    %c1024_342 = arith.constant 1024 : index
    %441 = vector.load %arg15[%c72_341, %c1024_342] : memref<96x1280xf32, #tpu.memory_space<vmem>>, vector<8x256xf32>
    %442 = arith.addf %440, %441 : vector<8x256xf32>
    %cst_343 = arith.constant 0.000000e+00 : f32
    %443 = vector.broadcast %cst_343 : f32 to vector<8x256xf32>
    %444 = arith.maximumf %442, %443 : vector<8x256xf32>
    %445 = arith.maximumf %432, %444 : vector<8x256xf32>
    %446 = vector.extract_strided_slice %445 {offsets = [0, 0], sizes = [8, 128], strides = [1, 1]} : vector<8x256xf32> to vector<8x128xf32>
    %447 = vector.extract_strided_slice %445 {offsets = [0, 128], sizes = [8, 128], strides = [1, 1]} : vector<8x256xf32> to vector<8x128xf32>
    %448 = arith.maximumf %446, %447 : vector<8x128xf32>
    %c0_344 = arith.constant 0 : index
    %c256_345 = arith.constant 256 : index
    %449 = vector.load %arg16[%c0_344, %c256_345] : memref<8x512xf32, #tpu.memory_space<vmem>>, vector<8x128xf32>
    tpu.vector_store %arg16[%c0_344, %c256_345], %448 {strides = array<i32>} : memref<8x512xf32, #tpu.memory_space<vmem>>, vector<8x128xf32>,
    %c48_346 = arith.constant 48 : index
    %c0_347 = arith.constant 0 : index
    %450 = vector.load %arg15[%c48_346, %c0_347] : memref<96x1280xf32, #tpu.memory_space<vmem>>, vector<8x256xf32>
    %451 = arith.addf %10, %450 : vector<8x256xf32>
    %c56_348 = arith.constant 56 : index
    %c256_349 = arith.constant 256 : index
    %452 = vector.load %arg15[%c56_348, %c256_349] : memref<96x1280xf32, #tpu.memory_space<vmem>>, vector<8x256xf32>
    %453 = arith.addf %451, %452 : vector<8x256xf32>
    %c64_350 = arith.constant 64 : index
    %c512_351 = arith.constant 512 : index
    %454 = vector.load %arg15[%c64_350, %c512_351] : memref<96x1280xf32, #tpu.memory_space<vmem>>, vector<8x256xf32>
    %455 = arith.addf %453, %454 : vector<8x256xf32>
    %c72_352 = arith.constant 72 : index
    %c768_353 = arith.constant 768 : index
    %456 = vector.load %arg15[%c72_352, %c768_353] : memref<96x1280xf32, #tpu.memory_space<vmem>>, vector<8x256xf32>
    %457 = arith.addf %455, %456 : vector<8x256xf32>
    %c80_354 = arith.constant 80 : index
    %c1024_355 = arith.constant 1024 : index
    %458 = vector.load %arg15[%c80_354, %c1024_355] : memref<96x1280xf32, #tpu.memory_space<vmem>>, vector<8x256xf32>
    %459 = arith.addf %457, %458 : vector<8x256xf32>
    %cst_356 = arith.constant 0.000000e+00 : f32
    %460 = vector.broadcast %cst_356 : f32 to vector<8x256xf32>
    %461 = arith.maximumf %459, %460 : vector<8x256xf32>
    %c56_357 = arith.constant 56 : index
    %c0_358 = arith.constant 0 : index
    %462 = vector.load %arg15[%c56_357, %c0_358] : memref<96x1280xf32, #tpu.memory_space<vmem>>, vector<8x256xf32>
    %463 = arith.addf %10, %462 : vector<8x256xf32>
    %c64_359 = arith.constant 64 : index
    %c256_360 = arith.constant 256 : index
    %464 = vector.load %arg15[%c64_359, %c256_360] : memref<96x1280xf32, #tpu.memory_space<vmem>>, vector<8x256xf32>
    %465 = arith.addf %463, %464 : vector<8x256xf32>
    %c72_361 = arith.constant 72 : index
    %c512_362 = arith.constant 512 : index
    %466 = vector.load %arg15[%c72_361, %c512_362] : memref<96x1280xf32, #tpu.memory_space<vmem>>, vector<8x256xf32>
    %467 = arith.addf %465, %466 : vector<8x256xf32>
    %c80_363 = arith.constant 80 : index
    %c768_364 = arith.constant 768 : index
    %468 = vector.load %arg15[%c80_363, %c768_364] : memref<96x1280xf32, #tpu.memory_space<vmem>>, vector<8x256xf32>
    %469 = arith.addf %467, %468 : vector<8x256xf32>
    %c88_365 = arith.constant 88 : index
    %c1024_366 = arith.constant 1024 : index
    %470 = vector.load %arg15[%c88_365, %c1024_366] : memref<96x1280xf32, #tpu.memory_space<vmem>>, vector<8x256xf32>
    %471 = arith.addf %469, %470 : vector<8x256xf32>
    %cst_367 = arith.constant 0.000000e+00 : f32
    %472 = vector.broadcast %cst_367 : f32 to vector<8x256xf32>
    %473 = arith.maximumf %471, %472 : vector<8x256xf32>
    %474 = arith.maximumf %461, %473 : vector<8x256xf32>
    %475 = vector.extract_strided_slice %474 {offsets = [0, 0], sizes = [8, 128], strides = [1, 1]} : vector<8x256xf32> to vector<8x128xf32>
    %476 = vector.extract_strided_slice %474 {offsets = [0, 128], sizes = [8, 128], strides = [1, 1]} : vector<8x256xf32> to vector<8x128xf32>
    %477 = arith.maximumf %475, %476 : vector<8x128xf32>
    %c0_368 = arith.constant 0 : index
    %c384 = arith.constant 384 : index
    %478 = vector.load %arg16[%c0_368, %c384] : memref<8x512xf32, #tpu.memory_space<vmem>>, vector<8x128xf32>
    tpu.vector_store %arg16[%c0_368, %c384], %477 {strides = array<i32>} : memref<8x512xf32, #tpu.memory_space<vmem>>, vector<8x128xf32>,
    %c0_369 = arith.constant 0 : index
    %c0_370 = arith.constant 0 : index
    %479 = vector.load %arg16[%c0_369, %c0_370] : memref<8x512xf32, #tpu.memory_space<vmem>>, vector<8x512xf32>
    %c0_371 = arith.constant 0 : index
    %c0_372 = arith.constant 0 : index
    %480 = vector.load %arg6[%c0_371, %c0_372] : memref<512x128xf32, #tpu.memory_space<vmem>>, vector<512x128xf32>
    %cst_373 = arith.constant dense<0.000000e+00> : vector<8x128xf32>
    %481 = tpu.matmul %479, %480, %cst_373 {dimension_numbers = #tpu.dot_dimension_numbers<[1], [0], [0], [1], [0, 0, 1, 1], [], []>} : vector<8x512xf32>, vector<512x128xf32>, vector<8x128xf32> -> vector<8x128xf32>
    %c0_374 = arith.constant 0 : index
    %c0_375 = arith.constant 0 : index
    %482 = vector.load %arg7[%c0_374, %c0_375] : memref<1x128xf32, #tpu.memory_space<vmem>>, vector<1x128xf32>
    %483 = vector.broadcast %482 : vector<1x128xf32> to vector<8x128xf32>
    %484 = arith.addf %481, %483 : vector<8x128xf32>
    %cst_376 = arith.constant 0.000000e+00 : f32
    %485 = vector.broadcast %cst_376 : f32 to vector<8x128xf32>
    %486 = arith.maximumf %484, %485 : vector<8x128xf32>
    %c0_377 = arith.constant 0 : index
    %c0_378 = arith.constant 0 : index
    %487 = vector.load %arg8[%c0_377, %c0_378] : memref<128x128xf32, #tpu.memory_space<vmem>>, vector<128x128xf32>
    %cst_379 = arith.constant dense<0.000000e+00> : vector<8x128xf32>
    %488 = tpu.matmul %486, %487, %cst_379 {dimension_numbers = #tpu.dot_dimension_numbers<[1], [0], [0], [1], [0, 0, 1, 1], [], []>} : vector<8x128xf32>, vector<128x128xf32>, vector<8x128xf32> -> vector<8x128xf32>
    %c0_380 = arith.constant 0 : index
    %c0_381 = arith.constant 0 : index
    %489 = vector.load %arg9[%c0_380, %c0_381] : memref<1x128xf32, #tpu.memory_space<vmem>>, vector<1x128xf32>
    %490 = vector.broadcast %489 : vector<1x128xf32> to vector<8x128xf32>
    %491 = arith.addf %488, %490 : vector<8x128xf32>
    %cst_382 = arith.constant 0.000000e+00 : f32
    %492 = vector.broadcast %cst_382 : f32 to vector<8x128xf32>
    %493 = arith.maximumf %491, %492 : vector<8x128xf32>
    %c0_383 = arith.constant 0 : index
    %c0_384 = arith.constant 0 : index
    %494 = vector.load %arg10[%c0_383, %c0_384] : memref<128x128xf32, #tpu.memory_space<vmem>>, vector<128x128xf32>
    %cst_385 = arith.constant dense<0.000000e+00> : vector<8x128xf32>
    %495 = tpu.matmul %493, %494, %cst_385 {dimension_numbers = #tpu.dot_dimension_numbers<[1], [0], [0], [1], [0, 0, 1, 1], [], []>} : vector<8x128xf32>, vector<128x128xf32>, vector<8x128xf32> -> vector<8x128xf32>
    %c0_386 = arith.constant 0 : index
    %c0_387 = arith.constant 0 : index
    %496 = vector.load %arg11[%c0_386, %c0_387] : memref<1x128xf32, #tpu.memory_space<vmem>>, vector<1x128xf32>
    %497 = vector.broadcast %496 : vector<1x128xf32> to vector<8x128xf32>
    %498 = arith.addf %495, %497 : vector<8x128xf32>
    %c0_388 = arith.constant 0 : index
    %c0_389 = arith.constant 0 : index
    %499 = vector.load %arg12[%c0_388, %c0_389] : memref<8x128xf32, #tpu.memory_space<vmem>>, vector<8x128xf32>
    tpu.vector_store %arg12[%c0_388, %c0_389], %498 {strides = array<i32>} : memref<8x128xf32, #tpu.memory_space<vmem>>, vector<8x128xf32>,
    return
  }
  func.func @transform_0(%arg0: i32) -> (i32, i32, i32) {
    %c0_i32 = arith.constant 0 : i32
    %c0_i32_0 = arith.constant 0 : i32
    %c0_i32_1 = arith.constant 0 : i32
    return %arg0, %c0_i32, %c0_i32_0 : i32, i32, i32
  }
  func.func @transform_1(%arg0: i32) -> (i32, i32) {
    %c0_i32 = arith.constant 0 : i32
    %c0_i32_0 = arith.constant 0 : i32
    %c0_i32_1 = arith.constant 0 : i32
    return %c0_i32, %c0_i32_0 : i32, i32
  }
  func.func @transform_2(%arg0: i32) -> (i32, i32) {
    %c0_i32 = arith.constant 0 : i32
    %c0_i32_0 = arith.constant 0 : i32
    %c0_i32_1 = arith.constant 0 : i32
    return %c0_i32, %c0_i32_0 : i32, i32
  }
  func.func @transform_3(%arg0: i32) -> (i32, i32) {
    %c0_i32 = arith.constant 0 : i32
    %c0_i32_0 = arith.constant 0 : i32
    %c0_i32_1 = arith.constant 0 : i32
    return %c0_i32, %c0_i32_0 : i32, i32
  }
  func.func @transform_4(%arg0: i32) -> (i32, i32) {
    %c0_i32 = arith.constant 0 : i32
    %c0_i32_0 = arith.constant 0 : i32
    %c0_i32_1 = arith.constant 0 : i32
    return %c0_i32, %c0_i32_0 : i32, i32
  }
  func.func @transform_5(%arg0: i32) -> (i32, i32) {
    %c0_i32 = arith.constant 0 : i32
    %c0_i32_0 = arith.constant 0 : i32
    %c0_i32_1 = arith.constant 0 : i32
    return %c0_i32, %c0_i32_0 : i32, i32
  }
  func.func @transform_6(%arg0: i32) -> (i32, i32) {
    %c0_i32 = arith.constant 0 : i32
    %c0_i32_0 = arith.constant 0 : i32
    %c0_i32_1 = arith.constant 0 : i32
    return %c0_i32, %c0_i32_0 : i32, i32
  }
  func.func @transform_7(%arg0: i32) -> (i32, i32) {
    %c0_i32 = arith.constant 0 : i32
    %c0_i32_0 = arith.constant 0 : i32
    %c0_i32_1 = arith.constant 0 : i32
    return %c0_i32, %c0_i32_0 : i32, i32
  }
  func.func @transform_8(%arg0: i32) -> (i32, i32) {
    %c0_i32 = arith.constant 0 : i32
    %c0_i32_0 = arith.constant 0 : i32
    %c0_i32_1 = arith.constant 0 : i32
    return %c0_i32, %c0_i32_0 : i32, i32
  }
  func.func @transform_9(%arg0: i32) -> (i32, i32) {
    %c0_i32 = arith.constant 0 : i32
    %c0_i32_0 = arith.constant 0 : i32
    %c0_i32_1 = arith.constant 0 : i32
    return %c0_i32, %c0_i32_0 : i32, i32
  }
  func.func @transform_10(%arg0: i32) -> (i32, i32) {
    %c0_i32 = arith.constant 0 : i32
    %c0_i32_0 = arith.constant 0 : i32
    %c0_i32_1 = arith.constant 0 : i32
    return %c0_i32, %c0_i32_0 : i32, i32
  }
  func.func @transform_11(%arg0: i32) -> (i32, i32) {
    %c0_i32 = arith.constant 0 : i32
    %c0_i32_0 = arith.constant 0 : i32
    return %arg0, %c0_i32 : i32, i32
  }
}

</mosaic_0001>

<bundles_post_ra>
// kernel: net_forward.1
= control target key start
LH: loop header
LB: loop body
LE: loop exit
PB: predicated region body
PF: predicated region fallthrough
CT: control target
= control target key end

     0   :  { %16 = vsyncpa [#allocation7], 0  ;;  %s6230_s0 = inlined_call_operand.vmem [shape: f32[1,224,28], index: 0, kind: input, shape index: {}]   ;;  %s6231_s1 = inlined_call_operand.vmem [shape: f32[28,1280], index: 1, kind: input, shape index: {}]   ;;  %s6232_s2 = inlined_call_operand.vmem [shape: f32[1,256], index: 2, kind: input, shape index: {}]   ;;  %s6233_s3 = inlined_call_operand.hbm [shape: f32[128,1280], index: 3, kind: input, shape index: {}]   ;;  %s6234_s4 = inlined_call_operand.vmem [shape: f32[1,256], index: 4, kind: input, shape index: {}]   ;;  %s6235_s5 = inlined_call_operand.hbm [shape: f32[512,128], index: 5, kind: input, shape index: {}]   ;;  %s6236_s6 = inlined_call_operand.vmem [shape: f32[1,128], index: 6, kind: input, shape index: {}]   ;;  %s6237_s7 = inlined_call_operand.hbm [shape: f32[128,128], index: 7, kind: input, shape index: {}]   ;;  %s6238_s8 = inlined_call_operand.vmem [shape: f32[1,128], index: 8, kind: input, shape index: {}]   ;;  %s6239_s9 = inlined_call_operand.hbm [shape: f32[128,128], index: 9, kind: input, shape index: {}]   ;;  %s6240_s10 = inlined_call_operand.vmem [shape: f32[1,128], index: 10, kind: input, shape index: {}]   ;;  %s6241_s11 = inlined_call_operand.vmem [shape: f32[8,128], index: 11, kind: output, shape index: {}]  }
   0x1   :  { %17 = vsyncpa [#allocation9], 0 }
   0x2   :  { %18 = vsyncpa [#allocation12], 0  ;;  %s4977_s17 = smov [#allocation8]   ;;  %s4883_s21 = scalar_lea.hbm %s6235_s5, 8192 }
   0x3   :  { %s44_s18 = sshll.u32 %s4977_s17, 4  ;;  %p4884_p0 = scmp.ne.s32.totalorder %s6235_s5, %s4883_s21  ;;  %s45_s18 = int_to_ptr.vmem [resolvable:$true] %s44_s18 }
   0x4   :  { %p4887_p1 = scmp.lt.u32.totalorder %s4883_s21, %s6235_s5 }
   0x6   :  { %p4889_p2 = pnand %p4887_p1, %p4884_p0 }
   0x8   :  { %4892 = shalt.err (!%p4889_p2)
}
   0x9   :  { %s4893_s26 = scalar_lea.vmem %s45_s18, 8192  ;;  %p4898_p4 = scmp.lt.s32.totalorder %s45_s18, %s45_s18 }
   0xa   :  { %p4894_p3 = scmp.ne.s32.totalorder %s45_s18, %s4893_s26  ;;  %p4899_p5 = scmp.lt.s32.totalorder %s4893_s26, %s4893_s26 }
   0xc   :  { %p4900_p6 = por %p4899_p5, %p4898_p4 }
   0xe   :  { %p4901_p7 = pnand %p4900_p6, %p4894_p3 }
  0x10   :  { %4904 = shalt.err (!%p4901_p7)
}
  0x11   :  { %s4978_s27 = smov 128   ;;  %s4979_s28 = smov 8  }
  0x12   :  { %50 = dma.hbm_to_vmem [thread:$0]  %s6235_s5, 8192, %s45_s18, [#allocation9], %s4978_s27, %s4978_s27, %s4979_s28  }
  0x13   :  { %s4980_s12 = smov [#allocation6]   ;;  %s4905_s16 = scalar_lea.hbm %s6233_s3, 20480 }
  0x14   :  { %s30_s13 = sshll.u32 %s4980_s12, 4  ;;  %p4906_p8 = scmp.ne.s32.totalorder %s6233_s3, %s4905_s16  ;;  %s31_s13 = int_to_ptr.vmem [resolvable:$true] %s30_s13 }
  0x15   :  { %p4909_p9 = scmp.lt.u32.totalorder %s4905_s16, %s6233_s3 }
  0x17   :  { %p4911_p10 = pnand %p4909_p9, %p4906_p8 }
  0x19   :  { %4914 = shalt.err (!%p4911_p10)
}
  0x1a   :  { %s4915_s22 = scalar_lea.vmem %s31_s13, 20480  ;;  %p4920_p12 = scmp.lt.s32.totalorder %s31_s13, %s31_s13 }
  0x1b   :  { %p4916_p11 = scmp.ne.s32.totalorder %s31_s13, %s4915_s22  ;;  %p4921_p13 = scmp.lt.s32.totalorder %s4915_s22, %s4915_s22 }
  0x1d   :  { %p4922_p0 = por %p4921_p13, %p4920_p12 }
  0x1f   :  { %p4923_p1 = pnand %p4922_p0, %p4916_p11 }
  0x21   :  { %4926 = shalt.err (!%p4923_p1)
}
  0x22   :  { %s4981_s5 = smov 1280   ;;  %s4982_s18 = smov 80  }
  0x23   :  { %36 = dma.hbm_to_vmem [thread:$0]  %s6233_s3, 20480, %s31_s13, [#allocation7], %s4981_s5, %s4981_s5, %s4982_s18  }
  0x24   :  { %s4983_s25 = smov [#allocation10]   ;;  %s4984_s29 = smov [#allocation11]  }
  0x25   :  { %s58_s26 = sshll.u32 %s4983_s25, 4  ;;  %s72_s30 = sshll.u32 %s4984_s29, 4  ;;  %s59_s26 = int_to_ptr.vmem [resolvable:$true] %s58_s26  ;;  %s5076_s30 = int_to_ptr.vmem [resolvable:$true] %s72_s30 }
  0x26   :  { %s4927_s15 = scalar_lea.hbm %s6237_s7, 2048 }
  0x27   :  { %p4928_p2 = scmp.ne.s32.totalorder %s6237_s7, %s4927_s15  ;;  %p4931_p3 = scmp.lt.u32.totalorder %s4927_s15, %s6237_s7 }
  0x29   :  { %p4933_p4 = pnand %p4931_p3, %p4928_p2 }
  0x2b   :  { %4936 = shalt.err (!%p4933_p4)
}
  0x2c   :  { %s4937_s3 = scalar_lea.vmem %s59_s26, 2048  ;;  %p4942_p6 = scmp.lt.s32.totalorder %s59_s26, %s59_s26 }
  0x2d   :  { %p4938_p5 = scmp.ne.s32.totalorder %s59_s26, %s4937_s3  ;;  %p4943_p7 = scmp.lt.s32.totalorder %s4937_s3, %s4937_s3 }
  0x2f   :  { %p4944_p8 = por %p4943_p7, %p4942_p6 }
  0x31   :  { %p4945_p9 = pnand %p4944_p8, %p4938_p5 }
  0x33   :  { %4948 = shalt.err (!%p4945_p9)
}
  0x34   :  { %64 = dma.hbm_to_vmem [thread:$0]  %s6237_s7, 2048, %s59_s26, [#allocation9], %s4978_s27, %s4978_s27, %s4979_s28  }
  0x35   :  { %s4949_s18 = scalar_lea.hbm %s6239_s9, 2048 }
  0x36   :  { %p4950_p10 = scmp.ne.s32.totalorder %s6239_s9, %s4949_s18  ;;  %p4953_p11 = scmp.lt.u32.totalorder %s4949_s18, %s6239_s9 }
  0x38   :  { %p4955_p12 = pnand %p4953_p11, %p4950_p10 }
  0x3a   :  { %4958 = shalt.err (!%p4955_p12)
}
  0x3b   :  { %s4959_s12 = scalar_lea.vmem %s5076_s30, 2048  ;;  %p4964_p0 = scmp.lt.s32.totalorder %s5076_s30, %s5076_s30 }
  0x3c   :  { %p4960_p13 = scmp.ne.s32.totalorder %s5076_s30, %s4959_s12  ;;  %p4965_p1 = scmp.lt.s32.totalorder %s4959_s12, %s4959_s12 }
  0x3e   :  { %p4966_p2 = por %p4965_p1, %p4964_p0 }
  0x40   :  { %p4967_p3 = pnand %p4966_p2, %p4960_p13 }
  0x42   :  { %4970 = shalt.err (!%p4967_p3)
}
  0x43   :  { %78 = dma.hbm_to_vmem [thread:$0]  %s6239_s9, 2048, %s5076_s30, [#allocation12], %s4978_s27, %s4978_s27, %s4979_s28  }
  0x44   :  { %4971 = dma.done.wait [#allocation7], 20480  }
  0x45   :  { %4972 = vsyncadd [#allocation7], 4294946816 }
  0x46   :  { %4973 = dma.done.wait [#allocation9], 10240  }
  0x47   :  { %4974 = vsyncadd [#allocation9], 4294957056 }
  0x48   :  { %4975 = dma.done.wait [#allocation12], 2048  }
  0x49   :  { %4976 = vsyncadd [#allocation12], 4294965248  ;;  %v6242_v0 = vmov 0.0   ;;  %vm246_vm0 = vcmask 1043456   ;;  %v124_v1 = vld [vmem:[%s6231_s1 + $0x18] sm:$0xff]  ;;  %v134_v2 = vld [vmem:[%s6231_s1 + $0x68] sm:$0xff] }
  0x4a   :  { %574 = vmatprep.mubr.f32.mxu0 %v6242_v0  ;;  %341 = vmatprep.mubr.f32.mxu1 %v6242_v0  ;;  %v123_v3 = vld [vmem:[%s6231_s1 + $0x10] sm:$0xff]  ;;  %v4239_v4 = vpack.c.bf16 %v134_v2, %v124_v1  ;;  %v133_v5 = vld [vmem:[%s6231_s1 + $0x60] sm:$0xff]  ;;  %v144_v6 = vld [vmem:[%s6231_s1 + $0xb8] sm:$0xff]  ;;  %vm4986_vm1 = vmmov 1   ;;  %vm161_vm3 = vcmask 228352   ;;  %vm4988_vm4 = vmmov 0  }
  0x4b   :  { %v154_v7 = vld [vmem:[%s6231_s1 + $0x108] sm:$0xf]  ;;  %v4241_v8 = vpack.c.bf16 %v133_v5, %v123_v3  ;;  %vm5133_vm2 = vmpackc.low %vm246_vm0, %vm4986_vm1  ;;  %v143_v11 = vld [vmem:[%s6231_s1 + $0xb0] sm:$0xff] }
  0x4c   :  { %v4243_v10 = vpack.c.bf16 %v154_v7, %v144_v6  ;;  %v153_v12 = vld [vmem:[%s6231_s1 + $0x100] sm:$0xf]  ;;  %4240 = vmatprep.subr.bf16.mxu0 %v4239_v4  ;;  %v126_v13 = vld [vmem:[%s6231_s1 + $0x28] sm:$0xff]  ;;  %v136_v14 = vld [vmem:[%s6231_s1 + $0x78] sm:$0xff] }
  0x4d   :  { %4242 = vmatpush1.bf16.msra.mxu0 %v4241_v8  ;;  %v4246_v15 = vpack.c.bf16 %v153_v12, %v143_v11  ;;  %v4249_v16 = vpack.c.bf16 %v136_v14, %v126_v13  ;;  %v125_v17 = vld [vmem:[%s6231_s1 + $0x20] sm:$0xff]  ;;  %v135_v18 = vld [vmem:[%s6231_s1 + $0x70] sm:$0xff]  ;;  %v146_v21 = vld [vmem:[%s6231_s1 + $0xc8] sm:$0xff] }
  0x4e   :  { %4245 = vmatprep.subr.msk.bf16.mxu0 %vm5133_vm2, %v4243_v10  ;;  %v5162_v19 = vld [vmem:[%s6230_s0] sm:$0xff]  ;;  %v4251_v20 = vpack.c.bf16 %v135_v18, %v125_v17  ;;  %v156_v22 = vld [vmem:[%s6231_s1 + $0x118] sm:$0xf]  ;;  %v155_v25 = vld [vmem:[%s6231_s1 + $0x110] sm:$0xf] }
  0x4f   :  { %v145_v23 = vld [vmem:[%s6231_s1 + $0xc0] sm:$0xff]  ;;  %v4253_v24 = vpack.c.bf16 %v156_v22, %v146_v21  ;;  %v5182_v26 = vld [vmem:[%s6230_s0 + $0x8] sm:$0xff]  ;;  %v128_v28 = vld [vmem:[%s6231_s1 + $0x38] sm:$0xff] }
  0x50   :  { %v4256_v27 = vpack.c.bf16 %v155_v25, %v145_v23  ;;  %v138_v29 = vld [vmem:[%s6231_s1 + $0x88] sm:$0xff]  ;;  %v5198_v30 = vld [vmem:[%s6230_s0 + $0x10] sm:$0xff]  ;;  %v5208_v32 = vld [vmem:[%s6230_s0 + $0x18] sm:$0xff] }
  0x51   :  { %4248 = vmatpush1.bf16.msk.msra.mxu0 %vm5133_vm2, %v4246_v15  ;;  %v4259_v31 = vpack.c.bf16 %v138_v29, %v128_v28  ;;  %v5216_v33 = vld [vmem:[%s6230_s0 + $0x20] sm:$0xff]  ;;  %v5224_v34 = vld [vmem:[%s6230_s0 + $0x28] sm:$0xff]  ;;  %v5232_v35 = vld [vmem:[%s6230_s0 + $0x30] sm:$0xff] }
  0x52   :  { %4250 = vmatprep.subr.bf16.mxu0 %v4249_v16  ;;  %v5240_v36 = vld [vmem:[%s6230_s0 + $0x38] sm:$0xff]  ;;  %v5248_v37 = vld [vmem:[%s6230_s0 + $0x40] sm:$0xff]  ;;  %v5256_v38 = vld [vmem:[%s6230_s0 + $0x48] sm:$0xff] }
  0x53   :  { %v5264_v39 = vld [vmem:[%s6230_s0 + $0x50] sm:$0xff]  ;;  %v5272_v40 = vld [vmem:[%s6230_s0 + $0x58] sm:$0xff]  ;;  %v5280_v41 = vld [vmem:[%s6230_s0 + $0x60] sm:$0xff] }
  0x54   :  { %3934 = vmatmul.mubr.msk.f32.vlgmr.msra.gmra.mrb[0].mxu0 %vm161_vm3, %v5162_v19  ;;  %v5288_v42 = vld [vmem:[%s6230_s0 + $0x68] sm:$0xff]  ;;  %v5296_v43 = vld [vmem:[%s6230_s0 + $0x70] sm:$0xff]  ;;  %v5304_v44 = vld [vmem:[%s6230_s0 + $0x78] sm:$0xff] }
  0x55   :  { %4252 = vmatpush1.bf16.msra.mxu0 %v4251_v20  ;;  %580 = vmatprep.mubr.f32.mxu0 %v6242_v0  ;;  %v5312_v45 = vld [vmem:[%s6230_s0 + $0x80] sm:$0xff]  ;;  %v5320_v46 = vld [vmem:[%s6230_s0 + $0x88] sm:$0xff]  ;;  %v5328_v47 = vld [vmem:[%s6230_s0 + $0x90] sm:$0xff] }
  0x56   :  { %4255 = vmatprep.subr.msk.bf16.mxu0 %vm5133_vm2, %v4253_v24  ;;  %v5336_v48 = vld [vmem:[%s6230_s0 + $0x98] sm:$0xff]  ;;  %v5344_v49 = vld [vmem:[%s6230_s0 + $0xa0] sm:$0xff]  ;;  %v5352_v50 = vld [vmem:[%s6230_s0 + $0xa8] sm:$0xff] }
  0x57   :  { %v5360_v51 = vld [vmem:[%s6230_s0 + $0xb0] sm:$0xff]  ;;  %v5368_v52 = vld [vmem:[%s6230_s0 + $0xb8] sm:$0xff]  ;;  %v5376_v53 = vld [vmem:[%s6230_s0 + $0xc0] sm:$0xff] }
  0x58   :  { %3935 = vmatmul.mubr.msk.f32.gmra.mrb[2].mxu0 %vm161_vm3, %v5182_v26  ;;  %v5384_v54 = vld [vmem:[%s6230_s0 + $0xc8] sm:$0xff]  ;;  %v5392_v55 = vld [vmem:[%s6230_s0 + $0xd0] sm:$0xff]  ;;  %v5400_v56 = vld [vmem:[%s6230_s0 + $0xd8] sm:$0xff] }
  0x59   :  { %586 = vmatprep.mubr.f32.mxu0 %v6242_v0  ;;  %4258 = vmatpush1.bf16.msk.msra.mxu0 %vm5133_vm2, %v4256_v27  ;;  %v127_v57 = vld [vmem:[%s6231_s1 + $0x30] sm:$0xff]  ;;  %v137_v58 = vld [vmem:[%s6231_s1 + $0x80] sm:$0xff]  ;;  %v148_v59 = vld [vmem:[%s6231_s1 + $0xd8] sm:$0xff] }
  0x5a   :  { %4260 = vmatprep.subr.bf16.mxu0 %v4259_v31  ;;  %v158_v60 = vld [vmem:[%s6231_s1 + $0x128] sm:$0xf]  ;;  %v4261_v61 = vpack.c.bf16 %v137_v58, %v127_v57  ;;  %v147_v63 = vld [vmem:[%s6231_s1 + $0xd0] sm:$0xff]  ;;  %v157_v1 = vld [vmem:[%s6231_s1 + $0x120] sm:$0xf] }
  0x5b   :  { %v4263_v62 = vpack.c.bf16 %v158_v60, %v148_v59  ;;  %v130_v2 = vld [vmem:[%s6231_s1 + $0x48] sm:$0xff]  ;;  %v140_v3 = vld [vmem:[%s6231_s1 + $0x98] sm:$0xff]  ;;  %v4266_v4 = vpack.c.bf16 %v157_v1, %v147_v63  ;;  %v121_v12 = vld [vmem:[%s6231_s1] sm:$0xff] }
  0x5c   :  { %3936 = vmatmul.mubr.msk.f32.gmra.mrb[4].mxu0 %vm161_vm3, %v5198_v30  ;;  %v4269_v5 = vpack.c.bf16 %v140_v3, %v130_v2  ;;  %v122_v8 = vld [vmem:[%s6231_s1 + $0x8] sm:$0xff]  ;;  %v132_v10 = vld [vmem:[%s6231_s1 + $0x58] sm:$0xff]  ;;  %v131_v13 = vld [vmem:[%s6231_s1 + $0x50] sm:$0xff] }
  0x5d   :  { %592 = vmatprep.mubr.f32.mxu0 %v6242_v0  ;;  %v4229_v11 = vpack.c.bf16 %v132_v10, %v122_v8  ;;  %v4231_v14 = vpack.c.bf16 %v131_v13, %v121_v12  ;;  %v142_v15 = vld [vmem:[%s6231_s1 + $0xa8] sm:$0xff]  ;;  %v152_v16 = vld [vmem:[%s6231_s1 + $0xf8] sm:$0xf]  ;;  %v141_v18 = vld [vmem:[%s6231_s1 + $0xa0] sm:$0xff] }
  0x5e   :  { %v4233_v17 = vpack.c.bf16 %v152_v16, %v142_v15  ;;  %v151_v20 = vld [vmem:[%s6231_s1 + $0xf0] sm:$0xf]  ;;  %v129_v21 = vld [vmem:[%s6231_s1 + $0x40] sm:$0xff]  ;;  %v150_v24 = vld [vmem:[%s6231_s1 + $0xe8] sm:$0xff] }
  0x5f   :  { %4230 = vmatprep.subr.bf16.mxu1 %v4229_v11  ;;  %v139_v22 = vld [vmem:[%s6231_s1 + $0x90] sm:$0xff]  ;;  %v4236_v23 = vpack.c.bf16 %v151_v20, %v141_v18  ;;  %v160_v25 = vld [vmem:[%s6231_s1 + $0x138] sm:$0xf]  ;;  %v149_v29 = vld [vmem:[%s6231_s1 + $0xe0] sm:$0xff] }
  0x60   :  { %3937 = vmatmul.mubr.msk.f32.gmra.mrb[6].mxu0 %vm161_vm3, %v5208_v32  ;;  %4232 = vmatpush1.bf16.msra.mxu1 %v4231_v14  ;;  %v4271_v27 = vpack.c.bf16 %v139_v22, %v129_v21  ;;  %v4273_v28 = vpack.c.bf16 %v160_v25, %v150_v24  ;;  %v159_v31 = vld [vmem:[%s6231_s1 + $0x130] sm:$0xf]  ;;  %v2334_v63 = vld [vmem:[#allocation6] sm:$0xff]  ;;  %v2355_v3 = vld [vmem:[#allocation6 + $0xa8] sm:$0xff] }
  0x61   :  { %598 = vmatprep.mubr.f32.mxu0 %v6242_v0  ;;  %4235 = vmatprep.subr.msk.bf16.mxu1 %vm5133_vm2, %v4233_v17  ;;  %v4276_v57 = vpack.c.bf16 %v159_v31, %v149_v29  ;;  %v2344_v2 = vld [vmem:[#allocation6 + $0x50] sm:$0xff]  ;;  %v2375_v10 = vld [vmem:[#allocation6 + $0x148] sm:$0xff]  ;;  %v2385_v12 = vld [vmem:[#allocation6 + $0x198] sm:$0xff] }
  0x62   :  { %v2364_v8 = vld [vmem:[#allocation6 + $0xf0] sm:$0xff]  ;;  %v4287_v15 = vpack.c.bf16 %v2385_v12, %v2375_v10  ;;  %v2374_v16 = vld [vmem:[#allocation6 + $0x140] sm:$0xff]  ;;  %v2465_v31 = vld [vmem:[#allocation6 + $0x418] sm:$0xff] }
  0x63   :  { %v2384_v17 = vld [vmem:[#allocation6 + $0x190] sm:$0xff] }
  0x64   :  { %3938 = vmatmul.mubr.msk.f32.gmra.mrb[8].mxu0 %vm161_vm3, %v5216_v33  ;;  %4238 = vmatpush1.bf16.msk.msra.mxu1 %vm5133_vm2, %v4236_v23  ;;  %v4289_v21 = vpack.c.bf16 %v2384_v17, %v2374_v16 }
  0x65   :  { %604 = vmatprep.mubr.f32.mxu0 %v6242_v0 }
  0x67   :  { %3904 = vmatmul.mubr.msk.f32.vlgmr.msra.gmra.mrb[0].mxu1 %vm161_vm3, %v5162_v19 }
  0x68   :  { %3939 = vmatmul.mubr.msk.f32.gmra.mrb[10].mxu0 %vm161_vm3, %v5224_v34  ;;  %347 = vmatprep.mubr.f32.mxu1 %v6242_v0 }
  0x69   :  { %610 = vmatprep.mubr.f32.mxu0 %v6242_v0 }
  0x6b   :  { %3905 = vmatmul.mubr.msk.f32.gmra.mrb[2].mxu1 %vm161_vm3, %v5182_v26 }
  0x6c   :  { %3940 = vmatmul.mubr.msk.f32.gmra.mrb[12].mxu0 %vm161_vm3, %v5232_v35  ;;  %353 = vmatprep.mubr.f32.mxu1 %v6242_v0 }
  0x6d   :  { %616 = vmatprep.mubr.f32.mxu0 %v6242_v0 }
  0x6f   :  { %3906 = vmatmul.mubr.msk.f32.gmra.mrb[4].mxu1 %vm161_vm3, %v5198_v30 }
  0x70   :  { %3941 = vmatmul.mubr.msk.f32.gmra.mrb[14].mxu0 %vm161_vm3, %v5240_v36  ;;  %359 = vmatprep.mubr.f32.mxu1 %v6242_v0 }
  0x71   :  { %622 = vmatprep.mubr.f32.mxu0 %v6242_v0 }
  0x73   :  { %3907 = vmatmul.mubr.msk.f32.gmra.mrb[6].mxu1 %vm161_vm3, %v5208_v32 }
  0x74   :  { %3942 = vmatmul.mubr.msk.f32.gmra.mrb[16].mxu0 %vm161_vm3, %v5248_v37  ;;  %365 = vmatprep.mubr.f32.mxu1 %v6242_v0 }
  0x75   :  { %628 = vmatprep.mubr.f32.mxu0 %v6242_v0 }
  0x77   :  { %3908 = vmatmul.mubr.msk.f32.gmra.mrb[8].mxu1 %vm161_vm3, %v5216_v33 }
  0x78   :  { %3943 = vmatmul.mubr.msk.f32.gmra.mrb[18].mxu0 %vm161_vm3, %v5256_v38  ;;  %371 = vmatprep.mubr.f32.mxu1 %v6242_v0 }
  0x79   :  { %634 = vmatprep.mubr.f32.mxu0 %v6242_v0 }
  0x7b   :  { %3909 = vmatmul.mubr.msk.f32.gmra.mrb[10].mxu1 %vm161_vm3, %v5224_v34 }
  0x7c   :  { %3944 = vmatmul.mubr.msk.f32.gmra.mrb[20].mxu0 %vm161_vm3, %v5264_v39  ;;  %377 = vmatprep.mubr.f32.mxu1 %v6242_v0 }
  0x7d   :  { %640 = vmatprep.mubr.f32.mxu0 %v6242_v0 }
  0x7f   :  { %3910 = vmatmul.mubr.msk.f32.gmra.mrb[12].mxu1 %vm161_vm3, %v5232_v35 }
  0x80   :  { %3945 = vmatmul.mubr.msk.f32.gmra.mrb[22].mxu0 %vm161_vm3, %v5272_v40  ;;  %383 = vmatprep.mubr.f32.mxu1 %v6242_v0 }
  0x81   :  { %646 = vmatprep.mubr.f32.mxu0 %v6242_v0 }
  0x83   :  { %3911 = vmatmul.mubr.msk.f32.gmra.mrb[14].mxu1 %vm161_vm3, %v5240_v36 }
  0x84   :  { %3946 = vmatmul.mubr.msk.f32.gmra.mrb[24].mxu0 %vm161_vm3, %v5280_v41  ;;  %389 = vmatprep.mubr.f32.mxu1 %v6242_v0 }
  0x85   :  { %652 = vmatprep.mubr.f32.mxu0 %v6242_v0 }
  0x87   :  { %3912 = vmatmul.mubr.msk.f32.gmra.mrb[16].mxu1 %vm161_vm3, %v5248_v37 }
  0x88   :  { %3947 = vmatmul.mubr.msk.f32.gmra.mrb[26].mxu0 %vm161_vm3, %v5288_v42  ;;  %395 = vmatprep.mubr.f32.mxu1 %v6242_v0 }
  0x89   :  { %658 = vmatprep.mubr.f32.mxu0 %v6242_v0 }
  0x8b   :  { %3913 = vmatmul.mubr.msk.f32.gmra.mrb[18].mxu1 %vm161_vm3, %v5256_v38 }
  0x8c   :  { %3948 = vmatmul.mubr.msk.f32.gmra.mrb[28].mxu0 %vm161_vm3, %v5296_v43  ;;  %401 = vmatprep.mubr.f32.mxu1 %v6242_v0 }
  0x8d   :  { %664 = vmatprep.mubr.f32.mxu0 %v6242_v0 }
  0x8f   :  { %3914 = vmatmul.mubr.msk.f32.gmra.mrb[20].mxu1 %vm161_vm3, %v5264_v39 }
  0x90   :  { %3949 = vmatmul.mubr.msk.f32.gmra.mrb[30].mxu0 %vm161_vm3, %v5304_v44  ;;  %407 = vmatprep.mubr.f32.mxu1 %v6242_v0 }
  0x91   :  { %670 = vmatprep.mubr.f32.mxu0 %v6242_v0 }
  0x93   :  { %3915 = vmatmul.mubr.msk.f32.gmra.mrb[22].mxu1 %vm161_vm3, %v5272_v40 }
  0x94   :  { %3950 = vmatmul.mubr.msk.f32.gmra.mrb[32].mxu0 %vm161_vm3, %v5312_v45  ;;  %413 = vmatprep.mubr.f32.mxu1 %v6242_v0 }
  0x95   :  { %676 = vmatprep.mubr.f32.mxu0 %v6242_v0 }
  0x97   :  { %3916 = vmatmul.mubr.msk.f32.gmra.mrb[24].mxu1 %vm161_vm3, %v5280_v41 }
  0x98   :  { %3951 = vmatmul.mubr.msk.f32.gmra.mrb[34].mxu0 %vm161_vm3, %v5320_v46  ;;  %419 = vmatprep.mubr.f32.mxu1 %v6242_v0 }
  0x99   :  { %682 = vmatprep.mubr.f32.mxu0 %v6242_v0 }
  0x9b   :  { %3917 = vmatmul.mubr.msk.f32.gmra.mrb[26].mxu1 %vm161_vm3, %v5288_v42 }
  0x9c   :  { %3952 = vmatmul.mubr.msk.f32.gmra.mrb[36].mxu0 %vm161_vm3, %v5328_v47  ;;  %425 = vmatprep.mubr.f32.mxu1 %v6242_v0 }
  0x9d   :  { %688 = vmatprep.mubr.f32.mxu0 %v6242_v0 }
  0x9f   :  { %3918 = vmatmul.mubr.msk.f32.gmra.mrb[28].mxu1 %vm161_vm3, %v5296_v43 }
  0xa0   :  { %3953 = vmatmul.mubr.msk.f32.gmra.mrb[38].mxu0 %vm161_vm3, %v5336_v48  ;;  %431 = vmatprep.mubr.f32.mxu1 %v6242_v0 }
  0xa1   :  { %694 = vmatprep.mubr.f32.mxu0 %v6242_v0 }
  0xa3   :  { %3919 = vmatmul.mubr.msk.f32.gmra.mrb[30].mxu1 %vm161_vm3, %v5304_v44 }
  0xa4   :  { %3954 = vmatmul.mubr.msk.f32.gmra.mrb[40].mxu0 %vm161_vm3, %v5344_v49  ;;  %437 = vmatprep.mubr.f32.mxu1 %v6242_v0 }
  0xa5   :  { %700 = vmatprep.mubr.f32.mxu0 %v6242_v0 }
  0xa7   :  { %3920 = vmatmul.mubr.msk.f32.gmra.mrb[32].mxu1 %vm161_vm3, %v5312_v45 }
  0xa8   :  { %3955 = vmatmul.mubr.msk.f32.gmra.mrb[42].mxu0 %vm161_vm3, %v5352_v50  ;;  %443 = vmatprep.mubr.f32.mxu1 %v6242_v0 }
  0xa9   :  { %706 = vmatprep.mubr.f32.mxu0 %v6242_v0 }
  0xab   :  { %3921 = vmatmul.mubr.msk.f32.gmra.mrb[34].mxu1 %vm161_vm3, %v5320_v46 }
  0xac   :  { %3956 = vmatmul.mubr.msk.f32.gmra.mrb[44].mxu0 %vm161_vm3, %v5360_v51  ;;  %449 = vmatprep.mubr.f32.mxu1 %v6242_v0 }
  0xad   :  { %712 = vmatprep.mubr.f32.mxu0 %v6242_v0 }
  0xaf   :  { %3922 = vmatmul.mubr.msk.f32.gmra.mrb[36].mxu1 %vm161_vm3, %v5328_v47 }
  0xb0   :  { %3957 = vmatmul.mubr.msk.f32.gmra.mrb[46].mxu0 %vm161_vm3, %v5368_v52  ;;  %455 = vmatprep.mubr.f32.mxu1 %v6242_v0 }
  0xb1   :  { %718 = vmatprep.mubr.f32.mxu0 %v6242_v0 }
  0xb3   :  { %3923 = vmatmul.mubr.msk.f32.gmra.mrb[38].mxu1 %vm161_vm3, %v5336_v48 }
  0xb4   :  { %3958 = vmatmul.mubr.msk.f32.gmra.mrb[48].mxu0 %vm161_vm3, %v5376_v53  ;;  %461 = vmatprep.mubr.f32.mxu1 %v6242_v0 }
  0xb5   :  { %724 = vmatprep.mubr.f32.mxu0 %v6242_v0 }
  0xb7   :  { %3924 = vmatmul.mubr.msk.f32.gmra.mrb[40].mxu1 %vm161_vm3, %v5344_v49 }
  0xb8   :  { %3959 = vmatmul.mubr.msk.f32.gmra.mrb[50].mxu0 %vm161_vm3, %v5384_v54  ;;  %467 = vmatprep.mubr.f32.mxu1 %v6242_v0 }
  0xb9   :  { %730 = vmatprep.mubr.f32.mxu0 %v6242_v0 }
  0xbb   :  { %3925 = vmatmul.mubr.msk.f32.gmra.mrb[42].mxu1 %vm161_vm3, %v5352_v50 }
  0xbc   :  { %3960 = vmatmul.mubr.msk.f32.gmra.mrb[52].mxu0 %vm161_vm3, %v5392_v55  ;;  %473 = vmatprep.mubr.f32.mxu1 %v6242_v0 }
  0xbd   :  { %736 = vmatprep.mubr.f32.mxu0 %v6242_v0 }
  0xbf   :  { %3926 = vmatmul.mubr.msk.f32.gmra.mrb[44].mxu1 %vm161_vm3, %v5360_v51 }
  0xc0   :  { %3961 = vmatmul.mubr.msk.f32.gmra.mrb[54].mxu0 %vm161_vm3, %v5400_v56  ;;  %479 = vmatprep.mubr.f32.mxu1 %v6242_v0 }
  0xc1   :  { %807 = vmatprep.mubr.f32.mxu0 %v6242_v0 }
  0xc3   :  { %3927 = vmatmul.mubr.msk.f32.gmra.mrb[46].mxu1 %vm161_vm3, %v5368_v52 }
  0xc4   :  { %3964 = vmatmul.mubr.msk.f32.vlgmr.msra.gmra.mrb[56].mxu0 %vm161_vm3, %v5162_v19  ;;  %485 = vmatprep.mubr.f32.mxu1 %v6242_v0 }
  0xc5   :  { %4262 = vmatpush1.bf16.msra.mxu0 %v4261_v61  ;;  %813 = vmatprep.mubr.f32.mxu0 %v6242_v0  ;;  %v2335_v61 = vld [vmem:[#allocation6 + $0x8] sm:$0xff] }
  0xc6   :  { %4265 = vmatprep.subr.msk.bf16.mxu0 %vm5133_vm2, %v4263_v62  ;;  %v2345_v62 = vld [vmem:[#allocation6 + $0x58] sm:$0xff] }
  0xc7   :  { %v4279_v1 = vpack.c.bf16 %v2345_v62, %v2335_v61  ;;  %3928 = vmatmul.mubr.msk.f32.gmra.mrb[48].mxu1 %vm161_vm3, %v5376_v53 }
  0xc8   :  { %3965 = vmatmul.mubr.msk.f32.gmra.mrb[58].mxu0 %vm161_vm3, %v5182_v26  ;;  %491 = vmatprep.mubr.f32.mxu1 %v6242_v0 }
  0xc9   :  { %819 = vmatprep.mubr.f32.mxu0 %v6242_v0  ;;  %4268 = vmatpush1.bf16.msk.msra.mxu0 %vm5133_vm2, %v4266_v4  ;;  %v2365_v4 = vld [vmem:[#allocation6 + $0xf8] sm:$0xff] }
  0xca   :  { %4270 = vmatprep.subr.bf16.mxu0 %v4269_v5  ;;  %v4281_v5 = vpack.c.bf16 %v2344_v2, %v2334_v63  ;;  %4280 = vmatprep.subr.bf16.mxu1 %v4279_v1  ;;  %v2485_v1 = vld [vmem:[#allocation6 + $0x4b8] sm:$0xff] }
  0xcb   :  { %3929 = vmatmul.mubr.msk.f32.gmra.mrb[50].mxu1 %vm161_vm3, %v5384_v54 }
  0xcc   :  { %3966 = vmatmul.mubr.msk.f32.gmra.mrb[2].mxu0 %vm161_vm3, %v5198_v30  ;;  %4282 = vmatpush1.bf16.msra.mxu1 %v4281_v5 }
  0xcd   :  { %825 = vmatprep.mubr.f32.mxu0 %v6242_v0  ;;  %497 = vmatprep.mubr.f32.mxu1 %v6242_v0 }
  0xcf   :  { %3930 = vmatmul.mubr.msk.f32.gmra.mrb[52].mxu1 %vm161_vm3, %v5392_v55 }
  0xd0   :  { %3967 = vmatmul.mubr.msk.f32.gmra.mrb[4].mxu0 %vm161_vm3, %v5208_v32  ;;  %503 = vmatprep.mubr.f32.mxu1 %v6242_v0 }
  0xd1   :  { %831 = vmatprep.mubr.f32.mxu0 %v6242_v0 }
  0xd3   :  { %3931 = vmatmul.mubr.msk.f32.gmra.mrb[54].mxu1 %vm161_vm3, %v5400_v56 }
  0xd4   :  { %3968 = vmatmul.mubr.msk.f32.gmra.mrb[6].mxu0 %vm161_vm3, %v5216_v33  ;;  %2558 = vmatprep.mubr.f32.mxu1 %v6242_v0 }
  0xd5   :  { %837 = vmatprep.mubr.f32.mxu0 %v6242_v0 }
  0xd8   :  { %3969 = vmatmul.mubr.msk.f32.gmra.mrb[8].mxu0 %vm161_vm3, %v5224_v34 }
  0xd9   :  { %843 = vmatprep.mubr.f32.mxu0 %v6242_v0 }
  0xdc   :  { %3970 = vmatmul.mubr.msk.f32.gmra.mrb[10].mxu0 %vm161_vm3, %v5232_v35 }
  0xdd   :  { %849 = vmatprep.mubr.f32.mxu0 %v6242_v0 }
  0xe0   :  { %3971 = vmatmul.mubr.msk.f32.gmra.mrb[12].mxu0 %vm161_vm3, %v5240_v36 }
  0xe1   :  { %855 = vmatprep.mubr.f32.mxu0 %v6242_v0 }
  0xe4   :  { %3972 = vmatmul.mubr.msk.f32.gmra.mrb[14].mxu0 %vm161_vm3, %v5248_v37 }
  0xe5   :  { %861 = vmatprep.mubr.f32.mxu0 %v6242_v0 }
  0xe8   :  { %3973 = vmatmul.mubr.msk.f32.gmra.mrb[16].mxu0 %vm161_vm3, %v5256_v38 }
  0xe9   :  { %867 = vmatprep.mubr.f32.mxu0 %v6242_v0 }
  0xec   :  { %3974 = vmatmul.mubr.msk.f32.gmra.mrb[18].mxu0 %vm161_vm3, %v5264_v39 }
  0xed   :  { %873 = vmatprep.mubr.f32.mxu0 %v6242_v0 }
  0xf0   :  { %3975 = vmatmul.mubr.msk.f32.gmra.mrb[20].mxu0 %vm161_vm3, %v5272_v40 }
  0xf1   :  { %879 = vmatprep.mubr.f32.mxu0 %v6242_v0 }
  0xf4   :  { %3976 = vmatmul.mubr.msk.f32.gmra.mrb[22].mxu0 %vm161_vm3, %v5280_v41 }
  0xf5   :  { %885 = vmatprep.mubr.f32.mxu0 %v6242_v0 }
  0xf8   :  { %3977 = vmatmul.mubr.msk.f32.gmra.mrb[24].mxu0 %vm161_vm3, %v5288_v42 }
  0xf9   :  { %891 = vmatprep.mubr.f32.mxu0 %v6242_v0 }
  0xfc   :  { %3978 = vmatmul.mubr.msk.f32.gmra.mrb[26].mxu0 %vm161_vm3, %v5296_v43 }
  0xfd   :  { %897 = vmatprep.mubr.f32.mxu0 %v6242_v0 }
 0x100   :  { %3979 = vmatmul.mubr.msk.f32.gmra.mrb[28].mxu0 %vm161_vm3, %v5304_v44 }
 0x101   :  { %903 = vmatprep.mubr.f32.mxu0 %v6242_v0 }
 0x104   :  { %3980 = vmatmul.mubr.msk.f32.gmra.mrb[30].mxu0 %vm161_vm3, %v5312_v45 }
 0x105   :  { %909 = vmatprep.mubr.f32.mxu0 %v6242_v0 }
 0x108   :  { %3981 = vmatmul.mubr.msk.f32.gmra.mrb[32].mxu0 %vm161_vm3, %v5320_v46 }
 0x109   :  { %915 = vmatprep.mubr.f32.mxu0 %v6242_v0 }
 0x10c   :  { %3982 = vmatmul.mubr.msk.f32.gmra.mrb[34].mxu0 %vm161_vm3, %v5328_v47 }
 0x10d   :  { %921 = vmatprep.mubr.f32.mxu0 %v6242_v0 }
 0x110   :  { %3983 = vmatmul.mubr.msk.f32.gmra.mrb[36].mxu0 %vm161_vm3, %v5336_v48 }
 0x111   :  { %927 = vmatprep.mubr.f32.mxu0 %v6242_v0 }
 0x114   :  { %3984 = vmatmul.mubr.msk.f32.gmra.mrb[38].mxu0 %vm161_vm3, %v5344_v49 }
 0x115   :  { %933 = vmatprep.mubr.f32.mxu0 %v6242_v0 }
 0x118   :  { %3985 = vmatmul.mubr.msk.f32.gmra.mrb[40].mxu0 %vm161_vm3, %v5352_v50 }
 0x119   :  { %939 = vmatprep.mubr.f32.mxu0 %v6242_v0 }
 0x11c   :  { %3986 = vmatmul.mubr.msk.f32.gmra.mrb[42].mxu0 %vm161_vm3, %v5360_v51 }
 0x11d   :  { %945 = vmatprep.mubr.f32.mxu0 %v6242_v0 }
 0x120   :  { %3987 = vmatmul.mubr.msk.f32.gmra.mrb[44].mxu0 %vm161_vm3, %v5368_v52 }
 0x121   :  { %951 = vmatprep.mubr.f32.mxu0 %v6242_v0 }
 0x124   :  { %3988 = vmatmul.mubr.msk.f32.gmra.mrb[46].mxu0 %vm161_vm3, %v5376_v53 }
 0x125   :  { %957 = vmatprep.mubr.f32.mxu0 %v6242_v0 }
 0x127   :  { %v576_v6 = vpop.f32.mrb[0].mxu0 }
 0x128   :  { %v578_v7 = vpop.f32.mrb[1].mxu0  ;;  %3989 = vmatmul.mubr.msk.f32.gmra.mrb[48].mxu0 %vm161_vm3, %v5384_v54  ;;  %v4283_v6 = vpack.c.bf16 %v2365_v4, %v2355_v3  ;;  %v2474_v3 = vld [vmem:[#allocation6 + $0x460] sm:$0xff]  ;;  %v2484_v4 = vld [vmem:[#allocation6 + $0x4b0] sm:$0xff] }
 0x129   :  { %963 = vmatprep.mubr.f32.mxu0 %v6242_v0  ;;  %v2354_v7 = vld [vmem:[#allocation6 + $0xa0] sm:$0xff] }
 0x12a   :  { %v4285_v14 = vpack.c.bf16 %v2364_v8, %v2354_v7  ;;  %4284 = vmatprep.subr.bf16.mxu1 %v4283_v6  ;;  %v4309_v6 = vpack.c.bf16 %v2484_v4, %v2474_v3 }
 0x12c   :  { %3990 = vmatmul.mubr.msk.f32.gmra.mrb[60].mxu0 %vm161_vm3, %v5392_v55  ;;  %4286 = vmatpush1.bf16.msra.mxu1 %v4285_v14 }
 0x12d   :  { %969 = vmatprep.mubr.f32.mxu0 %v6242_v0  ;;  %4288 = vmatprep.subr.bf16.mxu1 %v4287_v15 }
 0x130   :  { %3991 = vmatmul.mubr.msk.f32.gmra.mrb[62].mxu0 %vm161_vm3, %v5400_v56  ;;  %4290 = vmatpush1.bf16.msra.mxu1 %v4289_v21 }
 0x131   :  { %1040 = vmatprep.mubr.f32.mxu0 %v6242_v0 }
 0x134   :  { %3994 = vmatmul.mubr.msk.f32.vlgmr.msra.gmra.mrb[64].mxu0 %vm161_vm3, %v5162_v19 }
 0x135   :  { %4272 = vmatpush1.bf16.msra.mxu0 %v4271_v27  ;;  %1046 = vmatprep.mubr.f32.mxu0 %v6242_v0 }
 0x136   :  { %4275 = vmatprep.subr.msk.bf16.mxu0 %vm5133_vm2, %v4273_v28 }
 0x138   :  { %3995 = vmatmul.mubr.msk.f32.gmra.mrb[66].mxu0 %vm161_vm3, %v5182_v26 }
 0x139   :  { %1052 = vmatprep.mubr.f32.mxu0 %v6242_v0  ;;  %4278 = vmatpush1.bf16.msk.msra.mxu0 %vm5133_vm2, %v4276_v57 }
 0x13c   :  { %3996 = vmatmul.mubr.msk.f32.gmra.mrb[68].mxu0 %vm161_vm3, %v5198_v30 }
 0x13d   :  { %1058 = vmatprep.mubr.f32.mxu0 %v6242_v0 }
 0x140   :  { %3997 = vmatmul.mubr.msk.f32.gmra.mrb[2].mxu0 %vm161_vm3, %v5208_v32 }
 0x141   :  { %1064 = vmatprep.mubr.f32.mxu0 %v6242_v0 }
 0x144   :  { %3998 = vmatmul.mubr.msk.f32.gmra.mrb[4].mxu0 %vm161_vm3, %v5216_v33 }
 0x145   :  { %1070 = vmatprep.mubr.f32.mxu0 %v6242_v0 }
 0x148   :  { %3999 = vmatmul.mubr.msk.f32.gmra.mrb[6].mxu0 %vm161_vm3, %v5224_v34 }
 0x149   :  { %1076 = vmatprep.mubr.f32.mxu0 %v6242_v0 }
 0x14c   :  { %4000 = vmatmul.mubr.msk.f32.gmra.mrb[8].mxu0 %vm161_vm3, %v5232_v35 }
 0x14d   :  { %1082 = vmatprep.mubr.f32.mxu0 %v6242_v0 }
 0x150   :  { %4001 = vmatmul.mubr.msk.f32.gmra.mrb[10].mxu0 %vm161_vm3, %v5240_v36 }
 0x151   :  { %1088 = vmatprep.mubr.f32.mxu0 %v6242_v0 }
 0x154   :  { %4002 = vmatmul.mubr.msk.f32.gmra.mrb[12].mxu0 %vm161_vm3, %v5248_v37 }
 0x155   :  { %1094 = vmatprep.mubr.f32.mxu0 %v6242_v0 }
 0x158   :  { %4003 = vmatmul.mubr.msk.f32.gmra.mrb[14].mxu0 %vm161_vm3, %v5256_v38 }
 0x159   :  { %1100 = vmatprep.mubr.f32.mxu0 %v6242_v0 }
 0x15c   :  { %4004 = vmatmul.mubr.msk.f32.gmra.mrb[16].mxu0 %vm161_vm3, %v5264_v39 }
 0x15d   :  { %1106 = vmatprep.mubr.f32.mxu0 %v6242_v0 }
 0x160   :  { %4005 = vmatmul.mubr.msk.f32.gmra.mrb[18].mxu0 %vm161_vm3, %v5272_v40 }
 0x161   :  { %1112 = vmatprep.mubr.f32.mxu0 %v6242_v0 }
 0x164   :  { %4006 = vmatmul.mubr.msk.f32.gmra.mrb[20].mxu0 %vm161_vm3, %v5280_v41 }
 0x165   :  { %1118 = vmatprep.mubr.f32.mxu0 %v6242_v0 }
 0x168   :  { %4007 = vmatmul.mubr.msk.f32.gmra.mrb[22].mxu0 %vm161_vm3, %v5288_v42 }
 0x169   :  { %1124 = vmatprep.mubr.f32.mxu0 %v6242_v0 }
 0x16c   :  { %4008 = vmatmul.mubr.msk.f32.gmra.mrb[24].mxu0 %vm161_vm3, %v5296_v43 }
 0x16d   :  { %1130 = vmatprep.mubr.f32.mxu0 %v6242_v0 }
 0x170   :  { %4009 = vmatmul.mubr.msk.f32.gmra.mrb[26].mxu0 %vm161_vm3, %v5304_v44 }
 0x171   :  { %1136 = vmatprep.mubr.f32.mxu0 %v6242_v0 }
 0x174   :  { %4010 = vmatmul.mubr.msk.f32.gmra.mrb[28].mxu0 %vm161_vm3, %v5312_v45 }
 0x175   :  { %1142 = vmatprep.mubr.f32.mxu0 %v6242_v0 }
 0x178   :  { %4011 = vmatmul.mubr.msk.f32.gmra.mrb[30].mxu0 %vm161_vm3, %v5320_v46 }
 0x179   :  { %1148 = vmatprep.mubr.f32.mxu0 %v6242_v0 }
 0x17c   :  { %4012 = vmatmul.mubr.msk.f32.gmra.mrb[32].mxu0 %vm161_vm3, %v5328_v47 }
 0x17d   :  { %1154 = vmatprep.mubr.f32.mxu0 %v6242_v0 }
 0x180   :  { %4013 = vmatmul.mubr.msk.f32.gmra.mrb[34].mxu0 %vm161_vm3, %v5336_v48 }
 0x181   :  { %1160 = vmatprep.mubr.f32.mxu0 %v6242_v0 }
 0x184   :  { %4014 = vmatmul.mubr.msk.f32.gmra.mrb[36].mxu0 %vm161_vm3, %v5344_v49 }
 0x185   :  { %1166 = vmatprep.mubr.f32.mxu0 %v6242_v0 }
 0x188   :  { %4015 = vmatmul.mubr.msk.f32.gmra.mrb[38].mxu0 %vm161_vm3, %v5352_v50 }
 0x189   :  { %1172 = vmatprep.mubr.f32.mxu0 %v6242_v0 }
 0x18b   :  { %v726_v9 = vpop.f32.mrb[50].mxu0 }
 0x18c   :  { %v728_v58 = vpop.f32.mrb[51].mxu0  ;;  %4016 = vmatmul.mubr.msk.f32.gmra.mrb[40].mxu0 %vm161_vm3, %v5360_v51  ;;  %v2454_v9 = vld [vmem:[#allocation6 + $0x3c0] sm:$0xff] }
 0x18d   :  { %1178 = vmatprep.mubr.f32.mxu0 %v6242_v0  ;;  %v2464_v58 = vld [vmem:[#allocation6 + $0x410] sm:$0xff] }
 0x18f   :  { %v732_v59 = vpop.f32.mrb[52].mxu0 }
 0x190   :  { %v734_v60 = vpop.f32.mrb[53].mxu0  ;;  %4017 = vmatmul.mubr.msk.f32.gmra.mrb[42].mxu0 %vm161_vm3, %v5368_v52 }
 0x191   :  { %1184 = vmatprep.mubr.f32.mxu0 %v6242_v0  ;;  %v4305_v60 = vpack.c.bf16 %v2464_v58, %v2454_v9 }
 0x193   :  { %v738_v11 = vpop.f32.mrb[54].mxu0 }
 0x194   :  { %v740_v13 = vpop.f32.mrb[55].mxu0  ;;  %4018 = vmatmul.mubr.msk.f32.gmra.mrb[44].mxu0 %vm161_vm3, %v5376_v53 }
 0x195   :  { %1190 = vmatprep.mubr.f32.mxu0 %v6242_v0 }
 0x197   :  { %v809_v18 = vpop.f32.mrb[56].mxu0 }
 0x198   :  { %v811_v20 = vpop.f32.mrb[57].mxu0  ;;  %4019 = vmatmul.mubr.msk.f32.gmra.mrb[46].mxu0 %vm161_vm3, %v5384_v54 }
 0x199   :  { %1196 = vmatprep.mubr.f32.mxu0 %v6242_v0 }
 0x19b   :  { %v815_v22 = vpop.f32.mrb[58].mxu0 }
 0x19c   :  { %v817_v23 = vpop.f32.mrb[59].mxu0  ;;  %4020 = vmatmul.mubr.msk.f32.gmra.mrb[48].mxu0 %vm161_vm3, %v5392_v55 }
 0x19d   :  { %1202 = vmatprep.mubr.f32.mxu0 %v6242_v0 }
 0x1a0   :  { %4021 = vmatmul.mubr.msk.f32.gmra.mrb[70].mxu0 %vm161_vm3, %v5400_v56 }
 0x1a1   :  { %1273 = vmatprep.mubr.f32.mxu0 %v6242_v0 }
 0x1a4   :  { %4024 = vmatmul.mubr.msk.f32.vlgmr.msra.gmra.mrb[72].mxu0 %vm161_vm3, %v5162_v19  ;;  %v2395_v19 = vld [vmem:[#allocation6 + $0x1e8] sm:$0xff] }
 0x1a5   :  { %1279 = vmatprep.mubr.f32.mxu0 %v6242_v0 }
 0x1a8   :  { %4025 = vmatmul.mubr.msk.f32.gmra.mrb[74].mxu0 %vm161_vm3, %v5182_v26  ;;  %v2405_v26 = vld [vmem:[#allocation6 + $0x238] sm:$0xff] }
 0x1a9   :  { %1285 = vmatprep.mubr.f32.mxu0 %v6242_v0 }
 0x1ac   :  { %4026 = vmatmul.mubr.msk.f32.gmra.mrb[76].mxu0 %vm161_vm3, %v5198_v30  ;;  %v2394_v30 = vld [vmem:[#allocation6 + $0x1e0] sm:$0xff] }
 0x1ad   :  { %1291 = vmatprep.mubr.f32.mxu0 %v6242_v0 }
 0x1b0   :  { %4027 = vmatmul.mubr.msk.f32.gmra.mrb[78].mxu0 %vm161_vm3, %v5208_v32  ;;  %v4291_v32 = vpack.c.bf16 %v2405_v26, %v2395_v19 }
 0x1b1   :  { %1297 = vmatprep.mubr.f32.mxu0 %v6242_v0 }
 0x1b2   :  { %4292 = vmatprep.subr.bf16.mxu1 %v4291_v32 }
 0x1b4   :  { %4028 = vmatmul.mubr.msk.f32.gmra.mrb[2].mxu0 %vm161_vm3, %v5216_v33  ;;  %v2404_v33 = vld [vmem:[#allocation6 + $0x230] sm:$0xff] }
 0x1b5   :  { %1303 = vmatprep.mubr.f32.mxu0 %v6242_v0 }
 0x1b8   :  { %4029 = vmatmul.mubr.msk.f32.gmra.mrb[4].mxu0 %vm161_vm3, %v5224_v34  ;;  %v4293_v34 = vpack.c.bf16 %v2404_v33, %v2394_v30 }
 0x1b9   :  { %1309 = vmatprep.mubr.f32.mxu0 %v6242_v0 }
 0x1ba   :  { %4294 = vmatpush1.bf16.msra.mxu1 %v4293_v34 }
 0x1bc   :  { %4030 = vmatmul.mubr.msk.f32.gmra.mrb[6].mxu0 %vm161_vm3, %v5232_v35 }
 0x1bd   :  { %1315 = vmatprep.mubr.f32.mxu0 %v6242_v0 }
 0x1c0   :  { %4031 = vmatmul.mubr.msk.f32.gmra.mrb[8].mxu0 %vm161_vm3, %v5240_v36 }
 0x1c1   :  { %1321 = vmatprep.mubr.f32.mxu0 %v6242_v0 }
 0x1c4   :  { %4032 = vmatmul.mubr.msk.f32.gmra.mrb[10].mxu0 %vm161_vm3, %v5248_v37 }
 0x1c5   :  { %1327 = vmatprep.mubr.f32.mxu0 %v6242_v0 }
 0x1c8   :  { %4033 = vmatmul.mubr.msk.f32.gmra.mrb[12].mxu0 %vm161_vm3, %v5256_v38 }
 0x1c9   :  { %1333 = vmatprep.mubr.f32.mxu0 %v6242_v0 }
 0x1cc   :  { %4034 = vmatmul.mubr.msk.f32.gmra.mrb[14].mxu0 %vm161_vm3, %v5264_v39  ;;  %v2415_v39 = vld [vmem:[#allocation6 + $0x288] sm:$0xff] }
 0x1cd   :  { %1339 = vmatprep.mubr.f32.mxu0 %v6242_v0 }
 0x1d0   :  { %4035 = vmatmul.mubr.msk.f32.gmra.mrb[16].mxu0 %vm161_vm3, %v5272_v40  ;;  %v2425_v40 = vld [vmem:[#allocation6 + $0x2d8] sm:$0xff] }
 0x1d1   :  { %1345 = vmatprep.mubr.f32.mxu0 %v6242_v0 }
 0x1d4   :  { %4036 = vmatmul.mubr.msk.f32.gmra.mrb[18].mxu0 %vm161_vm3, %v5280_v41  ;;  %v4295_v41 = vpack.c.bf16 %v2425_v40, %v2415_v39  ;;  %v2337_v40 = vld [vmem:[#allocation6 + $0x18] sm:$0xff] }
 0x1d5   :  { %1351 = vmatprep.mubr.f32.mxu0 %v6242_v0 }
 0x1d6   :  { %4296 = vmatprep.subr.bf16.mxu1 %v4295_v41  ;;  %v2347_v41 = vld [vmem:[#allocation6 + $0x68] sm:$0xff] }
 0x1d8   :  { %4037 = vmatmul.mubr.msk.f32.gmra.mrb[20].mxu0 %vm161_vm3, %v5288_v42  ;;  %v2414_v42 = vld [vmem:[#allocation6 + $0x280] sm:$0xff] }
 0x1d9   :  { %1357 = vmatprep.mubr.f32.mxu0 %v6242_v0 }
 0x1dc   :  { %4038 = vmatmul.mubr.msk.f32.gmra.mrb[22].mxu0 %vm161_vm3, %v5296_v43  ;;  %v2424_v43 = vld [vmem:[#allocation6 + $0x2d0] sm:$0xff] }
 0x1dd   :  { %1363 = vmatprep.mubr.f32.mxu0 %v6242_v0 }
 0x1e0   :  { %4039 = vmatmul.mubr.msk.f32.gmra.mrb[24].mxu0 %vm161_vm3, %v5304_v44  ;;  %v5810_v44 = vpop.f32.mrb[0].mxu1 }
 0x1e1   :  { %1369 = vmatprep.mubr.f32.mxu0 %v6242_v0 }
 0x1e4   :  { %4040 = vmatmul.mubr.msk.f32.gmra.mrb[26].mxu0 %vm161_vm3, %v5312_v45  ;;  %v4297_v45 = vpack.c.bf16 %v2424_v43, %v2414_v42  ;;  %v4311_v43 = vpack.c.bf16 %v2347_v41, %v2337_v40 }
 0x1e5   :  { %1375 = vmatprep.mubr.f32.mxu0 %v6242_v0 }
 0x1e6   :  { %4298 = vmatpush1.bf16.msra.mxu1 %v4297_v45 }
 0x1e8   :  { %4041 = vmatmul.mubr.msk.f32.gmra.mrb[28].mxu0 %vm161_vm3, %v5320_v46 }
 0x1e9   :  { %1381 = vmatprep.mubr.f32.mxu0 %v6242_v0 }
 0x1ec   :  { %4042 = vmatmul.mubr.msk.f32.gmra.mrb[30].mxu0 %vm161_vm3, %v5328_v47  ;;  %v5812_v47 = vpop.f32.mrb[1].mxu1 }
 0x1ed   :  { %1387 = vmatprep.mubr.f32.mxu0 %v6242_v0  ;;  %v5817_v24 = vpop.f32.mrb[2].mxu1 }
 0x1ee   :  { %v5819_v28 = vpop.f32.mrb[3].mxu1 }
 0x1ef   :  { %v5824_v59 = vpop.f32.mrb[4].mxu1 }
 0x1f0   :  { %4043 = vmatmul.mubr.msk.f32.gmra.mrb[32].mxu0 %vm161_vm3, %v5336_v48  ;;  %v5826_v62 = vpop.f32.mrb[5].mxu1 }
 0x1f1   :  { %1393 = vmatprep.mubr.f32.mxu0 %v6242_v0  ;;  %v5830_v5 = vpop.f32.mrb[6].mxu1 }
 0x1f2   :  { %v5832_v7 = vpop.f32.mrb[7].mxu1 }
 0x1f3   :  { %v5834_v8 = vpop.f32.mrb[8].mxu1 }
 0x1f4   :  { %4044 = vmatmul.mubr.msk.f32.gmra.mrb[34].mxu0 %vm161_vm3, %v5344_v49  ;;  %v2435_v49 = vld [vmem:[#allocation6 + $0x328] sm:$0xff]  ;;  %v5836_v10 = vpop.f32.mrb[9].mxu1 }
 0x1f5   :  { %1399 = vmatprep.mubr.f32.mxu0 %v6242_v0  ;;  %v5838_v11 = vpop.f32.mrb[10].mxu1 }
 0x1f8   :  { %4045 = vmatmul.mubr.msk.f32.gmra.mrb[36].mxu0 %vm161_vm3, %v5352_v50  ;;  %v2445_v50 = vld [vmem:[#allocation6 + $0x378] sm:$0xff] }
 0x1f9   :  { %1405 = vmatprep.mubr.f32.mxu0 %v6242_v0 }
 0x1fc   :  { %4046 = vmatmul.mubr.msk.f32.gmra.mrb[38].mxu0 %vm161_vm3, %v5360_v51  ;;  %v4299_v51 = vpack.c.bf16 %v2445_v50, %v2435_v49 }
 0x1fd   :  { %1411 = vmatprep.mubr.f32.mxu0 %v6242_v0 }
 0x1fe   :  { %4300 = vmatprep.subr.bf16.mxu1 %v4299_v51 }
 0x1ff   :  { %v965_v35 = vpop.f32.mrb[60].mxu0 }
 0x200   :  { %v967_v36 = vpop.f32.mrb[61].mxu0  ;;  %4047 = vmatmul.mubr.msk.f32.gmra.mrb[40].mxu0 %vm161_vm3, %v5368_v52  ;;  %v2434_v52 = vld [vmem:[#allocation6 + $0x320] sm:$0xff] }
 0x201   :  { %1417 = vmatprep.mubr.f32.mxu0 %v6242_v0 }
 0x203   :  { %v971_v37 = vpop.f32.mrb[62].mxu0 }
 0x204   :  { %v973_v38 = vpop.f32.mrb[63].mxu0  ;;  %4048 = vmatmul.mubr.msk.f32.gmra.mrb[42].mxu0 %vm161_vm3, %v5376_v53  ;;  %v2444_v53 = vld [vmem:[#allocation6 + $0x370] sm:$0xff] }
 0x205   :  { %1423 = vmatprep.mubr.f32.mxu0 %v6242_v0  ;;  %v4301_v25 = vpack.c.bf16 %v2444_v53, %v2434_v52 }
 0x207   :  { %v1042_v46 = vpop.f32.mrb[64].mxu0  ;;  %4302 = vmatpush1.bf16.msra.mxu1 %v4301_v25 }
 0x208   :  { %v1044_v48 = vpop.f32.mrb[65].mxu0  ;;  %4049 = vmatmul.mubr.msk.f32.gmra.mrb[44].mxu0 %vm161_vm3, %v5384_v54  ;;  %v2455_v54 = vld [vmem:[#allocation6 + $0x3c8] sm:$0xff] }
 0x209   :  { %1429 = vmatprep.mubr.f32.mxu0 %v6242_v0  ;;  %v4303_v57 = vpack.c.bf16 %v2465_v31, %v2455_v54 }
 0x20b   :  { %v1048_v27 = vpop.f32.mrb[66].mxu0  ;;  %4304 = vmatprep.subr.bf16.mxu1 %v4303_v57 }
 0x20c   :  { %v1050_v29 = vpop.f32.mrb[67].mxu0  ;;  %4050 = vmatmul.mubr.msk.f32.gmra.mrb[46].mxu0 %vm161_vm3, %v5392_v55  ;;  %4306 = vmatpush1.bf16.msra.mxu1 %v4305_v60  ;;  %v2475_v55 = vld [vmem:[#allocation6 + $0x468] sm:$0xff] }
 0x20d   :  { %1435 = vmatprep.mubr.f32.mxu0 %v6242_v0  ;;  %v4307_v2 = vpack.c.bf16 %v2485_v1, %v2475_v55 }
 0x20f   :  { %v1054_v61 = vpop.f32.mrb[68].mxu0  ;;  %4308 = vmatprep.subr.bf16.mxu1 %v4307_v2 }
 0x210   :  { %v1056_v63 = vpop.f32.mrb[69].mxu0  ;;  %4051 = vmatmul.mubr.msk.f32.gmra.mrb[48].mxu0 %vm161_vm3, %v5400_v56  ;;  %4310 = vmatpush1.bf16.msra.mxu1 %v4309_v6  ;;  %v5840_v56 = vpop.f32.mrb[11].mxu1 }
 0x211   :  { %v5842_v12 = vpop.f32.mrb[12].mxu1  ;;  %4312 = vmatprep.subr.bf16.mxu1 %v4311_v43  ;;  %v1724_v43 = vlaneseq }
 0x212   :  { %v5844_v13 = vpop.f32.mrb[13].mxu1 }
 0x213   :  { %v5846_v14 = vpop.f32.mrb[14].mxu1 }
 0x214   :  { %v5848_v15 = vpop.f32.mrb[15].mxu1 }
 0x215   :  { %v5850_v16 = vpop.f32.mrb[16].mxu1 }
 0x216   :  { %v5852_v17 = vpop.f32.mrb[17].mxu1 }
 0x217   :  { %v5854_v18 = vpop.f32.mrb[18].mxu1 }
 0x218   :  { %v5856_v20 = vpop.f32.mrb[19].mxu1 }
 0x219   :  { %v5858_v21 = vpop.f32.mrb[20].mxu1 }
 0x21a   :  { %v5860_v22 = vpop.f32.mrb[21].mxu1 }
 0x21b   :  { %v5862_v23 = vpop.f32.mrb[22].mxu1 }
 0x21c   :  { %v5864_v19 = vpop.f32.mrb[23].mxu1 }
 0x21d   :  { %v5866_v26 = vpop.f32.mrb[24].mxu1 }
 0x21e   :  { %v5868_v30 = vpop.f32.mrb[25].mxu1 }
 0x21f   :  { %v5870_v32 = vpop.f32.mrb[26].mxu1 }
 0x220   :  { %v5872_v33 = vpop.f32.mrb[27].mxu1 }
 0x221   :  { %v5874_v34 = vpop.f32.mrb[28].mxu1 }
 0x222   :  { %v5876_v35 = vpop.f32.mrb[29].mxu1 }
 0x223   :  { %v5878_v36 = vpop.f32.mrb[30].mxu1 }
 0x224   :  { %v5880_v37 = vpop.f32.mrb[31].mxu1 }
 0x225   :  { %v5882_v38 = vpop.f32.mrb[32].mxu1 }
 0x226   :  { %v5884_v39 = vpop.f32.mrb[33].mxu1 }
 0x227   :  { %v5886_v42 = vpop.f32.mrb[34].mxu1 }
 0x228   :  { %v5888_v45 = vpop.f32.mrb[35].mxu1 }
 0x229   :  { %v5890_v46 = vpop.f32.mrb[36].mxu1 }
 0x22a   :  { %v5892_v48 = vpop.f32.mrb[37].mxu1 }
 0x22b   :  { %v5894_v49 = vpop.f32.mrb[38].mxu1 }
 0x22c   :  { %v5896_v50 = vpop.f32.mrb[39].mxu1 }
 0x22d   :  { %v5898_v51 = vpop.f32.mrb[40].mxu1 }
 0x22e   :  { %v5900_v52 = vpop.f32.mrb[41].mxu1 }
 0x22f   :  { %v5902_v53 = vpop.f32.mrb[42].mxu1 }
 0x230   :  { %v5904_v25 = vpop.f32.mrb[43].mxu1 }
 0x231   :  { %6252 = vst [vmem:[#allocation16_spill] sm:$0xff] %v5904_v25  ;;  %v5906_v27 = vpop.f32.mrb[44].mxu1 }
 0x232   :  { %6253 = vst [vmem:[#allocation17_spill] sm:$0xff] %v5906_v27  ;;  %v5908_v29 = vpop.f32.mrb[45].mxu1 }
 0x233   :  { %6254 = vst [vmem:[#allocation18_spill] sm:$0xff] %v5908_v29  ;;  %v5910_v54 = vpop.f32.mrb[46].mxu1 }
 0x234   :  { %6255 = vst [vmem:[#allocation19_spill] sm:$0xff] %v5910_v54  ;;  %v5912_v31 = vpop.f32.mrb[47].mxu1  ;;  %v5914_v54 = vshrl.u32 %v1724_v43, 7 }
 0x235   :  { %6256 = vst [vmem:[#allocation20_spill] sm:$0xff] %v5912_v31  ;;  %v487_v57 = vpop.f32.mrb[48].mxu1 }
 0x236   :  { %v489_v9 = vpop.f32.mrb[49].mxu1  ;;  %6257 = vst [vmem:[#allocation21_spill] sm:$0xff] %v5914_v54 }
 0x237   :  { %v493_v58 = vpop.f32.mrb[50].mxu1  ;;  %v6245_v9 = vsub.s32 0, %v5914_v54 }
 0x238   :  { %v495_v60 = vpop.f32.mrb[51].mxu1  ;;  %v1722_v58 = vld [vmem:[%s6232_s2] sm:$0x3] }
 0x239   :  { %v499_v61 = vpop.f32.mrb[52].mxu1  ;;  %v6244_v60 = vsub.s32 1, %v5914_v54  ;;  %v2367_v54 = vld [vmem:[#allocation6 + $0x108] sm:$0xff] }
 0x23a   :  { %v501_v63 = vpop.f32.mrb[53].mxu1 }
 0x23b   :  { %v505_v55 = vpop.f32.mrb[54].mxu1  ;;  %v5923_v63 = vrot.slane %v1722_v58, %v6245_v9 }
 0x23c   :  { %v507_v2 = vpop.f32.mrb[55].mxu1 }
 0x273   :  { %v1204_v1 = vpop.f32.mrb[70].mxu0 }
 0x274   :  { %v1206_v3 = vpop.f32.mrb[71].mxu0 }
 0x277   :  { %v1275_v4 = vpop.f32.mrb[72].mxu0 }
 0x278   :  { %v1277_v6 = vpop.f32.mrb[73].mxu0 }
 0x27b   :  { %v1281_v40 = vpop.f32.mrb[74].mxu0 }
 0x27c   :  { %v1283_v41 = vpop.f32.mrb[75].mxu0 }
 0x27f   :  { %v1287_v0 = vpop.f32.mrb[76].mxu0 }
 0x280   :  { %v1289_v29 = vpop.f32.mrb[77].mxu0 }
 0x283   :  { %v1293_v31 = vpop.f32.mrb[78].mxu0 }
 0x284   :  { %v1295_v57 = vpop.f32.mrb[79].mxu0  ;;  %v5928_v31 = vrot.slane %v1722_v58, %v6244_v60 }
 0x287   :  { %v1299_v61 = vpop.f32.mrb[2].mxu0 }
 0x288   :  { %v4551_v0 = vadd.f32 %v1299_v61, %v5810_v44  ;;  %v1301_v29 = vpop.f32.mrb[3].mxu0 }
 0x289   :  { %v4553_v55 = vadd.f32 %v1301_v29, %v5812_v47 }
 0x28a   :  { %v4552_v2 = vadd.f32 %v4551_v0, %v5923_v63 }
 0x28b   :  { %v1305_v1 = vpop.f32.mrb[4].mxu0  ;;  %v4554_v6 = vadd.f32 %v4553_v55, %v5928_v31  ;;  %v2357_v55 = vld [vmem:[#allocation6 + $0xb8] sm:$0xff] }
 0x28c   :  { %v4555_v3 = vadd.f32 %v1305_v1, %v5817_v24  ;;  %v1307_v4 = vpop.f32.mrb[5].mxu0  ;;  %v1766_v57 = vmax.f32 %v4552_v2, 0.0  ;;  %v2336_v24 = vld [vmem:[#allocation6 + $0x10] sm:$0xff]  ;;  %v2346_v1 = vld [vmem:[#allocation6 + $0x60] sm:$0xff] }
 0x28d   :  { %v4557_v40 = vadd.f32 %v1307_v4, %v5819_v28  ;;  %v1767_v29 = vmax.f32 %v4554_v6, 0.0 }
 0x28e   :  { %v4556_v41 = vadd.f32 %v4555_v3, %v5923_v63 }
 0x28f   :  { %v4558_v44 = vadd.f32 %v4557_v40, %v5928_v31  ;;  %v1311_v43 = vpop.f32.mrb[6].mxu0 }
 0x290   :  { %v1788_v58 = vmax.f32 %v4556_v41, 0.0  ;;  %v4559_v61 = vadd.f32 %v1311_v43, %v5824_v59  ;;  %v1313_v47 = vpop.f32.mrb[7].mxu0  ;;  %v4313_v41 = vpack.c.bf16 %v2346_v1, %v2336_v24  ;;  %v2366_v43 = vld [vmem:[#allocation6 + $0x100] sm:$0xff] }
 0x291   :  { %v1789_v60 = vmax.f32 %v4558_v44, 0.0  ;;  %v4561_v0 = vadd.f32 %v1313_v47, %v5826_v62  ;;  %v4315_v62 = vpack.c.bf16 %v2367_v54, %v2357_v55  ;;  %v2356_v44 = vld [vmem:[#allocation6 + $0xb0] sm:$0xff] }
 0x292   :  { %v1790_v9 = vmax.f32 %v1766_v57, %v1788_v58  ;;  %v4560_v3 = vadd.f32 %v4559_v61, %v5923_v63  ;;  %v2377_v58 = vld [vmem:[#allocation6 + $0x158] sm:$0xff] }
 0x293   :  { %v1791_v28 = vmax.f32 %v1767_v29, %v1789_v60  ;;  %v1317_v4 = vpop.f32.mrb[8].mxu0  ;;  %v4562_v59 = vadd.f32 %v4561_v0, %v5928_v31  ;;  %v2387_v60 = vld [vmem:[#allocation6 + $0x1a8] sm:$0xff]  ;;  %v6259_v0 = vmov 0.0  }
 0x294   :  { %v4563_v40 = vadd.f32 %v1317_v4, %v5830_v5  ;;  %v1319_v2 = vpop.f32.mrb[9].mxu0  ;;  %v1814_v5 = vmax.f32 %v4560_v3, 0.0  ;;  %v2376_v4 = vld [vmem:[#allocation6 + $0x150] sm:$0xff] }
 0x295   :  { %v5941_v27 = vmax.f32 %v1790_v9, %v1791_v28  ;;  %v4565_v6 = vadd.f32 %v1319_v2, %v5832_v7  ;;  %v4317_v7 = vpack.c.bf16 %v2366_v43, %v2356_v44  ;;  %v1815_v54 = vmax.f32 %v4562_v59, 0.0  ;;  %v2396_v43 = vld [vmem:[#allocation6 + $0x1f0] sm:$0xff] }
 0x296   :  { %v4564_v57 = vadd.f32 %v4563_v40, %v5923_v63  ;;  %v4319_v28 = vpack.c.bf16 %v2387_v60, %v2377_v58  ;;  %v2386_v40 = vld [vmem:[#allocation6 + $0x1a0] sm:$0xff] }
 0x297   :  { %6258 = vst [vmem:[#allocation22_spill] sm:$0xff] %v5941_v27  ;;  %v4566_v47 = vadd.f32 %v4565_v6, %v5928_v31  ;;  %v1323_v61 = vpop.f32.mrb[10].mxu0  ;;  %2559 = vmatmul.mubr.f32.vlgmr.msra.gmra.mrb[56].mxu1 %v5941_v27  ;;  %v2397_v6 = vld [vmem:[#allocation6 + $0x1f8] sm:$0xff]  ;;  %v2407_v27 = vld [vmem:[#allocation6 + $0x248] sm:$0xff]  ;;  %v2406_v58 = vld [vmem:[#allocation6 + $0x240] sm:$0xff] }
 0x298   :  { %v1836_v29 = vmax.f32 %v4564_v57, 0.0  ;;  %v4567_v9 = vadd.f32 %v1323_v61, %v5834_v8  ;;  %v1325_v24 = vpop.f32.mrb[11].mxu0  ;;  %2564 = vmatprep.mubr.f32.mxu1 %v6259_v0  ;;  %4314 = vmatpush1.bf16.msra.mxu1 %v4313_v41  ;;  %v4321_v41 = vpack.c.bf16 %v2386_v40, %v2376_v4  ;;  %v4323_v44 = vpack.c.bf16 %v2407_v27, %v2397_v6  ;;  %v2426_v4 = vld [vmem:[#allocation6 + $0x2e0] sm:$0xff]  ;;  %v2447_v6 = vld [vmem:[#allocation6 + $0x388] sm:$0xff] }
 0x299   :  { %v1837_v1 = vmax.f32 %v4566_v47, 0.0  ;;  %v4569_v55 = vadd.f32 %v1325_v24, %v5836_v10  ;;  %4316 = vmatprep.subr.bf16.mxu1 %v4315_v62  ;;  %v2417_v47 = vld [vmem:[#allocation6 + $0x298] sm:$0xff] }
 0x29a   :  { %v1838_v2 = vmax.f32 %v1814_v5, %v1836_v29  ;;  %v4568_v8 = vadd.f32 %v4567_v9, %v5923_v63  ;;  %v2427_v5 = vld [vmem:[#allocation6 + $0x2e8] sm:$0xff] }
 0x29b   :  { %v1839_v3 = vmax.f32 %v1815_v54, %v1837_v1  ;;  %v1329_v57 = vpop.f32.mrb[12].mxu0  ;;  %v4570_v10 = vadd.f32 %v4569_v55, %v5928_v31  ;;  %v4327_v55 = vpack.c.bf16 %v2427_v5, %v2417_v47  ;;  %v2457_v47 = vld [vmem:[#allocation6 + $0x3d8] sm:$0xff]  ;;  %v2467_v5 = vld [vmem:[#allocation6 + $0x428] sm:$0xff] }
 0x29c   :  { %v4571_v61 = vadd.f32 %v1329_v57, %v5838_v11  ;;  %v1331_v25 = vpop.f32.mrb[13].mxu0  ;;  %4318 = vmatpush1.bf16.msra.mxu1 %v4317_v7  ;;  %v1862_v9 = vmax.f32 %v4568_v8, 0.0 }
 0x29d   :  { %v5953_v59 = vmax.f32 %v1838_v2, %v1839_v3  ;;  %v4573_v62 = vadd.f32 %v1331_v25, %v5840_v56  ;;  %4320 = vmatprep.subr.bf16.mxu1 %v4319_v28  ;;  %v4325_v56 = vpack.c.bf16 %v2406_v58, %v2396_v43  ;;  %v1863_v25 = vmax.f32 %v4570_v10, 0.0  ;;  %v2416_v28 = vld [vmem:[#allocation6 + $0x290] sm:$0xff]  ;;  %v2437_v2 = vld [vmem:[#allocation6 + $0x338] sm:$0xff]  ;;  %v2446_v58 = vld [vmem:[#allocation6 + $0x380] sm:$0xff] }
 0x29e   :  { %v4572_v60 = vadd.f32 %v4571_v61, %v5923_v63  ;;  %v2436_v43 = vld [vmem:[#allocation6 + $0x330] sm:$0xff] }
 0x29f   :  { %v4574_v29 = vadd.f32 %v4573_v62, %v5928_v31  ;;  %v1335_v11 = vpop.f32.mrb[14].mxu0  ;;  %2565 = vmatmul.mubr.f32.gmra.mrb[58].mxu1 %v5953_v59 }
 0x2a0   :  { %v1884_v24 = vmax.f32 %v4572_v60, 0.0  ;;  %v4575_v7 = vadd.f32 %v1335_v11, %v5842_v12  ;;  %v1337_v54 = vpop.f32.mrb[15].mxu0  ;;  %2570 = vmatprep.mubr.f32.mxu1 %v6259_v0  ;;  %4322 = vmatpush1.bf16.msra.mxu1 %v4321_v41  ;;  %v4329_v41 = vpack.c.bf16 %v2426_v4, %v2416_v28  ;;  %v2477_v4 = vld [vmem:[#allocation6 + $0x478] sm:$0xff] }
 0x2a1   :  { %v1885_v27 = vmax.f32 %v4574_v29, 0.0  ;;  %v4577_v1 = vadd.f32 %v1337_v54, %v5844_v13  ;;  %4324 = vmatprep.subr.bf16.mxu1 %v4323_v44  ;;  %v4331_v44 = vpack.c.bf16 %v2447_v6, %v2437_v2 }
 0x2a2   :  { %v1886_v40 = vmax.f32 %v1862_v9, %v1884_v24  ;;  %v4576_v12 = vadd.f32 %v4575_v7, %v5923_v63 }
 0x2a3   :  { %v1887_v3 = vmax.f32 %v1863_v25, %v1885_v27  ;;  %v1341_v57 = vpop.f32.mrb[16].mxu0  ;;  %v4578_v13 = vadd.f32 %v4577_v1, %v5928_v31  ;;  %v4335_v27 = vpack.c.bf16 %v2467_v5, %v2457_v47  ;;  %v2456_v1 = vld [vmem:[#allocation6 + $0x3d0] sm:$0xff] }
 0x2a4   :  { %v4579_v8 = vadd.f32 %v1341_v57, %v5846_v14  ;;  %v1343_v61 = vpop.f32.mrb[17].mxu0  ;;  %4326 = vmatpush1.bf16.msra.mxu1 %v4325_v56  ;;  %v1910_v11 = vmax.f32 %v4576_v12, 0.0 }
 0x2a5   :  { %v5965_v10 = vmax.f32 %v1886_v40, %v1887_v3  ;;  %v4581_v62 = vadd.f32 %v1343_v61, %v5848_v15  ;;  %4328 = vmatprep.subr.bf16.mxu1 %v4327_v55  ;;  %v4333_v15 = vpack.c.bf16 %v2446_v58, %v2436_v43  ;;  %v1911_v54 = vmax.f32 %v4578_v13, 0.0  ;;  %v2466_v55 = vld [vmem:[#allocation6 + $0x420] sm:$0xff]  ;;  %v2487_v40 = vld [vmem:[#allocation6 + $0x4c8] sm:$0xff]  ;;  %v2476_v13 = vld [vmem:[#allocation6 + $0x470] sm:$0xff] }
 0x2a6   :  { %v4580_v60 = vadd.f32 %v4579_v8, %v5923_v63  ;;  %v4337_v12 = vpack.c.bf16 %v2466_v55, %v2456_v1  ;;  %v2339_v43 = vld [vmem:[#allocation6 + $0x28] sm:$0xff]  ;;  %v2349_v58 = vld [vmem:[#allocation6 + $0x78] sm:$0xff] }
 0x2a7   :  { %v4582_v29 = vadd.f32 %v4581_v62, %v5928_v31  ;;  %v1347_v14 = vpop.f32.mrb[18].mxu0  ;;  %2571 = vmatmul.mubr.f32.gmra.mrb[60].mxu1 %v5965_v10  ;;  %v2486_v62 = vld [vmem:[#allocation6 + $0x4c0] sm:$0xff] }
 0x2a8   :  { %v1932_v9 = vmax.f32 %v4580_v60, 0.0  ;;  %v4583_v24 = vadd.f32 %v1347_v14, %v5850_v16  ;;  %v1349_v7 = vpop.f32.mrb[19].mxu0  ;;  %2576 = vmatprep.mubr.f32.mxu1 %v6259_v0  ;;  %4330 = vmatpush1.bf16.msra.mxu1 %v4329_v41  ;;  %v4339_v41 = vpack.c.bf16 %v2487_v40, %v2477_v4 }
 0x2a9   :  { %v1933_v56 = vmax.f32 %v4582_v29, 0.0  ;;  %v4585_v25 = vadd.f32 %v1349_v7, %v5852_v17  ;;  %4332 = vmatprep.subr.bf16.mxu1 %v4331_v44  ;;  %v4343_v7 = vpack.c.bf16 %v2349_v58, %v2339_v43 }
 0x2aa   :  { %v1934_v28 = vmax.f32 %v1910_v11, %v1932_v9  ;;  %v4584_v16 = vadd.f32 %v4583_v24, %v5923_v63 }
 0x2ab   :  { %v1935_v2 = vmax.f32 %v1911_v54, %v1933_v56  ;;  %v1353_v6 = vpop.f32.mrb[20].mxu0  ;;  %v4586_v17 = vadd.f32 %v4585_v25, %v5928_v31 }
 0x2ac   :  { %v4587_v3 = vadd.f32 %v1353_v6, %v5854_v18  ;;  %v1355_v57 = vpop.f32.mrb[21].mxu0  ;;  %4334 = vmatpush1.bf16.msra.mxu1 %v4333_v15  ;;  %v1958_v47 = vmax.f32 %v4584_v16, 0.0 }
 0x2ad   :  { %v5977_v8 = vmax.f32 %v1934_v28, %v1935_v2  ;;  %v4589_v61 = vadd.f32 %v1355_v57, %v5856_v20  ;;  %4336 = vmatprep.subr.bf16.mxu1 %v4335_v27  ;;  %v4341_v20 = vpack.c.bf16 %v2486_v62, %v2476_v13  ;;  %v1959_v11 = vmax.f32 %v4586_v17, 0.0 }
 0x2ae   :  { %v4588_v44 = vadd.f32 %v4587_v3, %v5923_v63 }
 0x2af   :  { %v4590_v60 = vadd.f32 %v4589_v61, %v5928_v31  ;;  %v1359_v18 = vpop.f32.mrb[22].mxu0  ;;  %2577 = vmatmul.mubr.f32.gmra.mrb[62].mxu1 %v5977_v8 }
 0x2b0   :  { %v1980_v5 = vmax.f32 %v4588_v44, 0.0  ;;  %v4591_v29 = vadd.f32 %v1359_v18, %v5858_v21  ;;  %v1361_v14 = vpop.f32.mrb[23].mxu0  ;;  %2582 = vmatprep.mubr.f32.mxu1 %v6259_v0  ;;  %4338 = vmatpush1.bf16.msra.mxu1 %v4337_v12 }
 0x2b1   :  { %v1981_v9 = vmax.f32 %v4590_v60, 0.0  ;;  %v4593_v24 = vadd.f32 %v1361_v14, %v5860_v22  ;;  %4340 = vmatprep.subr.bf16.mxu1 %v4339_v41 }
 0x2b2   :  { %v1982_v15 = vmax.f32 %v1958_v47, %v1980_v5  ;;  %v4592_v25 = vadd.f32 %v4591_v29, %v5923_v63 }
 0x2b3   :  { %v1983_v54 = vmax.f32 %v1959_v11, %v1981_v9  ;;  %v1365_v56 = vpop.f32.mrb[24].mxu0  ;;  %v4594_v55 = vadd.f32 %v4593_v24, %v5928_v31 }
 0x2b4   :  { %v4595_v27 = vadd.f32 %v1365_v56, %v5862_v23  ;;  %v1367_v1 = vpop.f32.mrb[25].mxu0  ;;  %4342 = vmatpush1.bf16.msra.mxu1 %v4341_v20  ;;  %v2006_v2 = vmax.f32 %v4592_v25, 0.0 }
 0x2b5   :  { %v5989_v21 = vmax.f32 %v1982_v15, %v1983_v54  ;;  %v4597_v28 = vadd.f32 %v1367_v1, %v5864_v19  ;;  %4344 = vmatprep.subr.bf16.mxu1 %v4343_v7  ;;  %v2007_v3 = vmax.f32 %v4594_v55, 0.0 }
 0x2b6   :  { %v4596_v22 = vadd.f32 %v4595_v27, %v5923_v63 }
 0x2b7   :  { %v4598_v4 = vadd.f32 %v4597_v28, %v5928_v31  ;;  %v1371_v40 = vpop.f32.mrb[26].mxu0  ;;  %2583 = vmatmul.mubr.f32.gmra.mrb[64].mxu1 %v5989_v21 }
 0x2b8   :  { %v2028_v6 = vmax.f32 %v4596_v22, 0.0  ;;  %v4599_v23 = vadd.f32 %v1371_v40, %v5866_v26  ;;  %v1373_v16 = vpop.f32.mrb[27].mxu0  ;;  %2588 = vmatprep.mubr.f32.mxu1 %v6259_v0 }
 0x2b9   :  { %v2029_v57 = vmax.f32 %v4598_v4, 0.0  ;;  %v4601_v12 = vadd.f32 %v1373_v16, %v5868_v30 }
 0x2ba   :  { %v2030_v19 = vmax.f32 %v2006_v2, %v2028_v6  ;;  %v4600_v41 = vadd.f32 %v4599_v23, %v5923_v63 }
 0x2bb   :  { %v2031_v17 = vmax.f32 %v2007_v3, %v2029_v57  ;;  %v1377_v61 = vpop.f32.mrb[28].mxu0  ;;  %v4602_v43 = vadd.f32 %v4601_v12, %v5928_v31 }
 0x2bc   :  { %v4603_v13 = vadd.f32 %v1377_v61, %v5870_v32  ;;  %v1379_v62 = vpop.f32.mrb[29].mxu0  ;;  %v2054_v30 = vmax.f32 %v4600_v41, 0.0 }
 0x2bd   :  { %v6001_v44 = vmax.f32 %v2030_v19, %v2031_v17  ;;  %v4605_v26 = vadd.f32 %v1379_v62, %v5872_v33  ;;  %v2055_v32 = vmax.f32 %v4602_v43, 0.0 }
 0x2be   :  { %v4604_v58 = vadd.f32 %v4603_v13, %v5923_v63 }
 0x2bf   :  { %v4606_v60 = vadd.f32 %v4605_v26, %v5928_v31  ;;  %v1383_v18 = vpop.f32.mrb[30].mxu0  ;;  %2589 = vmatmul.mubr.f32.gmra.mrb[66].mxu1 %v6001_v44 }
 0x2c0   :  { %v2076_v47 = vmax.f32 %v4604_v58, 0.0  ;;  %v4607_v5 = vadd.f32 %v1383_v18, %v5874_v34  ;;  %v1385_v29 = vpop.f32.mrb[31].mxu0  ;;  %2594 = vmatprep.mubr.f32.mxu1 %v6259_v0 }
 0x2c1   :  { %v2077_v14 = vmax.f32 %v4606_v60, 0.0  ;;  %v4609_v20 = vadd.f32 %v1385_v29, %v5876_v35 }
 0x2c2   :  { %v2078_v11 = vmax.f32 %v2054_v30, %v2076_v47  ;;  %v4608_v24 = vadd.f32 %v4607_v5, %v5923_v63 }
 0x2c3   :  { %v2079_v33 = vmax.f32 %v2055_v32, %v2077_v14  ;;  %v1389_v9 = vpop.f32.mrb[32].mxu0  ;;  %v4610_v56 = vadd.f32 %v4609_v20, %v5928_v31 }
 0x2c4   :  { %v4611_v7 = vadd.f32 %v1389_v9, %v5878_v36  ;;  %v1391_v15 = vpop.f32.mrb[33].mxu0  ;;  %v2102_v35 = vmax.f32 %v4608_v24, 0.0 }
 0x2c5   :  { %v6013_v54 = vmax.f32 %v2078_v11, %v2079_v33  ;;  %v4613_v34 = vadd.f32 %v1391_v15, %v5880_v37  ;;  %v2103_v36 = vmax.f32 %v4610_v56, 0.0 }
 0x2c6   :  { %v4612_v25 = vadd.f32 %v4611_v7, %v5923_v63 }
 0x2c7   :  { %v4614_v27 = vadd.f32 %v4613_v34, %v5928_v31  ;;  %v1395_v1 = vpop.f32.mrb[34].mxu0  ;;  %2595 = vmatmul.mubr.f32.gmra.mrb[68].mxu1 %v6013_v54 }
 0x2c8   :  { %v2124_v55 = vmax.f32 %v4612_v25, 0.0  ;;  %v4615_v28 = vadd.f32 %v1395_v1, %v5882_v38  ;;  %v1397_v22 = vpop.f32.mrb[35].mxu0  ;;  %2600 = vmatprep.mubr.f32.mxu1 %v6259_v0 }
 0x2c9   :  { %v2125_v4 = vmax.f32 %v4614_v27, 0.0  ;;  %v4617_v40 = vadd.f32 %v1397_v22, %v5884_v39 }
 0x2ca   :  { %v2126_v2 = vmax.f32 %v2102_v35, %v2124_v55  ;;  %v4616_v23 = vadd.f32 %v4615_v28, %v5923_v63 }
 0x2cb   :  { %v2127_v37 = vmax.f32 %v2103_v36, %v2125_v4  ;;  %v1401_v6 = vpop.f32.mrb[36].mxu0  ;;  %v4618_v12 = vadd.f32 %v4617_v40, %v5928_v31  ;;  %v6261_v40 = vld [vmem:[#allocation17_spill] sm:$0xff] }
 0x2cc   :  { %v4619_v16 = vadd.f32 %v1401_v6, %v5886_v42  ;;  %v1403_v3 = vpop.f32.mrb[37].mxu0  ;;  %v2150_v39 = vmax.f32 %v4616_v23, 0.0  ;;  %v6262_v23 = vld [vmem:[#allocation18_spill] sm:$0xff] }
 0x2cd   :  { %v6025_v57 = vmax.f32 %v2126_v2, %v2127_v37  ;;  %v4621_v38 = vadd.f32 %v1403_v3, %v5888_v45  ;;  %v2151_v42 = vmax.f32 %v4618_v12, 0.0 }
 0x2ce   :  { %v4620_v19 = vadd.f32 %v4619_v16, %v5923_v63 }
 0x2cf   :  { %v4622_v17 = vadd.f32 %v4621_v38, %v5928_v31  ;;  %v1407_v61 = vpop.f32.mrb[38].mxu0  ;;  %2601 = vmatmul.mubr.f32.gmra.mrb[70].mxu1 %v6025_v57 }
 0x2d0   :  { %v2172_v41 = vmax.f32 %v4620_v19, 0.0  ;;  %v4623_v13 = vadd.f32 %v1407_v61, %v5890_v46  ;;  %v1409_v62 = vpop.f32.mrb[39].mxu0  ;;  %2606 = vmatprep.mubr.f32.mxu1 %v6259_v0 }
 0x2d1   :  { %v2173_v43 = vmax.f32 %v4622_v17, 0.0  ;;  %v4625_v26 = vadd.f32 %v1409_v62, %v5892_v48  ;;  %v6263_v17 = vld [vmem:[#allocation19_spill] sm:$0xff]  ;;  %v6264_v62 = vld [vmem:[#allocation20_spill] sm:$0xff] }
 0x2d2   :  { %v2174_v58 = vmax.f32 %v2150_v39, %v2172_v41  ;;  %v4624_v18 = vadd.f32 %v4623_v13, %v5923_v63 }
 0x2d3   :  { %v2175_v45 = vmax.f32 %v2151_v42, %v2173_v43  ;;  %v1413_v60 = vpop.f32.mrb[40].mxu0  ;;  %v4626_v29 = vadd.f32 %v4625_v26, %v5928_v31 }
 0x2d4   :  { %v4627_v30 = vadd.f32 %v1413_v60, %v5894_v49  ;;  %v1415_v47 = vpop.f32.mrb[41].mxu0  ;;  %v2198_v48 = vmax.f32 %v4624_v18, 0.0 }
 0x2d5   :  { %v6037_v5 = vmax.f32 %v2174_v58, %v2175_v45  ;;  %v4629_v46 = vadd.f32 %v1415_v47, %v5896_v50  ;;  %v2199_v49 = vmax.f32 %v4626_v29, 0.0 }
 0x2d6   :  { %v4628_v32 = vadd.f32 %v4627_v30, %v5923_v63 }
 0x2d7   :  { %v4630_v14 = vadd.f32 %v4629_v46, %v5928_v31  ;;  %v1419_v20 = vpop.f32.mrb[42].mxu0  ;;  %2607 = vmatmul.mubr.f32.gmra.mrb[72].mxu1 %v6037_v5  ;;  %v2338_v46 = vld [vmem:[#allocation6 + $0x20] sm:$0xff] }
 0x2d8   :  { %v2220_v11 = vmax.f32 %v4628_v32, 0.0  ;;  %v4631_v33 = vadd.f32 %v1419_v20, %v5898_v51  ;;  %v1421_v9 = vpop.f32.mrb[43].mxu0  ;;  %2612 = vmatprep.mubr.f32.mxu1 %v6259_v0  ;;  %v6260_v51 = vld [vmem:[#allocation16_spill] sm:$0xff]  ;;  %v2348_v32 = vld [vmem:[#allocation6 + $0x70] sm:$0xff]  ;;  %v2369_v20 = vld [vmem:[#allocation6 + $0x118] sm:$0xff] }
 0x2d9   :  { %v2221_v24 = vmax.f32 %v4630_v14, 0.0  ;;  %v4633_v7 = vadd.f32 %v1421_v9, %v5900_v52  ;;  %v2359_v14 = vld [vmem:[#allocation6 + $0xc8] sm:$0xff]  ;;  %v2389_v9 = vld [vmem:[#allocation6 + $0x1b8] sm:$0xff] }
 0x2da   :  { %v2222_v15 = vmax.f32 %v2198_v48, %v2220_v11  ;;  %v4632_v34 = vadd.f32 %v4631_v33, %v5923_v63  ;;  %v2358_v48 = vld [vmem:[#allocation6 + $0xc0] sm:$0xff]  ;;  %v2368_v11 = vld [vmem:[#allocation6 + $0x110] sm:$0xff]  ;;  %v2379_v33 = vld [vmem:[#allocation6 + $0x168] sm:$0xff] }
 0x2db   :  { %v2223_v50 = vmax.f32 %v2199_v49, %v2221_v24  ;;  %v1425_v56 = vpop.f32.mrb[44].mxu0  ;;  %v4634_v35 = vadd.f32 %v4633_v7, %v5928_v31  ;;  %v6265_v49 = vld [vmem:[#allocation22_spill] sm:$0xff]  ;;  %v4349_v24 = vpack.c.bf16 %v2368_v11, %v2358_v48  ;;  %v4351_v7 = vpack.c.bf16 %v2389_v9, %v2379_v33  ;;  %v2391_v48 = vld [vmem:[#allocation6 + $0x1c8] sm:$0xff] }
 0x2dc   :  { %v4635_v25 = vadd.f32 %v1425_v56, %v5902_v53  ;;  %v1427_v27 = vpop.f32.mrb[45].mxu0  ;;  %v2246_v52 = vmax.f32 %v4632_v34, 0.0  ;;  %v2399_v56 = vld [vmem:[#allocation6 + $0x208] sm:$0xff]  ;;  %v2409_v34 = vld [vmem:[#allocation6 + $0x258] sm:$0xff]  ;;  %v2380_v9 = vld [vmem:[#allocation6 + $0x170] sm:$0xff] }
 0x2dd   :  { %v6049_v1 = vmax.f32 %v2222_v15, %v2223_v50  ;;  %v4637_v55 = vadd.f32 %v1427_v27, %v6260_v51  ;;  %v2247_v53 = vmax.f32 %v4634_v35, 0.0  ;;  %v2378_v15 = vld [vmem:[#allocation6 + $0x160] sm:$0xff]  ;;  %v2388_v50 = vld [vmem:[#allocation6 + $0x1b0] sm:$0xff]  ;;  %v4355_v27 = vpack.c.bf16 %v2409_v34, %v2399_v56 }
 0x2de   :  { %v4636_v28 = vadd.f32 %v4635_v25, %v5923_v63  ;;  %v4353_v25 = vpack.c.bf16 %v2388_v50, %v2378_v15  ;;  %v2398_v35 = vld [vmem:[#allocation6 + $0x200] sm:$0xff]  ;;  %v2408_v51 = vld [vmem:[#allocation6 + $0x250] sm:$0xff]  ;;  %v2411_v15 = vld [vmem:[#allocation6 + $0x268] sm:$0xff] }
 0x2df   :  { %v4638_v22 = vadd.f32 %v4637_v55, %v5928_v31  ;;  %v1431_v36 = vpop.f32.mrb[46].mxu0  ;;  %2613 = vmatmul.mubr.f32.gmra.mrb[74].mxu1 %v6049_v1  ;;  %v2419_v55 = vld [vmem:[#allocation6 + $0x2a8] sm:$0xff]  ;;  %v2400_v34 = vld [vmem:[#allocation6 + $0x210] sm:$0xff] }
 0x2e0   :  { %v2268_v4 = vmax.f32 %v4636_v28, 0.0  ;;  %v4639_v2 = vadd.f32 %v1431_v36, %v6261_v40  ;;  %v1433_v37 = vpop.f32.mrb[47].mxu0  ;;  %2618 = vmatprep.mubr.f32.mxu1 %v6259_v0  ;;  %v2429_v28 = vld [vmem:[#allocation6 + $0x2f8] sm:$0xff]  ;;  %v2439_v40 = vld [vmem:[#allocation6 + $0x348] sm:$0xff] }
 0x2e1   :  { %v2269_v6 = vmax.f32 %v4638_v22, 0.0  ;;  %v4641_v16 = vadd.f32 %v1433_v37, %v6262_v23  ;;  %v4357_v22 = vpack.c.bf16 %v2408_v51, %v2398_v35  ;;  %v4359_v36 = vpack.c.bf16 %v2429_v28, %v2419_v55  ;;  %v2448_v23 = vld [vmem:[#allocation6 + $0x390] sm:$0xff]  ;;  %v2431_v35 = vld [vmem:[#allocation6 + $0x308] sm:$0xff] }
 0x2e2   :  { %v2270_v3 = vmax.f32 %v2246_v52, %v2268_v4  ;;  %v4640_v19 = vadd.f32 %v4639_v2, %v5923_v63  ;;  %v2418_v52 = vld [vmem:[#allocation6 + $0x2a0] sm:$0xff]  ;;  %v2428_v4 = vld [vmem:[#allocation6 + $0x2f0] sm:$0xff]  ;;  %v2449_v2 = vld [vmem:[#allocation6 + $0x398] sm:$0xff] }
 0x2e3   :  { %v2271_v12 = vmax.f32 %v2247_v53, %v2269_v6  ;;  %v1437_v38 = vpop.f32.mrb[48].mxu0  ;;  %v4642_v13 = vadd.f32 %v4641_v16, %v5928_v31  ;;  %v4361_v37 = vpack.c.bf16 %v2428_v4, %v2418_v52  ;;  %v4363_v53 = vpack.c.bf16 %v2449_v2, %v2439_v40  ;;  %v2438_v6 = vld [vmem:[#allocation6 + $0x340] sm:$0xff]  ;;  %v2459_v16 = vld [vmem:[#allocation6 + $0x3e8] sm:$0xff]  ;;  %v2420_v28 = vld [vmem:[#allocation6 + $0x2b0] sm:$0xff] }
 0x2e4   :  { %v4643_v61 = vadd.f32 %v1437_v38, %v6263_v17  ;;  %v1439_v39 = vpop.f32.mrb[49].mxu0  ;;  %v2294_v58 = vmax.f32 %v4640_v19, 0.0  ;;  %v2458_v19 = vld [vmem:[#allocation6 + $0x3e0] sm:$0xff]  ;;  %v2468_v17 = vld [vmem:[#allocation6 + $0x430] sm:$0xff]  ;;  %v2451_v52 = vld [vmem:[#allocation6 + $0x3a8] sm:$0xff] }
 0x2e5   :  { %v6061_v41 = vmax.f32 %v2270_v3, %v2271_v12  ;;  %v4645_v42 = vadd.f32 %v1439_v39, %v6264_v62  ;;  %v2295_v60 = vmax.f32 %v4642_v13, 0.0  ;;  %v2469_v3 = vld [vmem:[#allocation6 + $0x438] sm:$0xff]  ;;  %v4365_v12 = vpack.c.bf16 %v2448_v23, %v2438_v6  ;;  %v2440_v2 = vld [vmem:[#allocation6 + $0x350] sm:$0xff]  ;;  %v2471_v6 = vld [vmem:[#allocation6 + $0x448] sm:$0xff] }
 0x2e6   :  { %v4644_v43 = vadd.f32 %v4643_v61, %v5923_v63  ;;  %v4345_v63 = vpack.c.bf16 %v2348_v32, %v2338_v46  ;;  %v4367_v38 = vpack.c.bf16 %v2469_v3, %v2459_v16  ;;  %v2479_v61 = vld [vmem:[#allocation6 + $0x488] sm:$0xff]  ;;  %v2489_v39 = vld [vmem:[#allocation6 + $0x4d8] sm:$0xff]  ;;  %v4369_v13 = vpack.c.bf16 %v2468_v17, %v2458_v19  ;;  %v2460_v3 = vld [vmem:[#allocation6 + $0x3f0] sm:$0xff] }
 0x2e7   :  { %v4646_v26 = vadd.f32 %v4645_v42, %v5928_v31  ;;  %2619 = vmatmul.mubr.f32.gmra.mrb[76].mxu1 %v6061_v41  ;;  %v4347_v31 = vpack.c.bf16 %v2369_v20, %v2359_v14  ;;  %v4371_v62 = vpack.c.bf16 %v2489_v39, %v2479_v61  ;;  %v2478_v42 = vld [vmem:[#allocation6 + $0x480] sm:$0xff]  ;;  %v2371_v46 = vld [vmem:[#allocation6 + $0x128] sm:$0xff]  ;;  %v2360_v20 = vld [vmem:[#allocation6 + $0xd0] sm:$0xff] }
 0x2e8   :  { %v2316_v45 = vmax.f32 %v4644_v43, 0.0  ;;  %2624 = vmatprep.mubr.f32.mxu1 %v6259_v0  ;;  %v2488_v43 = vld [vmem:[#allocation6 + $0x4d0] sm:$0xff]  ;;  %v2491_v19 = vld [vmem:[#allocation6 + $0x4e8] sm:$0xff] }
 0x2e9   :  { %v2317_v18 = vmax.f32 %v4646_v26, 0.0  ;;  %v2341_v26 = vld [vmem:[#allocation6 + $0x38] sm:$0xff]  ;;  %v2480_v39 = vld [vmem:[#allocation6 + $0x490] sm:$0xff] }
 0x2ea   :  { %v2318_v30 = vmax.f32 %v2294_v58, %v2316_v45  ;;  %v2351_v58 = vld [vmem:[#allocation6 + $0x88] sm:$0xff]  ;;  %v4373_v45 = vpack.c.bf16 %v2488_v43, %v2478_v42  ;;  %v2353_v42 = vld [vmem:[#allocation6 + $0x98] sm:$0xff] }
 0x2eb   :  { %v2319_v47 = vmax.f32 %v2295_v60, %v2317_v18  ;;  %v4375_v60 = vpack.c.bf16 %v2351_v58, %v2341_v26  ;;  %v2340_v18 = vld [vmem:[#allocation6 + $0x30] sm:$0xff]  ;;  %v2342_v58 = vld [vmem:[#allocation6 + $0x40] sm:$0xff] }
 0x2ed   :  { %v6069_v29 = vmax.f32 %v2318_v30, %v2319_v47  ;;  %v2350_v30 = vld [vmem:[#allocation6 + $0x80] sm:$0xff]  ;;  %v2361_v47 = vld [vmem:[#allocation6 + $0xd8] sm:$0xff] }
 0x2ee   :  { %v4377_v32 = vpack.c.bf16 %v2350_v30, %v2340_v18  ;;  %v4379_v14 = vpack.c.bf16 %v2371_v46, %v2361_v47  ;;  %v2373_v18 = vld [vmem:[#allocation6 + $0x138] sm:$0xff]  ;;  %v2362_v46 = vld [vmem:[#allocation6 + $0xe0] sm:$0xff] }
 0x2ef   :  { %2625 = vmatmul.mubr.f32.gmra.mrb[78].mxu1 %v6069_v29 }
 0x2f0   :  { %2695 = vmatprep.mubr.f32.mxu1 %v6259_v0 }
 0x2f3   :  { %2696 = vmatmul.mubr.f32.vlgmr.msra.gmra.mrb[80].mxu1 %v6265_v49 }
 0x2f4   :  { %4346 = vmatpush1.bf16.msra.mxu1 %v4345_v63  ;;  %2701 = vmatprep.mubr.f32.mxu1 %v6259_v0  ;;  %v2370_v63 = vld [vmem:[#allocation6 + $0x120] sm:$0xff] }
 0x2f5   :  { %4348 = vmatprep.subr.bf16.mxu1 %v4347_v31  ;;  %v2381_v31 = vld [vmem:[#allocation6 + $0x178] sm:$0xff]  ;;  %v4381_v11 = vpack.c.bf16 %v2370_v63, %v2360_v20 }
 0x2f6   :  { %v4383_v33 = vpack.c.bf16 %v2391_v48, %v2381_v31  ;;  %v2393_v20 = vld [vmem:[#allocation6 + $0x1d8] sm:$0xff]  ;;  %v2382_v48 = vld [vmem:[#allocation6 + $0x180] sm:$0xff] }
 0x2f7   :  { %2702 = vmatmul.mubr.f32.gmra.mrb[56].mxu1 %v5953_v59 }
 0x2f8   :  { %2707 = vmatprep.mubr.f32.mxu1 %v6259_v0  ;;  %4350 = vmatpush1.bf16.msra.mxu1 %v4349_v24  ;;  %v2390_v24 = vld [vmem:[#allocation6 + $0x1c0] sm:$0xff] }
 0x2f9   :  { %4352 = vmatprep.subr.bf16.mxu1 %v4351_v7  ;;  %v2401_v7 = vld [vmem:[#allocation6 + $0x218] sm:$0xff]  ;;  %v4385_v50 = vpack.c.bf16 %v2390_v24, %v2380_v9 }
 0x2fa   :  { %v4387_v56 = vpack.c.bf16 %v2411_v15, %v2401_v7  ;;  %v2413_v9 = vld [vmem:[#allocation6 + $0x278] sm:$0xff]  ;;  %v2402_v15 = vld [vmem:[#allocation6 + $0x220] sm:$0xff] }
 0x2fb   :  { %2708 = vmatmul.mubr.f32.gmra.mrb[58].mxu1 %v5965_v10 }
 0x2fc   :  { %2713 = vmatprep.mubr.f32.mxu1 %v6259_v0  ;;  %4354 = vmatpush1.bf16.msra.mxu1 %v4353_v25  ;;  %v2410_v25 = vld [vmem:[#allocation6 + $0x260] sm:$0xff] }
 0x2fd   :  { %4356 = vmatprep.subr.bf16.mxu1 %v4355_v27  ;;  %v2421_v27 = vld [vmem:[#allocation6 + $0x2b8] sm:$0xff]  ;;  %v4389_v51 = vpack.c.bf16 %v2410_v25, %v2400_v34 }
 0x2fe   :  { %v4391_v55 = vpack.c.bf16 %v2431_v35, %v2421_v27  ;;  %v2433_v34 = vld [vmem:[#allocation6 + $0x318] sm:$0xff]  ;;  %v2422_v35 = vld [vmem:[#allocation6 + $0x2c0] sm:$0xff] }
 0x2ff   :  { %2714 = vmatmul.mubr.f32.gmra.mrb[60].mxu1 %v5977_v8 }
 0x300   :  { %2719 = vmatprep.mubr.f32.mxu1 %v6259_v0  ;;  %4358 = vmatpush1.bf16.msra.mxu1 %v4357_v22  ;;  %v2430_v22 = vld [vmem:[#allocation6 + $0x300] sm:$0xff] }
 0x301   :  { %4360 = vmatprep.subr.bf16.mxu1 %v4359_v36  ;;  %v2441_v36 = vld [vmem:[#allocation6 + $0x358] sm:$0xff]  ;;  %v4393_v4 = vpack.c.bf16 %v2430_v22, %v2420_v28 }
 0x302   :  { %v4395_v40 = vpack.c.bf16 %v2451_v52, %v2441_v36  ;;  %v2453_v28 = vld [vmem:[#allocation6 + $0x3b8] sm:$0xff]  ;;  %v2442_v52 = vld [vmem:[#allocation6 + $0x360] sm:$0xff] }
 0x303   :  { %2720 = vmatmul.mubr.f32.gmra.mrb[62].mxu1 %v5989_v21 }
 0x304   :  { %2725 = vmatprep.mubr.f32.mxu1 %v6259_v0  ;;  %4362 = vmatpush1.bf16.msra.mxu1 %v4361_v37  ;;  %v2450_v37 = vld [vmem:[#allocation6 + $0x3a0] sm:$0xff] }
 0x305   :  { %4364 = vmatprep.subr.bf16.mxu1 %v4363_v53  ;;  %v2461_v53 = vld [vmem:[#allocation6 + $0x3f8] sm:$0xff]  ;;  %v4397_v23 = vpack.c.bf16 %v2450_v37, %v2440_v2 }
 0x306   :  { %v4399_v16 = vpack.c.bf16 %v2471_v6, %v2461_v53  ;;  %v2473_v2 = vld [vmem:[#allocation6 + $0x458] sm:$0xff]  ;;  %v2462_v6 = vld [vmem:[#allocation6 + $0x400] sm:$0xff] }
 0x307   :  { %2726 = vmatmul.mubr.f32.gmra.mrb[64].mxu1 %v6001_v44 }
 0x308   :  { %2731 = vmatprep.mubr.f32.mxu1 %v6259_v0  ;;  %4366 = vmatpush1.bf16.msra.mxu1 %v4365_v12  ;;  %v2470_v12 = vld [vmem:[#allocation6 + $0x440] sm:$0xff] }
 0x309   :  { %4368 = vmatprep.subr.bf16.mxu1 %v4367_v38  ;;  %v2481_v38 = vld [vmem:[#allocation6 + $0x498] sm:$0xff]  ;;  %v4401_v17 = vpack.c.bf16 %v2470_v12, %v2460_v3 }
 0x30a   :  { %v4403_v61 = vpack.c.bf16 %v2491_v19, %v2481_v38  ;;  %v2493_v3 = vld [vmem:[#allocation6 + $0x4f8] sm:$0xff]  ;;  %v2482_v19 = vld [vmem:[#allocation6 + $0x4a0] sm:$0xff] }
 0x30b   :  { %2732 = vmatmul.mubr.f32.gmra.mrb[66].mxu1 %v6013_v54 }
 0x30c   :  { %2737 = vmatprep.mubr.f32.mxu1 %v6259_v0  ;;  %4370 = vmatpush1.bf16.msra.mxu1 %v4369_v13  ;;  %v2490_v13 = vld [vmem:[#allocation6 + $0x4e0] sm:$0xff] }
 0x30d   :  { %4372 = vmatprep.subr.bf16.mxu1 %v4371_v62  ;;  %v2343_v62 = vld [vmem:[#allocation6 + $0x48] sm:$0xff]  ;;  %v4405_v43 = vpack.c.bf16 %v2490_v13, %v2480_v39 }
 0x30e   :  { %v4407_v26 = vpack.c.bf16 %v2353_v42, %v2343_v62 }
 0x30f   :  { %2738 = vmatmul.mubr.f32.gmra.mrb[68].mxu1 %v6025_v57 }
 0x310   :  { %2743 = vmatprep.mubr.f32.mxu1 %v6259_v0  ;;  %4374 = vmatpush1.bf16.msra.mxu1 %v4373_v45  ;;  %v2352_v45 = vld [vmem:[#allocation6 + $0x90] sm:$0xff] }
 0x311   :  { %4376 = vmatprep.subr.bf16.mxu1 %v4375_v60  ;;  %v2363_v60 = vld [vmem:[#allocation6 + $0xe8] sm:$0xff]  ;;  %v4409_v30 = vpack.c.bf16 %v2352_v45, %v2342_v58  ;;  %v3514_v58 = vld [vmem:[#allocation8 + $0x98] sm:$0xff]  ;;  %v3497_v45 = vld [vmem:[#allocation8 + $0x10] sm:$0xff] }
 0x312   :  { %v4411_v47 = vpack.c.bf16 %v2373_v18, %v2363_v60  ;;  %v3498_v60 = vld [vmem:[#allocation8 + $0x18] sm:$0xff] }
 0x313   :  { %2744 = vmatmul.mubr.f32.gmra.mrb[70].mxu1 %v6037_v5  ;;  %v4445_v18 = vpack.c.bf16 %v3498_v60, %v3497_v45 }
 0x314   :  { %2749 = vmatprep.mubr.f32.mxu1 %v6259_v0 }
 0x317   :  { %2750 = vmatmul.mubr.f32.gmra.mrb[82].mxu1 %v6049_v1 }
 0x318   :  { %2755 = vmatprep.mubr.f32.mxu1 %v6259_v0 }
 0x31b   :  { %2756 = vmatmul.mubr.f32.gmra.mrb[84].mxu1 %v6061_v41 }
 0x31c   :  { %2761 = vmatprep.mubr.f32.mxu1 %v6259_v0 }
 0x31f   :  { %2762 = vmatmul.mubr.f32.gmra.mrb[86].mxu1 %v6069_v29 }
 0x320   :  { %2832 = vmatprep.mubr.f32.mxu1 %v6259_v0 }
 0x323   :  { %2833 = vmatmul.mubr.f32.vlgmr.msra.gmra.mrb[88].mxu1 %v6265_v49 }
 0x324   :  { %4378 = vmatpush1.bf16.msra.mxu1 %v4377_v32  ;;  %2838 = vmatprep.mubr.f32.mxu1 %v6259_v0  ;;  %v2372_v32 = vld [vmem:[#allocation6 + $0x130] sm:$0xff] }
 0x325   :  { %4380 = vmatprep.subr.bf16.mxu1 %v4379_v14  ;;  %v2383_v14 = vld [vmem:[#allocation6 + $0x188] sm:$0xff]  ;;  %v4413_v63 = vpack.c.bf16 %v2372_v32, %v2362_v46  ;;  %v3499_v32 = vld [vmem:[#allocation8 + $0x20] sm:$0xff] }
 0x326   :  { %v4415_v31 = vpack.c.bf16 %v2393_v20, %v2383_v14  ;;  %v3500_v14 = vld [vmem:[#allocation8 + $0x28] sm:$0xff] }
 0x327   :  { %2839 = vmatmul.mubr.f32.gmra.mrb[90].mxu1 %v5953_v59  ;;  %v4449_v20 = vpack.c.bf16 %v3500_v14, %v3499_v32 }
 0x328   :  { %2844 = vmatprep.mubr.f32.mxu1 %v6259_v0  ;;  %4382 = vmatpush1.bf16.msra.mxu1 %v4381_v11  ;;  %v2392_v11 = vld [vmem:[#allocation6 + $0x1d0] sm:$0xff] }
 0x329   :  { %4384 = vmatprep.subr.bf16.mxu1 %v4383_v33  ;;  %v2403_v33 = vld [vmem:[#allocation6 + $0x228] sm:$0xff]  ;;  %v4417_v24 = vpack.c.bf16 %v2392_v11, %v2382_v48  ;;  %v3501_v48 = vld [vmem:[#allocation8 + $0x30] sm:$0xff] }
 0x32a   :  { %v4419_v7 = vpack.c.bf16 %v2413_v9, %v2403_v33  ;;  %v3502_v33 = vld [vmem:[#allocation8 + $0x38] sm:$0xff] }
 0x32b   :  { %2845 = vmatmul.mubr.f32.gmra.mrb[56].mxu1 %v5965_v10  ;;  %v4453_v9 = vpack.c.bf16 %v3502_v33, %v3501_v48 }
 0x32c   :  { %2850 = vmatprep.mubr.f32.mxu1 %v6259_v0  ;;  %4386 = vmatpush1.bf16.msra.mxu1 %v4385_v50  ;;  %v2412_v50 = vld [vmem:[#allocation6 + $0x270] sm:$0xff] }
 0x32d   :  { %4388 = vmatprep.subr.bf16.mxu1 %v4387_v56  ;;  %v2423_v56 = vld [vmem:[#allocation6 + $0x2c8] sm:$0xff]  ;;  %v4421_v25 = vpack.c.bf16 %v2412_v50, %v2402_v15  ;;  %v3503_v50 = vld [vmem:[#allocation8 + $0x40] sm:$0xff] }
 0x32e   :  { %v4423_v27 = vpack.c.bf16 %v2433_v34, %v2423_v56  ;;  %v3504_v56 = vld [vmem:[#allocation8 + $0x48] sm:$0xff] }
 0x32f   :  { %2851 = vmatmul.mubr.f32.gmra.mrb[58].mxu1 %v5977_v8 }
 0x330   :  { %2856 = vmatprep.mubr.f32.mxu1 %v6259_v0  ;;  %4390 = vmatpush1.bf16.msra.mxu1 %v4389_v51  ;;  %v2432_v51 = vld [vmem:[#allocation6 + $0x310] sm:$0xff] }
 0x331   :  { %4392 = vmatprep.subr.bf16.mxu1 %v4391_v55  ;;  %v2443_v55 = vld [vmem:[#allocation6 + $0x368] sm:$0xff]  ;;  %v4425_v22 = vpack.c.bf16 %v2432_v51, %v2422_v35  ;;  %v3521_v35 = vld [vmem:[#allocation8 + $0xd0] sm:$0xff]  ;;  %v3522_v51 = vld [vmem:[#allocation8 + $0xd8] sm:$0xff] }
 0x332   :  { %v4427_v36 = vpack.c.bf16 %v2453_v28, %v2443_v55  ;;  %v4459_v28 = vpack.c.bf16 %v3522_v51, %v3521_v35 }
 0x333   :  { %2857 = vmatmul.mubr.f32.gmra.mrb[60].mxu1 %v5989_v21 }
 0x334   :  { %2862 = vmatprep.mubr.f32.mxu1 %v6259_v0  ;;  %4394 = vmatpush1.bf16.msra.mxu1 %v4393_v4  ;;  %v2452_v4 = vld [vmem:[#allocation6 + $0x3b0] sm:$0xff] }
 0x335   :  { %4396 = vmatprep.subr.bf16.mxu1 %v4395_v40  ;;  %v2463_v40 = vld [vmem:[#allocation6 + $0x408] sm:$0xff]  ;;  %v4429_v37 = vpack.c.bf16 %v2452_v4, %v2442_v52 }
 0x336   :  { %v4431_v53 = vpack.c.bf16 %v2473_v2, %v2463_v40  ;;  %v3523_v40 = vld [vmem:[#allocation8 + $0xe0] sm:$0xff]  ;;  %v3524_v2 = vld [vmem:[#allocation8 + $0xe8] sm:$0xff] }
 0x337   :  { %2863 = vmatmul.mubr.f32.gmra.mrb[62].mxu1 %v6001_v44 }
 0x338   :  { %2868 = vmatprep.mubr.f32.mxu1 %v6259_v0  ;;  %4398 = vmatpush1.bf16.msra.mxu1 %v4397_v23  ;;  %v2472_v23 = vld [vmem:[#allocation6 + $0x450] sm:$0xff] }
 0x339   :  { %4400 = vmatprep.subr.bf16.mxu1 %v4399_v16  ;;  %v2483_v16 = vld [vmem:[#allocation6 + $0x4a8] sm:$0xff]  ;;  %v4433_v12 = vpack.c.bf16 %v2472_v23, %v2462_v6  ;;  %v3507_v6 = vld [vmem:[#allocation8 + $0x60] sm:$0xff] }
 0x33a   :  { %v4435_v38 = vpack.c.bf16 %v2493_v3, %v2483_v16  ;;  %v3508_v23 = vld [vmem:[#allocation8 + $0x68] sm:$0xff] }
 0x33b   :  { %2869 = vmatmul.mubr.f32.gmra.mrb[64].mxu1 %v6013_v54  ;;  %v4465_v3 = vpack.c.bf16 %v3508_v23, %v3507_v6 }
 0x33c   :  { %2874 = vmatprep.mubr.f32.mxu1 %v6259_v0  ;;  %4402 = vmatpush1.bf16.msra.mxu1 %v4401_v17  ;;  %v2492_v17 = vld [vmem:[#allocation6 + $0x4f0] sm:$0xff] }
 0x33d   :  { %4404 = vmatprep.subr.bf16.mxu1 %v4403_v61  ;;  %v4437_v61 = vpack.c.bf16 %v2492_v17, %v2482_v19 }
 0x33f   :  { %2875 = vmatmul.mubr.f32.gmra.mrb[66].mxu1 %v6025_v57 }
 0x340   :  { %2880 = vmatprep.mubr.f32.mxu1 %v6259_v0  ;;  %4406 = vmatpush1.bf16.msra.mxu1 %v4405_v43 }
 0x341   :  { %4408 = vmatprep.subr.bf16.mxu1 %v4407_v26  ;;  %v3513_v26 = vld [vmem:[#allocation8 + $0x90] sm:$0xff] }
 0x343   :  { %2881 = vmatmul.mubr.f32.gmra.mrb[68].mxu1 %v6037_v5 }
 0x344   :  { %2886 = vmatprep.mubr.f32.mxu1 %v6259_v0 }
 0x347   :  { %2887 = vmatmul.mubr.f32.gmra.mrb[70].mxu1 %v6049_v1 }
 0x348   :  { %2892 = vmatprep.mubr.f32.mxu1 %v6259_v0 }
 0x34b   :  { %2893 = vmatmul.mubr.f32.gmra.mrb[92].mxu1 %v6061_v41 }
 0x34c   :  { %2898 = vmatprep.mubr.f32.mxu1 %v6259_v0 }
 0x34f   :  { %2899 = vmatmul.mubr.f32.gmra.mrb[94].mxu1 %v6069_v29 }
 0x350   :  { %2969 = vmatprep.mubr.f32.mxu1 %v6259_v0 }
 0x353   :  { %2970 = vmatmul.mubr.f32.vlgmr.msra.gmra.mrb[96].mxu1 %v6265_v49 }
 0x354   :  { %4410 = vmatpush1.bf16.msra.mxu1 %v4409_v30  ;;  %2975 = vmatprep.mubr.f32.mxu1 %v6259_v0  ;;  %v3515_v30 = vld [vmem:[#allocation8 + $0xa0] sm:$0xff] }
 0x355   :  { %4412 = vmatprep.subr.bf16.mxu1 %v4411_v47  ;;  %v3516_v47 = vld [vmem:[#allocation8 + $0xa8] sm:$0xff] }
 0x356   :  { %v4447_v46 = vpack.c.bf16 %v3516_v47, %v3515_v30 }
 0x357   :  { %2976 = vmatmul.mubr.f32.gmra.mrb[98].mxu1 %v5953_v59 }
 0x358   :  { %2981 = vmatprep.mubr.f32.mxu1 %v6259_v0  ;;  %4414 = vmatpush1.bf16.msra.mxu1 %v4413_v63  ;;  %v3517_v63 = vld [vmem:[#allocation8 + $0xb0] sm:$0xff] }
 0x359   :  { %4416 = vmatprep.subr.bf16.mxu1 %v4415_v31  ;;  %v3518_v31 = vld [vmem:[#allocation8 + $0xb8] sm:$0xff] }
 0x35a   :  { %v4451_v11 = vpack.c.bf16 %v3518_v31, %v3517_v63  ;;  %v6266_v31 = vld [vmem:[#allocation21_spill] sm:$0xff] }
 0x35b   :  { %2982 = vmatmul.mubr.f32.gmra.mrb[100].mxu1 %v5965_v10  ;;  %v6267_v48 = vsub.s32 0, %v6266_v31 }
 0x35c   :  { %2987 = vmatprep.mubr.f32.mxu1 %v6259_v0  ;;  %4418 = vmatpush1.bf16.msra.mxu1 %v4417_v24  ;;  %v3519_v24 = vld [vmem:[#allocation8 + $0xc0] sm:$0xff] }
 0x35d   :  { %4420 = vmatprep.subr.bf16.mxu1 %v4419_v7  ;;  %v3520_v7 = vld [vmem:[#allocation8 + $0xc8] sm:$0xff] }
 0x35e   :  { %v4455_v15 = vpack.c.bf16 %v3520_v7, %v3519_v24 }
 0x35f   :  { %2988 = vmatmul.mubr.f32.gmra.mrb[56].mxu1 %v5977_v8 }
 0x360   :  { %2993 = vmatprep.mubr.f32.mxu1 %v6259_v0  ;;  %4422 = vmatpush1.bf16.msra.mxu1 %v4421_v25  ;;  %v4457_v25 = vpack.c.bf16 %v3504_v56, %v3503_v50 }
 0x361   :  { %4424 = vmatprep.subr.bf16.mxu1 %v4423_v27 }
 0x363   :  { %2994 = vmatmul.mubr.f32.gmra.mrb[58].mxu1 %v5989_v21 }
 0x364   :  { %2999 = vmatprep.mubr.f32.mxu1 %v6259_v0  ;;  %4426 = vmatpush1.bf16.msra.mxu1 %v4425_v22  ;;  %v3505_v22 = vld [vmem:[#allocation8 + $0x50] sm:$0xff] }
 0x365   :  { %4428 = vmatprep.subr.bf16.mxu1 %v4427_v36  ;;  %v3506_v36 = vld [vmem:[#allocation8 + $0x58] sm:$0xff] }
 0x366   :  { %v4461_v4 = vpack.c.bf16 %v3506_v36, %v3505_v22 }
 0x367   :  { %3000 = vmatmul.mubr.f32.gmra.mrb[60].mxu1 %v6001_v44 }
 0x368   :  { %3005 = vmatprep.mubr.f32.mxu1 %v6259_v0  ;;  %4430 = vmatpush1.bf16.msra.mxu1 %v4429_v37 }
 0x369   :  { %4432 = vmatprep.subr.bf16.mxu1 %v4431_v53  ;;  %v4463_v53 = vpack.c.bf16 %v3524_v2, %v3523_v40 }
 0x36b   :  { %3006 = vmatmul.mubr.f32.gmra.mrb[62].mxu1 %v6013_v54 }
 0x36c   :  { %3011 = vmatprep.mubr.f32.mxu1 %v6259_v0  ;;  %4434 = vmatpush1.bf16.msra.mxu1 %v4433_v12  ;;  %v3525_v12 = vld [vmem:[#allocation8 + $0xf0] sm:$0xff] }
 0x36d   :  { %4436 = vmatprep.subr.bf16.mxu1 %v4435_v38  ;;  %v3526_v38 = vld [vmem:[#allocation8 + $0xf8] sm:$0xff] }
 0x36e   :  { %v4467_v17 = vpack.c.bf16 %v3526_v38, %v3525_v12 }
 0x36f   :  { %3012 = vmatmul.mubr.f32.gmra.mrb[64].mxu1 %v6025_v57 }
 0x370   :  { %3017 = vmatprep.mubr.f32.mxu1 %v6259_v0  ;;  %4438 = vmatpush1.bf16.msra.mxu1 %v4437_v61  ;;  %v3509_v61 = vld [vmem:[#allocation8 + $0x70] sm:$0xff] }
 0x373   :  { %3018 = vmatmul.mubr.f32.gmra.mrb[66].mxu1 %v6037_v5 }
 0x374   :  { %3023 = vmatprep.mubr.f32.mxu1 %v6259_v0 }
 0x377   :  { %3024 = vmatmul.mubr.f32.gmra.mrb[68].mxu1 %v6049_v1 }
 0x378   :  { %3029 = vmatprep.mubr.f32.mxu1 %v6259_v0 }
 0x37b   :  { %3030 = vmatmul.mubr.f32.gmra.mrb[70].mxu1 %v6061_v41 }
 0x37c   :  { %3035 = vmatprep.mubr.f32.mxu1 %v6259_v0 }
 0x37f   :  { %3036 = vmatmul.mubr.f32.gmra.mrb[102].mxu1 %v6069_v29 }
 0x380   :  { %3106 = vmatprep.mubr.f32.mxu1 %v6259_v0 }
 0x383   :  { %3107 = vmatmul.mubr.f32.vlgmr.msra.gmra.mrb[104].mxu1 %v6265_v49 }
 0x384   :  { %3112 = vmatprep.mubr.f32.mxu1 %v6259_v0 }
 0x387   :  { %3113 = vmatmul.mubr.f32.gmra.mrb[106].mxu1 %v5953_v59 }
 0x388   :  { %3118 = vmatprep.mubr.f32.mxu1 %v6259_v0 }
 0x38b   :  { %3119 = vmatmul.mubr.f32.gmra.mrb[108].mxu1 %v5965_v10 }
 0x38c   :  { %3124 = vmatprep.mubr.f32.mxu1 %v6259_v0 }
 0x38f   :  { %3125 = vmatmul.mubr.f32.gmra.mrb[110].mxu1 %v5977_v8  ;;  %v3511_v8 = vld [vmem:[#allocation8 + $0x80] sm:$0xff] }
 0x390   :  { %3130 = vmatprep.mubr.f32.mxu1 %v6259_v0 }
 0x393   :  { %3131 = vmatmul.mubr.f32.gmra.mrb[56].mxu1 %v5989_v21  ;;  %v3512_v21 = vld [vmem:[#allocation8 + $0x88] sm:$0xff] }
 0x394   :  { %3136 = vmatprep.mubr.f32.mxu1 %v6259_v0 }
 0x397   :  { %3137 = vmatmul.mubr.f32.gmra.mrb[58].mxu1 %v6001_v44  ;;  %v3495_v44 = vld [vmem:[#allocation8] sm:$0xff] }
 0x398   :  { %3142 = vmatprep.mubr.f32.mxu1 %v6259_v0 }
 0x39b   :  { %3143 = vmatmul.mubr.f32.gmra.mrb[60].mxu1 %v6013_v54  ;;  %v4439_v54 = vpack.c.bf16 %v3512_v21, %v3511_v8  ;;  %v3543_v21 = vld [vmem:[#allocation8 + $0x180] sm:$0xff] }
 0x39c   :  { %3148 = vmatprep.mubr.f32.mxu1 %v6259_v0 }
 0x39d   :  { %4440 = vmatprep.subr.bf16.mxu1 %v4439_v54 }
 0x39f   :  { %3149 = vmatmul.mubr.f32.gmra.mrb[62].mxu1 %v6025_v57  ;;  %v3496_v57 = vld [vmem:[#allocation8 + $0x8] sm:$0xff] }
 0x3a0   :  { %3154 = vmatprep.mubr.f32.mxu1 %v6259_v0 }
 0x3a3   :  { %3155 = vmatmul.mubr.f32.gmra.mrb[64].mxu1 %v6037_v5  ;;  %v4441_v5 = vpack.c.bf16 %v3496_v57, %v3495_v44  ;;  %v3544_v44 = vld [vmem:[#allocation8 + $0x188] sm:$0xff] }
 0x3a4   :  { %3160 = vmatprep.mubr.f32.mxu1 %v6259_v0  ;;  %v4471_v57 = vpack.c.bf16 %v3544_v44, %v3543_v21  ;;  %v3545_v44 = vld [vmem:[#allocation8 + $0x190] sm:$0xff] }
 0x3a5   :  { %4442 = vmatpush3.bf16.msra.mxu1 %v4441_v5 }
 0x3a7   :  { %3161 = vmatmul.mubr.f32.gmra.mrb[66].mxu1 %v6049_v1 }
 0x3a8   :  { %3166 = vmatprep.mubr.f32.mxu1 %v6259_v0 }
 0x3aa   :  { %v2608_v59 = vpop.f32.mrb[72].mxu1 }
 0x3ab   :  { %v2610_v10 = vpop.f32.mrb[73].mxu1  ;;  %3167 = vmatmul.mubr.f32.gmra.mrb[68].mxu1 %v6061_v41  ;;  %v3510_v59 = vld [vmem:[#allocation8 + $0x78] sm:$0xff] }
 0x3ac   :  { %3172 = vmatprep.mubr.f32.mxu1 %v6259_v0  ;;  %v4469_v8 = vpack.c.bf16 %v3510_v59, %v3509_v61 }
 0x3af   :  { %3173 = vmatmul.mubr.f32.gmra.mrb[70].mxu1 %v6069_v29  ;;  %v4443_v29 = vpack.c.bf16 %v3514_v58, %v3513_v26 }
 0x3b1   :  { %4444 = vmatprep.subr.bf16.mxu1 %v4443_v29 }
 0x3b2   :  { %v2614_v49 = vpop.f32.mrb[74].mxu1  ;;  %4446 = vmatpush3.bf16.msra.mxu1 %v4445_v18 }
 0x3b3   :  { %v2616_v39 = vpop.f32.mrb[75].mxu1  ;;  %4448 = vmatprep.subr.bf16.mxu1 %v4447_v46 }
 0x3b6   :  { %4450 = vmatpush3.bf16.msra.mxu1 %v4449_v20  ;;  %v1734_v20 = vld [vmem:[%s6234_s4] sm:$0x3] }
 0x3b7   :  { %4452 = vmatprep.subr.bf16.mxu1 %v4451_v11  ;;  %v6173_v11 = vrot.slane %v1734_v20, %v6267_v48 }
 0x3ba   :  { %v2620_v1 = vpop.f32.mrb[76].mxu1  ;;  %4454 = vmatpush3.bf16.msra.mxu1 %v4453_v9  ;;  %v6268_v9 = vsub.s32 1, %v6266_v31  ;;  %v3532_v31 = vld [vmem:[#allocation8 + $0x128] sm:$0xff] }
 0x3bb   :  { %v2622_v13 = vpop.f32.mrb[77].mxu1  ;;  %4456 = vmatprep.subr.bf16.mxu1 %v4455_v15 }
 0x3bc   :  { %v6177_v24 = vrot.slane %v1734_v20, %v6268_v9  ;;  %v3550_v9 = vld [vmem:[#allocation8 + $0x1b8] sm:$0xff] }
 0x3be   :  { %4458 = vmatpush3.bf16.msra.mxu1 %v4457_v25 }
 0x3bf   :  { %4460 = vmatprep.subr.bf16.mxu1 %v4459_v28 }
 0x3c2   :  { %v2626_v62 = vpop.f32.mrb[78].mxu1  ;;  %4462 = vmatpush3.bf16.msra.mxu1 %v4461_v4 }
 0x3c3   :  { %v2628_v42 = vpop.f32.mrb[79].mxu1  ;;  %4464 = vmatprep.subr.bf16.mxu1 %v4463_v53 }
 0x3c6   :  { %v2697_v43 = vpop.f32.mrb[80].mxu1  ;;  %4466 = vmatpush3.bf16.msra.mxu1 %v4465_v3 }
 0x3c7   :  { %v2699_v41 = vpop.f32.mrb[81].mxu1  ;;  %4468 = vmatprep.subr.bf16.mxu1 %v4467_v17 }
 0x3ca   :  { %4470 = vmatpush3.bf16.msra.mxu1 %v4469_v8  ;;  %v3528_v8 = vld [vmem:[#allocation8 + $0x108] sm:$0xff] }
 0x3cb   :  { %4472 = vmatprep.subr.bf16.mxu1 %v4471_v57 }
 0x3ea   :  { %v2751_v34 = vpop.f32.mrb[82].mxu1 }
 0x3eb   :  { %v2753_v27 = vpop.f32.mrb[83].mxu1 }
 0x3ee   :  { %v2757_v55 = vpop.f32.mrb[84].mxu1 }
 0x3ef   :  { %v2759_v52 = vpop.f32.mrb[85].mxu1 }
 0x3f2   :  { %v2763_v37 = vpop.f32.mrb[86].mxu1 }
 0x3f3   :  { %v2765_v16 = vpop.f32.mrb[87].mxu1 }
 0x3f6   :  { %v2834_v19 = vpop.f32.mrb[88].mxu1 }
 0x3f7   :  { %v2836_v10 = vpop.f32.mrb[89].mxu1 }
 0x3f8   :  { %v3527_v10 = vld [vmem:[#allocation8 + $0x100] sm:$0xff] }
 0x3fa   :  { %v2840_v54 = vpop.f32.mrb[90].mxu1 }
 0x3fb   :  { %v2842_v5 = vpop.f32.mrb[91].mxu1  ;;  %v3546_v54 = vld [vmem:[#allocation8 + $0x198] sm:$0xff] }
 0x41e   :  { %v2894_v49 = vpop.f32.mrb[92].mxu1 }
 0x41f   :  { %v2896_v39 = vpop.f32.mrb[93].mxu1 }
 0x422   :  { %v2900_v1 = vpop.f32.mrb[94].mxu1 }
 0x423   :  { %v2902_v13 = vpop.f32.mrb[95].mxu1  ;;  %v4473_v1 = vpack.c.bf16 %v3528_v8, %v3527_v10  ;;  %v3556_v10 = vld [vmem:[#allocation8 + $0x1e8] sm:$0xff] }
 0x426   :  { %v2971_v62 = vpop.f32.mrb[96].mxu1 }
 0x427   :  { %v2973_v42 = vpop.f32.mrb[97].mxu1 }
 0x428   :  { %v4475_v42 = vpack.c.bf16 %v3546_v54, %v3545_v44  ;;  %v3539_v44 = vld [vmem:[#allocation8 + $0x160] sm:$0xff]  ;;  %v3540_v54 = vld [vmem:[#allocation8 + $0x168] sm:$0xff] }
 0x42a   :  { %v2977_v43 = vpop.f32.mrb[98].mxu1 }
 0x42b   :  { %v2979_v41 = vpop.f32.mrb[99].mxu1  ;;  %v3529_v43 = vld [vmem:[#allocation8 + $0x110] sm:$0xff] }
 0x42c   :  { %v3530_v41 = vld [vmem:[#allocation8 + $0x118] sm:$0xff] }
 0x42e   :  { %v2983_v26 = vpop.f32.mrb[100].mxu1 }
 0x42f   :  { %v2985_v58 = vpop.f32.mrb[101].mxu1 }
 0x430   :  { %v3547_v58 = vld [vmem:[#allocation8 + $0x1a0] sm:$0xff] }
 0x452   :  { %v3037_v45 = vpop.f32.mrb[102].mxu1 }
 0x453   :  { %v3039_v29 = vpop.f32.mrb[103].mxu1  ;;  %v3548_v45 = vld [vmem:[#allocation8 + $0x1a8] sm:$0xff] }
 0x454   :  { %v4479_v20 = vpack.c.bf16 %v3548_v45, %v3547_v58  ;;  %v3710_v45 = vld [vmem:[#allocation10 + $0x18] sm:$0xff] }
 0x456   :  { %v3108_v60 = vpop.f32.mrb[104].mxu1 }
 0x457   :  { %v3110_v18 = vpop.f32.mrb[105].mxu1 }
 0x45a   :  { %v3114_v30 = vpop.f32.mrb[106].mxu1 }
 0x45b   :  { %v3116_v47 = vpop.f32.mrb[107].mxu1 }
 0x45e   :  { %v3120_v46 = vpop.f32.mrb[108].mxu1 }
 0x45f   :  { %v3122_v32 = vpop.f32.mrb[109].mxu1  ;;  %v4477_v46 = vpack.c.bf16 %v3530_v41, %v3529_v43  ;;  %v3708_v43 = vld [vmem:[#allocation10 + $0x8] sm:$0xff]  ;;  %v3709_v41 = vld [vmem:[#allocation10 + $0x10] sm:$0xff] }
 0x462   :  { %v3126_v14 = vpop.f32.mrb[110].mxu1 }
 0x463   :  { %v3128_v63 = vpop.f32.mrb[111].mxu1 }
 0x464   :  { %v3531_v63 = vld [vmem:[#allocation8 + $0x120] sm:$0xff] }
 0x466   :  { %v3132_v33 = vpop.f32.mrb[56].mxu1 }
 0x467   :  { %v3134_v7 = vpop.f32.mrb[57].mxu1  ;;  %v4647_v15 = vadd.f32 %v3132_v33, %v6173_v11  ;;  %v3549_v33 = vld [vmem:[#allocation8 + $0x1b0] sm:$0xff] }
 0x468   :  { %v4648_v50 = vadd.f32 %v3134_v7, %v6177_v24 }
 0x469   :  { %v3319_v35 = vmax.f32 %v4647_v15, 0.0 }
 0x46a   :  { %v3138_v56 = vpop.f32.mrb[58].mxu1  ;;  %v3320_v55 = vmax.f32 %v4648_v50, 0.0 }
 0x46b   :  { %v4649_v34 = vadd.f32 %v3138_v56, %v6173_v11  ;;  %v3140_v25 = vpop.f32.mrb[59].mxu1 }
 0x46c   :  { %v4650_v27 = vadd.f32 %v3140_v25, %v6177_v24 }
 0x46d   :  { %v3341_v51 = vmax.f32 %v4649_v34, 0.0  ;;  %v4481_v34 = vpack.c.bf16 %v3532_v31, %v3531_v63  ;;  %v3717_v31 = vld [vmem:[#allocation10 + $0x50] sm:$0xff] }
 0x46e   :  { %v3342_v28 = vmax.f32 %v4650_v27, 0.0  ;;  %v3144_v22 = vpop.f32.mrb[60].mxu1 }
 0x46f   :  { %v3343_v36 = vmax.f32 %v3319_v35, %v3341_v51  ;;  %v3146_v52 = vpop.f32.mrb[61].mxu1  ;;  %v4651_v40 = vadd.f32 %v3144_v22, %v6173_v11  ;;  %v4483_v35 = vpack.c.bf16 %v3550_v9, %v3549_v33  ;;  %v3533_v51 = vld [vmem:[#allocation8 + $0x130] sm:$0xff]  ;;  %v3551_v22 = vld [vmem:[#allocation8 + $0x1c0] sm:$0xff] }
 0x470   :  { %v3344_v4 = vmax.f32 %v3320_v55, %v3342_v28  ;;  %v4652_v37 = vadd.f32 %v3146_v52, %v6177_v24  ;;  %v3534_v55 = vld [vmem:[#allocation8 + $0x138] sm:$0xff]  ;;  %v3719_v9 = vld [vmem:[#allocation10 + $0x60] sm:$0xff] }
 0x471   :  { %v3367_v3 = vmax.f32 %v4651_v40, 0.0 }
 0x472   :  { %v3345_v2 = vmax.f32 %v3343_v36, %v3344_v4  ;;  %v3150_v53 = vpop.f32.mrb[62].mxu1  ;;  %v3368_v38 = vmax.f32 %v4652_v37, 0.0  ;;  %v3552_v36 = vld [vmem:[#allocation8 + $0x1c8] sm:$0xff]  ;;  %v4485_v37 = vpack.c.bf16 %v3534_v55, %v3533_v51  ;;  %v4052_v51 = vld [vmem:[%s6236_s6] ss:$0 sm:$0xff] }
 0x473   :  { %v4653_v6 = vadd.f32 %v3150_v53, %v6173_v11  ;;  %v3152_v23 = vpop.f32.mrb[63].mxu1 }
 0x474   :  { %v4654_v16 = vadd.f32 %v3152_v23, %v6177_v24  ;;  %v3535_v23 = vld [vmem:[#allocation8 + $0x140] sm:$0xff] }
 0x475   :  { %v3389_v12 = vmax.f32 %v4653_v6, 0.0  ;;  %v4487_v6 = vpack.c.bf16 %v3552_v36, %v3551_v22 }
 0x476   :  { %v3390_v19 = vmax.f32 %v4654_v16, 0.0  ;;  %v3156_v17 = vpop.f32.mrb[64].mxu1 }
 0x477   :  { %v3391_v61 = vmax.f32 %v3367_v3, %v3389_v12  ;;  %v3158_v59 = vpop.f32.mrb[65].mxu1  ;;  %v4655_v57 = vadd.f32 %v3156_v17, %v6173_v11  ;;  %v3553_v3 = vld [vmem:[#allocation8 + $0x1d0] sm:$0xff]  ;;  %v3554_v12 = vld [vmem:[#allocation8 + $0x1d8] sm:$0xff] }
 0x478   :  { %v3392_v21 = vmax.f32 %v3368_v38, %v3390_v19  ;;  %v4656_v5 = vadd.f32 %v3158_v59, %v6177_v24  ;;  %v3537_v17 = vld [vmem:[#allocation8 + $0x150] sm:$0xff]  ;;  %v3555_v59 = vld [vmem:[#allocation8 + $0x1e0] sm:$0xff] }
 0x479   :  { %v3415_v29 = vmax.f32 %v4655_v57, 0.0  ;;  %v3557_v57 = vld [vmem:[#allocation8 + $0x1f0] sm:$0xff] }
 0x47a   :  { %v3162_v49 = vpop.f32.mrb[66].mxu1  ;;  %v3393_v39 = vmax.f32 %v3391_v61, %v3392_v21  ;;  %v3416_v18 = vmax.f32 %v4656_v5, 0.0  ;;  %v3538_v61 = vld [vmem:[#allocation8 + $0x158] sm:$0xff]  ;;  %v4495_v21 = vpack.c.bf16 %v3556_v10, %v3555_v59 }
 0x47b   :  { %v4657_v13 = vadd.f32 %v3162_v49, %v6173_v11  ;;  %v3164_v62 = vpop.f32.mrb[67].mxu1  ;;  %v4493_v8 = vpack.c.bf16 %v3538_v61, %v3537_v17  ;;  %v3558_v5 = vld [vmem:[#allocation8 + $0x1f8] sm:$0xff]  ;;  %v4497_v49 = vpack.c.bf16 %v3540_v54, %v3539_v44  ;;  %v3810_v17 = vld [vmem:[#allocation11 + $0x48] sm:$0xff]  ;;  %v3815_v54 = vld [vmem:[#allocation11 + $0x70] sm:$0xff] }
 0x47c   :  { %v4658_v26 = vadd.f32 %v3164_v62, %v6177_v24  ;;  %3630 = vmatprep.mubr.f32.mxu1 %v3393_v39  ;;  %v4499_v39 = vpack.c.bf16 %v3558_v5, %v3557_v57  ;;  %v3812_v59 = vld [vmem:[#allocation11 + $0x58] sm:$0xff] }
 0x47d   :  { %v3437_v60 = vmax.f32 %v4657_v13, 0.0  ;;  %3631 = vmatmul.mubr.f32.vlgmr.msra.gmra.mrb[112].mxu1 %v3345_v2  ;;  %v3542_v13 = vld [vmem:[#allocation8 + $0x178] sm:$0xff] }
 0x47e   :  { %v3438_v30 = vmax.f32 %v4658_v26, 0.0  ;;  %4474 = vmatpush3.bf16.msra.mxu1 %v4473_v1  ;;  %v3168_v47 = vpop.f32.mrb[68].mxu1  ;;  %v3541_v1 = vld [vmem:[#allocation8 + $0x170] sm:$0xff]  ;;  %v4987_v26 = vmov 0.0|0.0   ;;  %v3816_v57 = vld [vmem:[#allocation11 + $0x78] sm:$0xff] }
 0x47f   :  { %v6191_v32 = vmax.f32 %v3415_v29, %v3437_v60  ;;  %v3170_v14 = vpop.f32.mrb[69].mxu1  ;;  %4476 = vmatprep.subr.bf16.mxu1 %v4475_v42  ;;  %v4659_v7 = vadd.f32 %v3168_v47, %v6173_v11  ;;  %v4501_v62 = vpack.c.bf16 %v3542_v13, %v3541_v1  ;;  %v3707_v42 = vld [vmem:[#allocation10] sm:$0xff]  ;;  %v4507_v29 = vpack.c.bf16 %v3710_v45, %v3709_v41  ;;  %v3713_v47 = vld [vmem:[#allocation10 + $0x30] sm:$0xff] }
 0x480   :  { %v3440_v48 = vmax.f32 %v3416_v18, %v3438_v30  ;;  %v4660_v50 = vadd.f32 %v3170_v14, %v6177_v24  ;;  %v4504_v58 = vpack.c.bf16 %v3708_v43, %v3707_v42  ;;  %v3711_v60 = vld [vmem:[#allocation10 + $0x20] sm:$0xff]  ;;  %v3712_v18 = vld [vmem:[#allocation10 + $0x28] sm:$0xff]  ;;  %v4549_v5 = vpack.c.bf16 %v3816_v57, %v3815_v54 }
 0x481   :  { %v3463_v52 = vmax.f32 %v4659_v7, 0.0  ;;  %v4510_v30 = vpack.c.bf16 %v3712_v18, %v3711_v60  ;;  %v3715_v14 = vld [vmem:[#allocation10 + $0x40] sm:$0xff]  ;;  %v3720_v7 = vld [vmem:[#allocation10 + $0x68] sm:$0xff] }
 0x482   :  { %v3441_v15 = vmax.f32 %v6191_v32, %v3440_v48  ;;  %4478 = vmatpush3.bf16.msra.mxu1 %v4477_v46  ;;  %v3174_v56 = vpop.f32.mrb[70].mxu1  ;;  %v3464_v40 = vmax.f32 %v4660_v50, 0.0  ;;  %v3714_v46 = vld [vmem:[#allocation10 + $0x38] sm:$0xff]  ;;  %v3721_v50 = vld [vmem:[#allocation10 + $0x70] sm:$0xff]  ;;  %v4054_v42 = vld [vmem:[%s6240_s10] ss:$0 sm:$0xff] }
 0x483   :  { %v4661_v25 = vadd.f32 %v3174_v56, %v6173_v11  ;;  %v3176_v27 = vpop.f32.mrb[71].mxu1  ;;  %4480 = vmatprep.subr.bf16.mxu1 %v4479_v20  ;;  %v3536_v11 = vld [vmem:[#allocation8 + $0x148] sm:$0xff]  ;;  %v4513_v32 = vpack.c.bf16 %v3714_v46, %v3713_v47  ;;  %v3718_v48 = vld [vmem:[#allocation10 + $0x58] sm:$0xff] }
 0x484   :  { %v4662_v28 = vadd.f32 %v3176_v27, %v6177_v24  ;;  %v4489_v19 = vpack.c.bf16 %v3536_v11, %v3535_v23  ;;  %v4491_v24 = vpack.c.bf16 %v3554_v12, %v3553_v3  ;;  %v3716_v20 = vld [vmem:[#allocation10 + $0x48] sm:$0xff]  ;;  %v4519_v33 = vpack.c.bf16 %v3718_v48, %v3717_v31  ;;  %v3722_v56 = vld [vmem:[#allocation10 + $0x78] sm:$0xff]  ;;  %v3805_v11 = vld [vmem:[#allocation11 + $0x20] sm:$0xff] }
 0x485   :  { %v3485_v4 = vmax.f32 %v4661_v25, 0.0  ;;  %v4516_v63 = vpack.c.bf16 %v3716_v20, %v3715_v14  ;;  %v3807_v12 = vld [vmem:[#allocation11 + $0x30] sm:$0xff] }
 0x486   :  { %v3486_v2 = vmax.f32 %v4662_v28, 0.0  ;;  %4482 = vmatpush3.bf16.msra.mxu1 %v4481_v34  ;;  %v4525_v34 = vpack.c.bf16 %v3722_v56, %v3721_v50 }
 0x487   :  { %v3487_v53 = vmax.f32 %v3463_v52, %v3485_v4  ;;  %4484 = vmatprep.subr.bf16.mxu1 %v4483_v35  ;;  %v3801_v52 = vld [vmem:[#allocation11] sm:$0xff]  ;;  %v3802_v4 = vld [vmem:[#allocation11 + $0x8] sm:$0xff] }
 0x488   :  { %v3488_v16 = vmax.f32 %v3464_v40, %v3486_v2  ;;  %v4528_v2 = vpack.c.bf16 %v3802_v4, %v3801_v52 }
 0x48a   :  { %4486 = vmatpush3.bf16.msra.mxu1 %v4485_v37  ;;  %v3489_v38 = vmax.f32 %v3487_v53, %v3488_v16  ;;  %v3803_v53 = vld [vmem:[#allocation11 + $0x10] sm:$0xff]  ;;  %v3806_v16 = vld [vmem:[#allocation11 + $0x28] sm:$0xff] }
 0x48b   :  { %4488 = vmatprep.subr.bf16.mxu1 %v4487_v6  ;;  %v3804_v6 = vld [vmem:[#allocation11 + $0x18] sm:$0xff]  ;;  %v4534_v3 = vpack.c.bf16 %v3806_v16, %v3805_v11 }
 0x48c   :  { %3700 = vmatprep.mubr.f32.mxu1 %v3489_v38  ;;  %v4531_v23 = vpack.c.bf16 %v3804_v6, %v3803_v53  ;;  %v3808_v38 = vld [vmem:[#allocation11 + $0x38] sm:$0xff] }
 0x48e   :  { %4490 = vmatpush3.bf16.msra.mxu1 %v4489_v19  ;;  %v4537_v19 = vpack.c.bf16 %v3808_v38, %v3807_v12 }
 0x48f   :  { %4492 = vmatprep.subr.bf16.mxu1 %v4491_v24  ;;  %v3809_v24 = vld [vmem:[#allocation11 + $0x40] sm:$0xff] }
 0x490   :  { %v4540_v61 = vpack.c.bf16 %v3810_v17, %v3809_v24 }
 0x492   :  { %4494 = vmatpush3.bf16.msra.mxu1 %v4493_v8  ;;  %v3813_v8 = vld [vmem:[#allocation11 + $0x60] sm:$0xff] }
 0x493   :  { %4496 = vmatprep.subr.bf16.mxu1 %v4495_v21  ;;  %v3814_v21 = vld [vmem:[#allocation11 + $0x68] sm:$0xff] }
 0x494   :  { %v4546_v44 = vpack.c.bf16 %v3814_v21, %v3813_v8 }
 0x496   :  { %4498 = vmatpush3.bf16.msra.mxu1 %v4497_v49  ;;  %v4053_v49 = vld [vmem:[%s6238_s8] ss:$0 sm:$0xff] }
 0x497   :  { %4500 = vmatprep.subr.bf16.mxu1 %v4499_v39 }
 0x49a   :  { %4502 = vmatpush3.bf16.msra.mxu1 %v4501_v62 }
 0x49b   :  { %4503 = vmatprep.subr.bf16.mxu1 %v4987_v26 }
 0x49d   :  { %3701 = vmatmul.mubr.f32.vlgmr.msra.gmra.mrb[114].mxu1 %v3441_v15  ;;  %v4522_v15 = vpack.c.bf16 %v3720_v7, %v3719_v9 }
 0x49e   :  { %4505 = vmatpush3.bf16.msra.mxu1 %v4504_v58  ;;  %4191 = vmatprep.mubr.msk.f32.mxu1 %vm4988_vm4, %v6259_v0 }
 0x49f   :  { %4506 = vmatprep.subr.bf16.mxu1 %v4987_v26 }
 0x4a2   :  { %4508 = vmatpush3.bf16.msra.mxu1 %v4507_v29 }
 0x4a3   :  { %4509 = vmatprep.subr.bf16.mxu1 %v4987_v26 }
 0x4a6   :  { %4511 = vmatpush3.bf16.msra.mxu1 %v4510_v30 }
 0x4a7   :  { %4512 = vmatprep.subr.bf16.mxu1 %v4987_v26 }
 0x4aa   :  { %4514 = vmatpush3.bf16.msra.mxu1 %v4513_v32 }
 0x4ab   :  { %4515 = vmatprep.subr.bf16.mxu1 %v4987_v26 }
 0x4ae   :  { %4517 = vmatpush3.bf16.msra.mxu1 %v4516_v63 }
 0x4af   :  { %4518 = vmatprep.subr.bf16.mxu1 %v4987_v26 }
 0x4b2   :  { %4520 = vmatpush3.bf16.msra.mxu1 %v4519_v33 }
 0x4b3   :  { %4521 = vmatprep.subr.bf16.mxu1 %v4987_v26 }
 0x4b6   :  { %4523 = vmatpush3.bf16.msra.mxu1 %v4522_v15 }
 0x4b7   :  { %4524 = vmatprep.subr.bf16.mxu1 %v4987_v26 }
 0x4ba   :  { %4526 = vmatpush3.bf16.msra.mxu1 %v4525_v34 }
 0x4bb   :  { %4527 = vmatprep.subr.bf16.mxu1 %v4987_v26 }
 0x550   :  { %v4087_v25 = vpop.f32.mrb[112].mxu1 }
 0x551   :  { %v4088_v27 = vpop.f32.mrb[113].mxu1 }
 0x552   :  { %v4089_v35 = vadd.f32 %v4088_v27, %v4087_v25 }
 0x554   :  { %v3633_v22 = vadd.f32 %v4089_v35, %v4052_v51 }
 0x570   :  { %v4122_v55 = vpop.f32.mrb[114].mxu1 }
 0x571   :  { %v4123_v28 = vpop.f32.mrb[115].mxu1 }
 0x572   :  { %v4124_v36 = vadd.f32 %v4123_v28, %v4122_v55 }
 0x574   :  { %v3703_v40 = vadd.f32 %v4124_v36, %v3633_v22 }
 0x576   :  { %v3706_v37 = vmax.f32 %v3703_v40, 0.0 }
 0x578   :  { %4192 = vmatmul.mubr.f32.vlgmr.msra.gmra.mrb[116].mxu1 %v3706_v37 }
 0x579   :  { %4529 = vmatpush3.bf16.msra.mxu1 %v4528_v2  ;;  %4226 = vmatprep.mubr.msk.f32.mxu1 %vm4988_vm4, %v6259_v0  ;;  %v3811_v0 = vld [vmem:[#allocation11 + $0x50] sm:$0xff] }
 0x57a   :  { %4530 = vmatprep.subr.bf16.mxu1 %v4987_v26  ;;  %v4543_v10 = vpack.c.bf16 %v3812_v59, %v3811_v0 }
 0x57d   :  { %4532 = vmatpush3.bf16.msra.mxu1 %v4531_v23 }
 0x57e   :  { %4533 = vmatprep.subr.bf16.mxu1 %v4987_v26 }
 0x581   :  { %4535 = vmatpush3.bf16.msra.mxu1 %v4534_v3 }
 0x582   :  { %4536 = vmatprep.subr.bf16.mxu1 %v4987_v26 }
 0x585   :  { %4538 = vmatpush3.bf16.msra.mxu1 %v4537_v19 }
 0x586   :  { %4539 = vmatprep.subr.bf16.mxu1 %v4987_v26 }
 0x589   :  { %4541 = vmatpush3.bf16.msra.mxu1 %v4540_v61 }
 0x58a   :  { %4542 = vmatprep.subr.bf16.mxu1 %v4987_v26 }
 0x58d   :  { %4544 = vmatpush3.bf16.msra.mxu1 %v4543_v10 }
 0x58e   :  { %4545 = vmatprep.subr.bf16.mxu1 %v4987_v26 }
 0x591   :  { %4547 = vmatpush3.bf16.msra.mxu1 %v4546_v44 }
 0x592   :  { %4548 = vmatprep.subr.bf16.mxu1 %v4987_v26 }
 0x595   :  { %4550 = vmatpush3.bf16.msra.mxu1 %v4549_v5 }
 0x64b   :  { %v3796_v39 = vpop.f32.mrb[116].mxu1 }
 0x64c   :  { %v3797_v1 = vadd.f32 %v4053_v49, %v3796_v39  ;;  %v4193_v13 = vpop.f32.mrb[117].mxu1 }
 0x64e   :  { %v3800_v62 = vmax.f32 %v3797_v1, 0.0 }
 0x650   :  { %4227 = vmatmul.mubr.f32.vlgmr.msra.gmra.mrb[118].mxu1 %v3800_v62 }
 0x723   :  { %v3890_v43 = vpop.f32.mrb[118].mxu1 }
 0x724   :  { %v3891_v41 = vadd.f32 %v4054_v42, %v3890_v43  ;;  %v4228_v26 = vpop.f32.mrb[119].mxu1 }
 0x726   :  { %3894 = vst [vmem:[%s6241_s11] sm:$0xff] %v3891_v41 }
 0x727   :  { %3899 = vsyncpa [#allocation7], 1 }
 0x728   :  { %3900 = vsyncpa [#allocation9], 1 }
 0x729   :  { %3901 = vsyncpa [#allocation12], 1 }

</bundles_post_ra>
